<compile_context>
chip_gen: v7x
topology: tpu7x:2x2x1
jax: 0.10.0
libtpu: 0.0.40
codegen_flags: <defaults>
</compile_context>

<pallas_src>
import functools

import numpy as np

import jax
import jax.numpy as jnp
from jax.experimental import pallas as pl
from jax.experimental.pallas import tpu as pltpu


# =============================================================================
# Fused trunk kernel: conv0 -> 3x DBR -> ConvT(phase) -> final conv -> clamp
# =============================================================================
def _trunk_kernel(p0_ref, xres_ref, w0_ref, b0_ref, w1_ref, b1_ref,
                  wdbr_ref, bdbr_ref, wct_ref, bct_ref, wfin_ref, bfin_ref,
                  out_ref, fpad, tpad, rpad, *, H2, W2, nf):
    """Processes one batch element; all activations stay resident in VMEM.

    fpad/tpad: (H2+4, W2+4, nf)  zero-halo feature-map scratch (halo=2 covers
               both the dilation-1 and dilation-2 3x3 convs).
    rpad:      (H2+2, W2+2, 128) zero-halo ConvTranspose phase output
               (4 phases x 32 channels on the coarse grid).
    """
    M0 = H2 * W2
    PAD = 2

    def tap_conv(src_ref, pad, dil, cin, w_of_tap):
        """3x3 conv as 9 shifted (M0, cin) @ (cin, cout) MXU dots."""
        acc = None
        for ti in range(3):
            for tj in range(3):
                oi = pad + (ti - 1) * dil
                oj = pad + (tj - 1) * dil
                s = src_ref[oi:oi + H2, oj:oj + W2, :]
                s = s.reshape(M0, cin).astype(jnp.bfloat16)
                c = jnp.dot(s, w_of_tap(ti * 3 + tj),
                            preferred_element_type=jnp.float32)
                acc = c if acc is None else acc + c
        return acc

    # Zero the scratches once per grid step (tiny); halos must stay zero.
    fpad[...] = jnp.zeros_like(fpad)
    tpad[...] = jnp.zeros_like(tpad)
    rpad[...] = jnp.zeros_like(rpad)

    # conv0: im2col'd 4x4-s2 conv (1/std folded into weights) -> ReLU -> 1x1.
    h = jnp.dot(p0_ref[0], w0_ref[...], preferred_element_type=jnp.float32)
    h = jnp.maximum(h + b0_ref[...], 0.0)
    f = jnp.dot(h.astype(jnp.bfloat16), w1_ref[...],
                preferred_element_type=jnp.float32) + b1_ref[...]
    fpad[PAD:PAD + H2, PAD:PAD + W2, :] = f.reshape(H2, W2, nf)

    # f = relu(f + conv(relu(conv(f))))  for dilations (1, 2, 1).
    for blk, dil in enumerate((1, 2, 1)):
        a = tap_conv(fpad, PAD, dil, nf,
                     lambda t, i=2 * blk: wdbr_ref[i, t])
        t_act = jnp.maximum(a + bdbr_ref[2 * blk:2 * blk + 1, :], 0.0)
        tpad[PAD:PAD + H2, PAD:PAD + W2, :] = t_act.reshape(H2, W2, nf)

        a = tap_conv(tpad, PAD, dil, nf,
                     lambda t, i=2 * blk + 1: wdbr_ref[i, t])
        f = jnp.maximum(a + bdbr_ref[2 * blk + 1:2 * blk + 2, :] + f, 0.0)
        fpad[PAD:PAD + H2, PAD:PAD + W2, :] = f.reshape(H2, W2, nf)

    # ConvTranspose2d(nf->32, k4, s2, p1) + ReLU, phase-decomposed as a 3x3
    # conv producing 4*32 = 128 lane-dense channels on the coarse grid.
    a = tap_conv(fpad, PAD, 1, nf, lambda t: wct_ref[t])
    r = jnp.maximum(a + bct_ref[...], 0.0)
    rpad[1:1 + H2, 1:1 + W2, :] = r.reshape(H2, W2, 4 * 32)

    # Final 3x3 conv evaluated in phase domain (de-norm *std folded into the
    # weights) + raw-x residual + clamp(0,1) epilogue.
    a = tap_conv(rpad, 1, 1, 4 * 32, lambda t: wfin_ref[t])
    out = a + bfin_ref[...] + xres_ref[0]
    out_ref[0] = jnp.clip(out, 0.0, 1.0).astype(out_ref.dtype)


def trunk_pallas(p0, xres, prep, H2, W2):
    N = p0.shape[0]
    M0 = H2 * W2
    nf = prep["w1"].shape[1]
    kern = functools.partial(_trunk_kernel, H2=H2, W2=W2, nf=nf)
    return pl.pallas_call(
        kern,
        out_shape=jax.ShapeDtypeStruct((N, M0, 12), jnp.float32),
        grid=(N,),
        in_specs=[
            pl.BlockSpec((1, M0, 48), lambda b: (b, 0, 0)),       # conv0 patches
            pl.BlockSpec((1, M0, 12), lambda b: (b, 0, 0)),       # raw-x residual (phase)
            pl.BlockSpec((48, 32), lambda b: (0, 0)),             # conv0 4x4 weights
            pl.BlockSpec((1, 32), lambda b: (0, 0)),
            pl.BlockSpec((32, nf), lambda b: (0, 0)),             # conv0 1x1 weights
            pl.BlockSpec((1, nf), lambda b: (0, 0)),
            pl.BlockSpec((6, 9, nf, nf), lambda b: (0, 0, 0, 0)),  # DBR tap weights
            pl.BlockSpec((6, nf), lambda b: (0, 0)),
            pl.BlockSpec((9, nf, 128), lambda b: (0, 0, 0)),       # ConvT phase taps
            pl.BlockSpec((1, 128), lambda b: (0, 0)),
            pl.BlockSpec((9, 128, 12), lambda b: (0, 0, 0)),       # final conv (phase)
            pl.BlockSpec((1, 12), lambda b: (0, 0)),
        ],
        out_specs=pl.BlockSpec((1, M0, 12), lambda b: (b, 0, 0)),
        scratch_shapes=[
            pltpu.VMEM((H2 + 4, W2 + 4, nf), jnp.float32),
            pltpu.VMEM((H2 + 4, W2 + 4, nf), jnp.float32),
            pltpu.VMEM((H2 + 2, W2 + 2, 4 * 32), jnp.float32),
        ],
        compiler_params=pltpu.CompilerParams(
            dimension_semantics=("parallel",)),
    )(p0, xres, prep["w0"], prep["b0"], prep["w1"], prep["b1"],
      prep["wdbr"], prep["bdbr"], prep["wct"], prep["bct"],
      prep["wfin"], prep["bfin"])


# =============================================================================
# JAX-side glue (conv0 im2col only) and one-time weight preparation
# =============================================================================
def _im2col(x, kh, kw, stride, padding, dilation):
    """x: NHWC -> patches (N, Ho, Wo, kh*kw*C) with PyTorch conv semantics."""
    N, H, W, C = x.shape
    xp = jnp.pad(x, ((0, 0), (padding, padding), (padding, padding), (0, 0)))
    Hp, Wp = H + 2 * padding, W + 2 * padding
    Ho = (Hp - dilation * (kh - 1) - 1) // stride + 1
    Wo = (Wp - dilation * (kw - 1) - 1) // stride + 1
    cols = []
    for i in range(kh):
        for j in range(kw):
            cols.append(xp[
                :,
                i * dilation: i * dilation + (Ho - 1) * stride + 1: stride,
                j * dilation: j * dilation + (Wo - 1) * stride + 1: stride,
                :])
    return jnp.concatenate(cols, axis=-1), Ho, Wo


def prepare_params(params):
    """One-time weight preprocessing: folds, flips, phase builds, bf16 casts."""
    nf = int(params["conv0_w1"].shape[0])
    std = np.asarray(params["std"], np.float32)

    # conv0: fold 1/std into the 4x4 conv's input channels; matmul layouts.
    w0 = np.asarray(params["conv0_w0"], np.float32) / std[None, :, None, None]
    w0m = w0.transpose(2, 3, 1, 0).reshape(4 * 4 * 3, 32)
    w1m = np.asarray(params["conv0_w1"], np.float32).reshape(nf, 32).T

    # DBR convs: per-tap (cin, cout) matrices, stacked (6, 9, nf, nf).
    wdbr = np.zeros((6, 9, nf, nf), np.float32)
    bdbr = np.zeros((6, nf), np.float32)
    for i, name in enumerate(("dbr_w0", "dbr_w1", "dbr1_w0", "dbr1_w1",
                              "dbr2_w0", "dbr2_w1")):
        wi = np.asarray(params[name], np.float32)
        wdbr[i] = wi.transpose(2, 3, 1, 0).reshape(9, nf, nf)
        bdbr[i] = np.asarray(params[name.replace("_w", "_b")], np.float32)

    # ConvTranspose2d(nf->32, k4, s2, p1): phase-decomposed 3x3 tap weights.
    # Output pixel (2m+ph, 2n+pw) = sum over 3x3 pad-1 taps (ti,tj) of
    # f[m+ti-1, n+tj-1] @ w_eq[:, :, 2ti-ph, 2tj-pw], w_eq = flipped ConvT weight.
    ct_w = np.asarray(params["ct_w"], np.float32)           # (nf, 32, 4, 4)
    w_eq = ct_w.transpose(1, 0, 2, 3)[:, :, ::-1, ::-1]     # (32, nf, kh, kw)
    wct = np.zeros((3, 3, nf, 4 * 32), np.float32)
    for ph in range(2):
        for pw in range(2):
            col = (ph * 2 + pw) * 32
            for ti in range(3):
                kh = 2 * ti - ph
                if not 0 <= kh < 4:
                    continue
                for tj in range(3):
                    kw = 2 * tj - pw
                    if not 0 <= kw < 4:
                        continue
                    wct[ti, tj, :, col:col + 32] = w_eq[:, :, kh, kw].T
    bct = np.tile(np.asarray(params["ct_b"], np.float32), 4)

    # Final 3x3 conv in phase domain, with the de-norm *std fold:
    # out phase (ph,pw) coarse tap (dm,dn) pulls channel block (ph',pw') where
    # ph+ki-1 = 2*dm+ph' (and likewise for columns).
    c1_ws = np.asarray(params["c1_w"], np.float32) * std[:, None, None, None]
    wfin = np.zeros((3, 3, 4 * 32, 12), np.float32)
    for ph in range(2):
        for pw in range(2):
            ocol = (ph * 2 + pw) * 3
            for ki in range(3):
                u = ph + ki - 1
                dm, ph_src = u // 2, u % 2
                for kj in range(3):
                    v = pw + kj - 1
                    dn, pw_src = v // 2, v % 2
                    icol = (ph_src * 2 + pw_src) * 32
                    wfin[dm + 1, dn + 1, icol:icol + 32, ocol:ocol + 3] += \
                        c1_ws[:, :, ki, kj].T
    bfin = np.tile(np.asarray(params["c1_b"], np.float32) * std, 4)

    f32, bf16 = jnp.float32, jnp.bfloat16
    return {
        "mean": jnp.asarray(params["mean"], f32),
        "w0": jnp.asarray(w0m, bf16),
        "b0": jnp.asarray(np.asarray(params["conv0_b0"], np.float32).reshape(1, 32), f32),
        "w1": jnp.asarray(w1m, bf16),
        "b1": jnp.asarray(np.asarray(params["conv0_b1"], np.float32).reshape(1, nf), f32),
        "wdbr": jnp.asarray(wdbr, bf16),
        "bdbr": jnp.asarray(bdbr, f32),
        "wct": jnp.asarray(wct.reshape(9, nf, 128), bf16),
        "bct": jnp.asarray(bct.reshape(1, 128), f32),
        "wfin": jnp.asarray(wfin.reshape(9, 128, 12), bf16),
        "bfin": jnp.asarray(bfin.reshape(1, 12), f32),
    }


def ddgn_forward(prep, x_nchw, dps_nchw=None):
    """Pallas forward. `dps_nchw` is accepted for signature parity but the
    conv_dps branch is dead compute in the reference forward and is omitted."""
    del dps_nchw
    x = jnp.transpose(x_nchw, (0, 2, 3, 1)).astype(jnp.float32)   # NHWC, raw
    N, H, W, _ = x.shape
    assert H % 2 == 0 and W % 2 == 0
    H2, W2 = H // 2, W // 2

    # conv0 im2col of the mean-shifted input (bf16 BEFORE the 16x blow-up);
    # 1/std is already folded into prep["w0"].
    xs = (x - prep["mean"]).astype(jnp.bfloat16)
    p0, _, _ = _im2col(xs, 4, 4, 2, 1, 1)
    p0 = p0.reshape(N, H2 * W2, 48)

    # Raw-x residual, phase-decomposed to match the kernel's 12-wide output.
    xres = x.reshape(N, H2, 2, W2, 2, 3).transpose(0, 1, 3, 2, 4, 5)
    xres = xres.reshape(N, H2 * W2, 12)

    out12 = trunk_pallas(p0, xres, prep, H2, W2)

    # Interleave phases -> (N, H, W, 3) -> NCHW.
    out = out12.reshape(N, H2, W2, 2, 2, 3).transpose(0, 1, 3, 2, 4, 5)
    out = out.reshape(N, H, W, 3)
    return jnp.transpose(out, (0, 3, 1, 2))


# =============================================================================
# Pure-JAX f32 reference (numeric validation of the folds / phase decomposition)
# =============================================================================
def _conv2d_ref(x, w, b, stride=1, padding=0, dilation=1):
    patches, _, _ = _im2col(x, w.shape[2], w.shape[3], stride, padding, dilation)
    wm = jnp.transpose(w, (2, 3, 1, 0)).reshape(-1, w.shape[0])
    out = jnp.einsum("nhwk,ko->nhwo", patches, wm,
                     precision=jax.lax.Precision.HIGHEST)
    return out + b


def _conv_transpose_ref(x, w_t, b):
    # ConvTranspose2d(Cin->Cout, k=4, s=2, p=1) == conv(dilate2(x), flip(w)^T, pad=2)
    N, H, W, Cin = x.shape
    xd = jnp.zeros((N, 2 * H - 1, 2 * W - 1, Cin), x.dtype)
    xd = xd.at[:, ::2, ::2, :].set(x)
    w_eq = jnp.transpose(w_t, (1, 0, 2, 3))[:, :, ::-1, ::-1]
    return _conv2d_ref(xd, w_eq, b, stride=1, padding=2)


def ddgn_reference(params, x_nchw):
    x = jnp.transpose(x_nchw, (0, 2, 3, 1))
    mean, std = params["mean"], params["std"]
    xn = (x - mean) / std
    h = jax.nn.relu(_conv2d_ref(xn, params["conv0_w0"], params["conv0_b0"],
                                stride=2, padding=1))
    f = _conv2d_ref(h, params["conv0_w1"], params["conv0_b1"])

    def dbr(f, w0, b0, w1, b1, p, d):
        t = jax.nn.relu(_conv2d_ref(f, w0, b0, padding=p, dilation=d))
        return jax.nn.relu(f + _conv2d_ref(t, w1, b1, padding=p, dilation=d))

    f = dbr(f, params["dbr_w0"], params["dbr_b0"],
            params["dbr_w1"], params["dbr_b1"], 1, 1)
    f = dbr(f, params["dbr1_w0"], params["dbr1_b0"],
            params["dbr1_w1"], params["dbr1_b1"], 2, 2)
    f = dbr(f, params["dbr2_w0"], params["dbr2_b0"],
            params["dbr2_w1"], params["dbr2_b1"], 1, 1)
    r = jax.nn.relu(_conv_transpose_ref(f, params["ct_w"], params["ct_b"]))
    r = _conv2d_ref(r, params["c1_w"], params["c1_b"], padding=1)
    out = jnp.clip((xn + r) * std + mean, 0.0, 1.0)
    return jnp.transpose(out, (0, 3, 1, 2))


# =============================================================================
# Parameter init + self-test
# =============================================================================
def init_params(key, num_features=64):
    keys = iter(jax.random.split(key, 20))

    def w(shape, scale=0.05):
        return jax.random.normal(next(keys), shape, jnp.float32) * scale

    def b(n):
        return jax.random.normal(next(keys), (n,), jnp.float32) * 0.01

    nf = num_features
    return {
        "mean": jnp.array([0.485, 0.456, 0.406], jnp.float32),
        "std": jnp.array([0.229, 0.224, 0.225], jnp.float32),
        "conv0_w0": w((32, 3, 4, 4)), "conv0_b0": b(32),
        "conv0_w1": w((nf, 32, 1, 1)), "conv0_b1": b(nf),
        "dbr_w0": w((nf, nf, 3, 3)), "dbr_b0": b(nf),
        "dbr_w1": w((nf, nf, 3, 3)), "dbr_b1": b(nf),
        "dbr1_w0": w((nf, nf, 3, 3)), "dbr1_b0": b(nf),
        "dbr1_w1": w((nf, nf, 3, 3)), "dbr1_b1": b(nf),
        "dbr2_w0": w((nf, nf, 3, 3)), "dbr2_b0": b(nf),
        "dbr2_w1": w((nf, nf, 3, 3)), "dbr2_b1": b(nf),
        "ct_w": w((nf, 32, 4, 4)), "ct_b": b(32),   # ConvTranspose2d(nf, 32, 4, 2, 1)
        "c1_w": w((3, 32, 3, 3)), "c1_b": b(3),
    }


if __name__ == "__main__":
    key = jax.random.PRNGKey(0)
    k_param, k_x, k_d = jax.random.split(key, 3)

    params = init_params(k_param, num_features=64)
    prep = prepare_params(params)

    x = jax.random.uniform(k_x, (2, 3, 16, 16), jnp.float32)    # NCHW like PyTorch
    dps = jax.random.normal(k_d, (2, 1, 16, 16), jnp.float32)   # unused (dead branch)

    fwd = jax.jit(ddgn_forward)
    out = fwd(prep, x, dps)
    jax.block_until_ready(out)

    assert out.shape == (2, 3, 16, 16)
    assert out.dtype == jnp.float32
    assert bool(jnp.all(out >= 0.0)) and bool(jnp.all(out <= 1.0))

    # Numeric check against a pure-JAX f32 reference of the PyTorch forward
    # (bf16 matmul operands, f32 accumulation -> small deviations expected).
    ref = ddgn_reference(params, x)
    max_err = float(jnp.max(jnp.abs(out - ref)))
    assert max_err < 2e-2, f"max |kernel - reference| = {max_err}"

    print("KERNEL_OK")
</pallas_src>

<mosaic_0001>
module attributes {stable_mosaic.version = 11 : i64} {
  func.func @_trunk_kernel(%arg0: i32, %arg1: memref<1x64x48xbf16, #tpu.memory_space<vmem>>, %arg2: memref<1x64x12xf32, #tpu.memory_space<vmem>>, %arg3: memref<48x32xbf16, #tpu.memory_space<vmem>>, %arg4: memref<1x32xf32, #tpu.memory_space<vmem>>, %arg5: memref<32x64xbf16, #tpu.memory_space<vmem>>, %arg6: memref<1x64xf32, #tpu.memory_space<vmem>>, %arg7: memref<6x9x64x64xbf16, #tpu.memory_space<vmem>>, %arg8: memref<6x64xf32, #tpu.memory_space<vmem>>, %arg9: memref<9x64x128xbf16, #tpu.memory_space<vmem>>, %arg10: memref<1x128xf32, #tpu.memory_space<vmem>>, %arg11: memref<9x128x12xbf16, #tpu.memory_space<vmem>>, %arg12: memref<1x12xf32, #tpu.memory_space<vmem>>, %arg13: memref<1x64x12xf32, #tpu.memory_space<vmem>>, %arg14: memref<12x12x64xf32, #tpu.memory_space<vmem>>, %arg15: memref<12x12x64xf32, #tpu.memory_space<vmem>>, %arg16: memref<10x10x128xf32, #tpu.memory_space<vmem>>) attributes {dimension_semantics = [#tpu.dimension_semantics<parallel>], iteration_bounds = array<i64: 2>, scalar_prefetch = 0 : i64, scratch_operands = 3 : i64, tpu.core_type = #tpu.core_type<tc>, window_params = [{transform_indices = @transform_0, window_bounds = array<i64: 1, 64, 48>}, {transform_indices = @transform_1, window_bounds = array<i64: 1, 64, 12>}, {pipeline_mode = #tpu.pipeline_mode<synchronous>, transform_indices = @transform_2, window_bounds = array<i64: 48, 32>}, {pipeline_mode = #tpu.pipeline_mode<synchronous>, transform_indices = @transform_3, window_bounds = array<i64: 1, 32>}, {pipeline_mode = #tpu.pipeline_mode<synchronous>, transform_indices = @transform_4, window_bounds = array<i64: 32, 64>}, {pipeline_mode = #tpu.pipeline_mode<synchronous>, transform_indices = @transform_5, window_bounds = array<i64: 1, 64>}, {pipeline_mode = #tpu.pipeline_mode<synchronous>, transform_indices = @transform_6, window_bounds = array<i64: 6, 9, 64, 64>}, {pipeline_mode = #tpu.pipeline_mode<synchronous>, transform_indices = @transform_7, window_bounds = array<i64: 6, 64>}, {pipeline_mode = #tpu.pipeline_mode<synchronous>, transform_indices = @transform_8, window_bounds = array<i64: 9, 64, 128>}, {pipeline_mode = #tpu.pipeline_mode<synchronous>, transform_indices = @transform_9, window_bounds = array<i64: 1, 128>}, {pipeline_mode = #tpu.pipeline_mode<synchronous>, transform_indices = @transform_10, window_bounds = array<i64: 9, 128, 12>}, {pipeline_mode = #tpu.pipeline_mode<synchronous>, transform_indices = @transform_11, window_bounds = array<i64: 1, 12>}, {transform_indices = @transform_12, window_bounds = array<i64: 1, 64, 12>}]} {
    %cst = arith.constant 0.000000e+00 : f32
    %0 = vector.broadcast %cst : f32 to vector<12x12x64xf32>
    %c0 = arith.constant 0 : index
    %c0_0 = arith.constant 0 : index
    %c0_1 = arith.constant 0 : index
    %1 = vector.load %arg14[%c0, %c0_0, %c0_1] : memref<12x12x64xf32, #tpu.memory_space<vmem>>, vector<12x12x64xf32>
    tpu.vector_store %arg14[%c0, %c0_0, %c0_1], %0 {strides = array<i32>} : memref<12x12x64xf32, #tpu.memory_space<vmem>>, vector<12x12x64xf32>,
    %cst_2 = arith.constant 0.000000e+00 : f32
    %2 = vector.broadcast %cst_2 : f32 to vector<12x12x64xf32>
    %c0_3 = arith.constant 0 : index
    %c0_4 = arith.constant 0 : index
    %c0_5 = arith.constant 0 : index
    %3 = vector.load %arg15[%c0_3, %c0_4, %c0_5] : memref<12x12x64xf32, #tpu.memory_space<vmem>>, vector<12x12x64xf32>
    tpu.vector_store %arg15[%c0_3, %c0_4, %c0_5], %2 {strides = array<i32>} : memref<12x12x64xf32, #tpu.memory_space<vmem>>, vector<12x12x64xf32>,
    %cst_6 = arith.constant 0.000000e+00 : f32
    %4 = vector.broadcast %cst_6 : f32 to vector<10x10x128xf32>
    %c0_7 = arith.constant 0 : index
    %c0_8 = arith.constant 0 : index
    %c0_9 = arith.constant 0 : index
    %5 = vector.load %arg16[%c0_7, %c0_8, %c0_9] : memref<10x10x128xf32, #tpu.memory_space<vmem>>, vector<10x10x128xf32>
    tpu.vector_store %arg16[%c0_7, %c0_8, %c0_9], %4 {strides = array<i32>} : memref<10x10x128xf32, #tpu.memory_space<vmem>>, vector<10x10x128xf32>,
    %c0_10 = arith.constant 0 : index
    %c0_11 = arith.constant 0 : index
    %c0_12 = arith.constant 0 : index
    %6 = vector.load %arg1[%c0_10, %c0_11, %c0_12] : memref<1x64x48xbf16, #tpu.memory_space<vmem>>, vector<1x64x48xbf16>
    %7 = vector.shape_cast %6 : vector<1x64x48xbf16> to vector<64x48xbf16>
    %c0_13 = arith.constant 0 : index
    %c0_14 = arith.constant 0 : index
    %8 = vector.load %arg3[%c0_13, %c0_14] : memref<48x32xbf16, #tpu.memory_space<vmem>>, vector<48x32xbf16>
    %cst_15 = arith.constant dense<0.000000e+00> : vector<64x32xf32>
    %9 = tpu.matmul %7, %8, %cst_15 {dimension_numbers = #tpu.dot_dimension_numbers<[1], [0], [0], [1], [0, 0, 1, 1], [], []>} : vector<64x48xbf16>, vector<48x32xbf16>, vector<64x32xf32> -> vector<64x32xf32>
    %c0_16 = arith.constant 0 : index
    %c0_17 = arith.constant 0 : index
    %10 = vector.load %arg4[%c0_16, %c0_17] : memref<1x32xf32, #tpu.memory_space<vmem>>, vector<1x32xf32>
    %11 = vector.broadcast %10 : vector<1x32xf32> to vector<64x32xf32>
    %12 = arith.addf %9, %11 : vector<64x32xf32>
    %cst_18 = arith.constant 0.000000e+00 : f32
    %13 = vector.broadcast %cst_18 : f32 to vector<64x32xf32>
    %14 = arith.maximumf %12, %13 : vector<64x32xf32>
    %15 = arith.truncf %14 : vector<64x32xf32> to vector<64x32xbf16>
    %c0_19 = arith.constant 0 : index
    %c0_20 = arith.constant 0 : index
    %16 = vector.load %arg5[%c0_19, %c0_20] : memref<32x64xbf16, #tpu.memory_space<vmem>>, vector<32x64xbf16>
    %cst_21 = arith.constant dense<0.000000e+00> : vector<64x64xf32>
    %17 = tpu.matmul %15, %16, %cst_21 {dimension_numbers = #tpu.dot_dimension_numbers<[1], [0], [0], [1], [0, 0, 1, 1], [], []>} : vector<64x32xbf16>, vector<32x64xbf16>, vector<64x64xf32> -> vector<64x64xf32>
    %c0_22 = arith.constant 0 : index
    %c0_23 = arith.constant 0 : index
    %18 = vector.load %arg6[%c0_22, %c0_23] : memref<1x64xf32, #tpu.memory_space<vmem>>, vector<1x64xf32>
    %19 = vector.broadcast %18 : vector<1x64xf32> to vector<64x64xf32>
    %20 = arith.addf %17, %19 : vector<64x64xf32>
    %21 = vector.shape_cast %20 : vector<64x64xf32> to vector<8x8x64xf32>
    %c2 = arith.constant 2 : index
    %c2_24 = arith.constant 2 : index
    %c0_25 = arith.constant 0 : index
    %22 = vector.load %arg14[%c2, %c2_24, %c0_25] : memref<12x12x64xf32, #tpu.memory_space<vmem>>, vector<8x8x64xf32>
    tpu.vector_store %arg14[%c2, %c2_24, %c0_25], %21 {strides = array<i32>} : memref<12x12x64xf32, #tpu.memory_space<vmem>>, vector<8x8x64xf32>,
    %c1 = arith.constant 1 : index
    %c1_26 = arith.constant 1 : index
    %c0_27 = arith.constant 0 : index
    %23 = vector.load %arg14[%c1, %c1_26, %c0_27] : memref<12x12x64xf32, #tpu.memory_space<vmem>>, vector<8x8x64xf32>
    %24 = vector.shape_cast %23 : vector<8x8x64xf32> to vector<64x64xf32>
    %25 = arith.truncf %24 : vector<64x64xf32> to vector<64x64xbf16>
    %c0_28 = arith.constant 0 : index
    %c0_29 = arith.constant 0 : index
    %c0_30 = arith.constant 0 : index
    %c0_31 = arith.constant 0 : index
    %26 = vector.load %arg7[%c0_28, %c0_29, %c0_30, %c0_31] : memref<6x9x64x64xbf16, #tpu.memory_space<vmem>>, vector<1x1x64x64xbf16>
    %27 = vector.shape_cast %26 : vector<1x1x64x64xbf16> to vector<64x64xbf16>
    %cst_32 = arith.constant dense<0.000000e+00> : vector<64x64xf32>
    %28 = tpu.matmul %25, %27, %cst_32 {dimension_numbers = #tpu.dot_dimension_numbers<[1], [0], [0], [1], [0, 0, 1, 1], [], []>} : vector<64x64xbf16>, vector<64x64xbf16>, vector<64x64xf32> -> vector<64x64xf32>
    %c1_33 = arith.constant 1 : index
    %c2_34 = arith.constant 2 : index
    %c0_35 = arith.constant 0 : index
    %29 = vector.load %arg14[%c1_33, %c2_34, %c0_35] : memref<12x12x64xf32, #tpu.memory_space<vmem>>, vector<8x8x64xf32>
    %30 = vector.shape_cast %29 : vector<8x8x64xf32> to vector<64x64xf32>
    %31 = arith.truncf %30 : vector<64x64xf32> to vector<64x64xbf16>
    %c0_36 = arith.constant 0 : index
    %c1_37 = arith.constant 1 : index
    %c0_38 = arith.constant 0 : index
    %c0_39 = arith.constant 0 : index
    %32 = vector.load %arg7[%c0_36, %c1_37, %c0_38, %c0_39] : memref<6x9x64x64xbf16, #tpu.memory_space<vmem>>, vector<1x1x64x64xbf16>
    %33 = vector.shape_cast %32 : vector<1x1x64x64xbf16> to vector<64x64xbf16>
    %cst_40 = arith.constant dense<0.000000e+00> : vector<64x64xf32>
    %34 = tpu.matmul %31, %33, %cst_40 {dimension_numbers = #tpu.dot_dimension_numbers<[1], [0], [0], [1], [0, 0, 1, 1], [], []>} : vector<64x64xbf16>, vector<64x64xbf16>, vector<64x64xf32> -> vector<64x64xf32>
    %35 = arith.addf %28, %34 : vector<64x64xf32>
    %c1_41 = arith.constant 1 : index
    %c3 = arith.constant 3 : index
    %c0_42 = arith.constant 0 : index
    %36 = vector.load %arg14[%c1_41, %c3, %c0_42] : memref<12x12x64xf32, #tpu.memory_space<vmem>>, vector<8x8x64xf32>
    %37 = vector.shape_cast %36 : vector<8x8x64xf32> to vector<64x64xf32>
    %38 = arith.truncf %37 : vector<64x64xf32> to vector<64x64xbf16>
    %c0_43 = arith.constant 0 : index
    %c2_44 = arith.constant 2 : index
    %c0_45 = arith.constant 0 : index
    %c0_46 = arith.constant 0 : index
    %39 = vector.load %arg7[%c0_43, %c2_44, %c0_45, %c0_46] : memref<6x9x64x64xbf16, #tpu.memory_space<vmem>>, vector<1x1x64x64xbf16>
    %40 = vector.shape_cast %39 : vector<1x1x64x64xbf16> to vector<64x64xbf16>
    %cst_47 = arith.constant dense<0.000000e+00> : vector<64x64xf32>
    %41 = tpu.matmul %38, %40, %cst_47 {dimension_numbers = #tpu.dot_dimension_numbers<[1], [0], [0], [1], [0, 0, 1, 1], [], []>} : vector<64x64xbf16>, vector<64x64xbf16>, vector<64x64xf32> -> vector<64x64xf32>
    %42 = arith.addf %35, %41 : vector<64x64xf32>
    %c2_48 = arith.constant 2 : index
    %c1_49 = arith.constant 1 : index
    %c0_50 = arith.constant 0 : index
    %43 = vector.load %arg14[%c2_48, %c1_49, %c0_50] : memref<12x12x64xf32, #tpu.memory_space<vmem>>, vector<8x8x64xf32>
    %44 = vector.shape_cast %43 : vector<8x8x64xf32> to vector<64x64xf32>
    %45 = arith.truncf %44 : vector<64x64xf32> to vector<64x64xbf16>
    %c0_51 = arith.constant 0 : index
    %c3_52 = arith.constant 3 : index
    %c0_53 = arith.constant 0 : index
    %c0_54 = arith.constant 0 : index
    %46 = vector.load %arg7[%c0_51, %c3_52, %c0_53, %c0_54] : memref<6x9x64x64xbf16, #tpu.memory_space<vmem>>, vector<1x1x64x64xbf16>
    %47 = vector.shape_cast %46 : vector<1x1x64x64xbf16> to vector<64x64xbf16>
    %cst_55 = arith.constant dense<0.000000e+00> : vector<64x64xf32>
    %48 = tpu.matmul %45, %47, %cst_55 {dimension_numbers = #tpu.dot_dimension_numbers<[1], [0], [0], [1], [0, 0, 1, 1], [], []>} : vector<64x64xbf16>, vector<64x64xbf16>, vector<64x64xf32> -> vector<64x64xf32>
    %49 = arith.addf %42, %48 : vector<64x64xf32>
    %c2_56 = arith.constant 2 : index
    %c2_57 = arith.constant 2 : index
    %c0_58 = arith.constant 0 : index
    %50 = vector.load %arg14[%c2_56, %c2_57, %c0_58] : memref<12x12x64xf32, #tpu.memory_space<vmem>>, vector<8x8x64xf32>
    %51 = vector.shape_cast %50 : vector<8x8x64xf32> to vector<64x64xf32>
    %52 = arith.truncf %51 : vector<64x64xf32> to vector<64x64xbf16>
    %c0_59 = arith.constant 0 : index
    %c4 = arith.constant 4 : index
    %c0_60 = arith.constant 0 : index
    %c0_61 = arith.constant 0 : index
    %53 = vector.load %arg7[%c0_59, %c4, %c0_60, %c0_61] : memref<6x9x64x64xbf16, #tpu.memory_space<vmem>>, vector<1x1x64x64xbf16>
    %54 = vector.shape_cast %53 : vector<1x1x64x64xbf16> to vector<64x64xbf16>
    %cst_62 = arith.constant dense<0.000000e+00> : vector<64x64xf32>
    %55 = tpu.matmul %52, %54, %cst_62 {dimension_numbers = #tpu.dot_dimension_numbers<[1], [0], [0], [1], [0, 0, 1, 1], [], []>} : vector<64x64xbf16>, vector<64x64xbf16>, vector<64x64xf32> -> vector<64x64xf32>
    %56 = arith.addf %49, %55 : vector<64x64xf32>
    %c2_63 = arith.constant 2 : index
    %c3_64 = arith.constant 3 : index
    %c0_65 = arith.constant 0 : index
    %57 = vector.load %arg14[%c2_63, %c3_64, %c0_65] : memref<12x12x64xf32, #tpu.memory_space<vmem>>, vector<8x8x64xf32>
    %58 = vector.shape_cast %57 : vector<8x8x64xf32> to vector<64x64xf32>
    %59 = arith.truncf %58 : vector<64x64xf32> to vector<64x64xbf16>
    %c0_66 = arith.constant 0 : index
    %c5 = arith.constant 5 : index
    %c0_67 = arith.constant 0 : index
    %c0_68 = arith.constant 0 : index
    %60 = vector.load %arg7[%c0_66, %c5, %c0_67, %c0_68] : memref<6x9x64x64xbf16, #tpu.memory_space<vmem>>, vector<1x1x64x64xbf16>
    %61 = vector.shape_cast %60 : vector<1x1x64x64xbf16> to vector<64x64xbf16>
    %cst_69 = arith.constant dense<0.000000e+00> : vector<64x64xf32>
    %62 = tpu.matmul %59, %61, %cst_69 {dimension_numbers = #tpu.dot_dimension_numbers<[1], [0], [0], [1], [0, 0, 1, 1], [], []>} : vector<64x64xbf16>, vector<64x64xbf16>, vector<64x64xf32> -> vector<64x64xf32>
    %63 = arith.addf %56, %62 : vector<64x64xf32>
    %c3_70 = arith.constant 3 : index
    %c1_71 = arith.constant 1 : index
    %c0_72 = arith.constant 0 : index
    %64 = vector.load %arg14[%c3_70, %c1_71, %c0_72] : memref<12x12x64xf32, #tpu.memory_space<vmem>>, vector<8x8x64xf32>
    %65 = vector.shape_cast %64 : vector<8x8x64xf32> to vector<64x64xf32>
    %66 = arith.truncf %65 : vector<64x64xf32> to vector<64x64xbf16>
    %c0_73 = arith.constant 0 : index
    %c6 = arith.constant 6 : index
    %c0_74 = arith.constant 0 : index
    %c0_75 = arith.constant 0 : index
    %67 = vector.load %arg7[%c0_73, %c6, %c0_74, %c0_75] : memref<6x9x64x64xbf16, #tpu.memory_space<vmem>>, vector<1x1x64x64xbf16>
    %68 = vector.shape_cast %67 : vector<1x1x64x64xbf16> to vector<64x64xbf16>
    %cst_76 = arith.constant dense<0.000000e+00> : vector<64x64xf32>
    %69 = tpu.matmul %66, %68, %cst_76 {dimension_numbers = #tpu.dot_dimension_numbers<[1], [0], [0], [1], [0, 0, 1, 1], [], []>} : vector<64x64xbf16>, vector<64x64xbf16>, vector<64x64xf32> -> vector<64x64xf32>
    %70 = arith.addf %63, %69 : vector<64x64xf32>
    %c3_77 = arith.constant 3 : index
    %c2_78 = arith.constant 2 : index
    %c0_79 = arith.constant 0 : index
    %71 = vector.load %arg14[%c3_77, %c2_78, %c0_79] : memref<12x12x64xf32, #tpu.memory_space<vmem>>, vector<8x8x64xf32>
    %72 = vector.shape_cast %71 : vector<8x8x64xf32> to vector<64x64xf32>
    %73 = arith.truncf %72 : vector<64x64xf32> to vector<64x64xbf16>
    %c0_80 = arith.constant 0 : index
    %c7 = arith.constant 7 : index
    %c0_81 = arith.constant 0 : index
    %c0_82 = arith.constant 0 : index
    %74 = vector.load %arg7[%c0_80, %c7, %c0_81, %c0_82] : memref<6x9x64x64xbf16, #tpu.memory_space<vmem>>, vector<1x1x64x64xbf16>
    %75 = vector.shape_cast %74 : vector<1x1x64x64xbf16> to vector<64x64xbf16>
    %cst_83 = arith.constant dense<0.000000e+00> : vector<64x64xf32>
    %76 = tpu.matmul %73, %75, %cst_83 {dimension_numbers = #tpu.dot_dimension_numbers<[1], [0], [0], [1], [0, 0, 1, 1], [], []>} : vector<64x64xbf16>, vector<64x64xbf16>, vector<64x64xf32> -> vector<64x64xf32>
    %77 = arith.addf %70, %76 : vector<64x64xf32>
    %c3_84 = arith.constant 3 : index
    %c3_85 = arith.constant 3 : index
    %c0_86 = arith.constant 0 : index
    %78 = vector.load %arg14[%c3_84, %c3_85, %c0_86] : memref<12x12x64xf32, #tpu.memory_space<vmem>>, vector<8x8x64xf32>
    %79 = vector.shape_cast %78 : vector<8x8x64xf32> to vector<64x64xf32>
    %80 = arith.truncf %79 : vector<64x64xf32> to vector<64x64xbf16>
    %c0_87 = arith.constant 0 : index
    %c8 = arith.constant 8 : index
    %c0_88 = arith.constant 0 : index
    %c0_89 = arith.constant 0 : index
    %81 = vector.load %arg7[%c0_87, %c8, %c0_88, %c0_89] : memref<6x9x64x64xbf16, #tpu.memory_space<vmem>>, vector<1x1x64x64xbf16>
    %82 = vector.shape_cast %81 : vector<1x1x64x64xbf16> to vector<64x64xbf16>
    %cst_90 = arith.constant dense<0.000000e+00> : vector<64x64xf32>
    %83 = tpu.matmul %80, %82, %cst_90 {dimension_numbers = #tpu.dot_dimension_numbers<[1], [0], [0], [1], [0, 0, 1, 1], [], []>} : vector<64x64xbf16>, vector<64x64xbf16>, vector<64x64xf32> -> vector<64x64xf32>
    %84 = arith.addf %77, %83 : vector<64x64xf32>
    %c0_91 = arith.constant 0 : index
    %c0_92 = arith.constant 0 : index
    %85 = vector.load %arg8[%c0_91, %c0_92] : memref<6x64xf32, #tpu.memory_space<vmem>>, vector<1x64xf32>
    %86 = vector.broadcast %85 : vector<1x64xf32> to vector<64x64xf32>
    %87 = arith.addf %84, %86 : vector<64x64xf32>
    %cst_93 = arith.constant 0.000000e+00 : f32
    %88 = vector.broadcast %cst_93 : f32 to vector<64x64xf32>
    %89 = arith.maximumf %87, %88 : vector<64x64xf32>
    %90 = vector.shape_cast %89 : vector<64x64xf32> to vector<8x8x64xf32>
    %c2_94 = arith.constant 2 : index
    %c2_95 = arith.constant 2 : index
    %c0_96 = arith.constant 0 : index
    %91 = vector.load %arg15[%c2_94, %c2_95, %c0_96] : memref<12x12x64xf32, #tpu.memory_space<vmem>>, vector<8x8x64xf32>
    tpu.vector_store %arg15[%c2_94, %c2_95, %c0_96], %90 {strides = array<i32>} : memref<12x12x64xf32, #tpu.memory_space<vmem>>, vector<8x8x64xf32>,
    %c1_97 = arith.constant 1 : index
    %c1_98 = arith.constant 1 : index
    %c0_99 = arith.constant 0 : index
    %92 = vector.load %arg15[%c1_97, %c1_98, %c0_99] : memref<12x12x64xf32, #tpu.memory_space<vmem>>, vector<8x8x64xf32>
    %93 = vector.shape_cast %92 : vector<8x8x64xf32> to vector<64x64xf32>
    %94 = arith.truncf %93 : vector<64x64xf32> to vector<64x64xbf16>
    %c1_100 = arith.constant 1 : index
    %c0_101 = arith.constant 0 : index
    %c0_102 = arith.constant 0 : index
    %c0_103 = arith.constant 0 : index
    %95 = vector.load %arg7[%c1_100, %c0_101, %c0_102, %c0_103] : memref<6x9x64x64xbf16, #tpu.memory_space<vmem>>, vector<1x1x64x64xbf16>
    %96 = vector.shape_cast %95 : vector<1x1x64x64xbf16> to vector<64x64xbf16>
    %cst_104 = arith.constant dense<0.000000e+00> : vector<64x64xf32>
    %97 = tpu.matmul %94, %96, %cst_104 {dimension_numbers = #tpu.dot_dimension_numbers<[1], [0], [0], [1], [0, 0, 1, 1], [], []>} : vector<64x64xbf16>, vector<64x64xbf16>, vector<64x64xf32> -> vector<64x64xf32>
    %c1_105 = arith.constant 1 : index
    %c2_106 = arith.constant 2 : index
    %c0_107 = arith.constant 0 : index
    %98 = vector.load %arg15[%c1_105, %c2_106, %c0_107] : memref<12x12x64xf32, #tpu.memory_space<vmem>>, vector<8x8x64xf32>
    %99 = vector.shape_cast %98 : vector<8x8x64xf32> to vector<64x64xf32>
    %100 = arith.truncf %99 : vector<64x64xf32> to vector<64x64xbf16>
    %c1_108 = arith.constant 1 : index
    %c1_109 = arith.constant 1 : index
    %c0_110 = arith.constant 0 : index
    %c0_111 = arith.constant 0 : index
    %101 = vector.load %arg7[%c1_108, %c1_109, %c0_110, %c0_111] : memref<6x9x64x64xbf16, #tpu.memory_space<vmem>>, vector<1x1x64x64xbf16>
    %102 = vector.shape_cast %101 : vector<1x1x64x64xbf16> to vector<64x64xbf16>
    %cst_112 = arith.constant dense<0.000000e+00> : vector<64x64xf32>
    %103 = tpu.matmul %100, %102, %cst_112 {dimension_numbers = #tpu.dot_dimension_numbers<[1], [0], [0], [1], [0, 0, 1, 1], [], []>} : vector<64x64xbf16>, vector<64x64xbf16>, vector<64x64xf32> -> vector<64x64xf32>
    %104 = arith.addf %97, %103 : vector<64x64xf32>
    %c1_113 = arith.constant 1 : index
    %c3_114 = arith.constant 3 : index
    %c0_115 = arith.constant 0 : index
    %105 = vector.load %arg15[%c1_113, %c3_114, %c0_115] : memref<12x12x64xf32, #tpu.memory_space<vmem>>, vector<8x8x64xf32>
    %106 = vector.shape_cast %105 : vector<8x8x64xf32> to vector<64x64xf32>
    %107 = arith.truncf %106 : vector<64x64xf32> to vector<64x64xbf16>
    %c1_116 = arith.constant 1 : index
    %c2_117 = arith.constant 2 : index
    %c0_118 = arith.constant 0 : index
    %c0_119 = arith.constant 0 : index
    %108 = vector.load %arg7[%c1_116, %c2_117, %c0_118, %c0_119] : memref<6x9x64x64xbf16, #tpu.memory_space<vmem>>, vector<1x1x64x64xbf16>
    %109 = vector.shape_cast %108 : vector<1x1x64x64xbf16> to vector<64x64xbf16>
    %cst_120 = arith.constant dense<0.000000e+00> : vector<64x64xf32>
    %110 = tpu.matmul %107, %109, %cst_120 {dimension_numbers = #tpu.dot_dimension_numbers<[1], [0], [0], [1], [0, 0, 1, 1], [], []>} : vector<64x64xbf16>, vector<64x64xbf16>, vector<64x64xf32> -> vector<64x64xf32>
    %111 = arith.addf %104, %110 : vector<64x64xf32>
    %c2_121 = arith.constant 2 : index
    %c1_122 = arith.constant 1 : index
    %c0_123 = arith.constant 0 : index
    %112 = vector.load %arg15[%c2_121, %c1_122, %c0_123] : memref<12x12x64xf32, #tpu.memory_space<vmem>>, vector<8x8x64xf32>
    %113 = vector.shape_cast %112 : vector<8x8x64xf32> to vector<64x64xf32>
    %114 = arith.truncf %113 : vector<64x64xf32> to vector<64x64xbf16>
    %c1_124 = arith.constant 1 : index
    %c3_125 = arith.constant 3 : index
    %c0_126 = arith.constant 0 : index
    %c0_127 = arith.constant 0 : index
    %115 = vector.load %arg7[%c1_124, %c3_125, %c0_126, %c0_127] : memref<6x9x64x64xbf16, #tpu.memory_space<vmem>>, vector<1x1x64x64xbf16>
    %116 = vector.shape_cast %115 : vector<1x1x64x64xbf16> to vector<64x64xbf16>
    %cst_128 = arith.constant dense<0.000000e+00> : vector<64x64xf32>
    %117 = tpu.matmul %114, %116, %cst_128 {dimension_numbers = #tpu.dot_dimension_numbers<[1], [0], [0], [1], [0, 0, 1, 1], [], []>} : vector<64x64xbf16>, vector<64x64xbf16>, vector<64x64xf32> -> vector<64x64xf32>
    %118 = arith.addf %111, %117 : vector<64x64xf32>
    %c2_129 = arith.constant 2 : index
    %c2_130 = arith.constant 2 : index
    %c0_131 = arith.constant 0 : index
    %119 = vector.load %arg15[%c2_129, %c2_130, %c0_131] : memref<12x12x64xf32, #tpu.memory_space<vmem>>, vector<8x8x64xf32>
    %120 = vector.shape_cast %119 : vector<8x8x64xf32> to vector<64x64xf32>
    %121 = arith.truncf %120 : vector<64x64xf32> to vector<64x64xbf16>
    %c1_132 = arith.constant 1 : index
    %c4_133 = arith.constant 4 : index
    %c0_134 = arith.constant 0 : index
    %c0_135 = arith.constant 0 : index
    %122 = vector.load %arg7[%c1_132, %c4_133, %c0_134, %c0_135] : memref<6x9x64x64xbf16, #tpu.memory_space<vmem>>, vector<1x1x64x64xbf16>
    %123 = vector.shape_cast %122 : vector<1x1x64x64xbf16> to vector<64x64xbf16>
    %cst_136 = arith.constant dense<0.000000e+00> : vector<64x64xf32>
    %124 = tpu.matmul %121, %123, %cst_136 {dimension_numbers = #tpu.dot_dimension_numbers<[1], [0], [0], [1], [0, 0, 1, 1], [], []>} : vector<64x64xbf16>, vector<64x64xbf16>, vector<64x64xf32> -> vector<64x64xf32>
    %125 = arith.addf %118, %124 : vector<64x64xf32>
    %c2_137 = arith.constant 2 : index
    %c3_138 = arith.constant 3 : index
    %c0_139 = arith.constant 0 : index
    %126 = vector.load %arg15[%c2_137, %c3_138, %c0_139] : memref<12x12x64xf32, #tpu.memory_space<vmem>>, vector<8x8x64xf32>
    %127 = vector.shape_cast %126 : vector<8x8x64xf32> to vector<64x64xf32>
    %128 = arith.truncf %127 : vector<64x64xf32> to vector<64x64xbf16>
    %c1_140 = arith.constant 1 : index
    %c5_141 = arith.constant 5 : index
    %c0_142 = arith.constant 0 : index
    %c0_143 = arith.constant 0 : index
    %129 = vector.load %arg7[%c1_140, %c5_141, %c0_142, %c0_143] : memref<6x9x64x64xbf16, #tpu.memory_space<vmem>>, vector<1x1x64x64xbf16>
    %130 = vector.shape_cast %129 : vector<1x1x64x64xbf16> to vector<64x64xbf16>
    %cst_144 = arith.constant dense<0.000000e+00> : vector<64x64xf32>
    %131 = tpu.matmul %128, %130, %cst_144 {dimension_numbers = #tpu.dot_dimension_numbers<[1], [0], [0], [1], [0, 0, 1, 1], [], []>} : vector<64x64xbf16>, vector<64x64xbf16>, vector<64x64xf32> -> vector<64x64xf32>
    %132 = arith.addf %125, %131 : vector<64x64xf32>
    %c3_145 = arith.constant 3 : index
    %c1_146 = arith.constant 1 : index
    %c0_147 = arith.constant 0 : index
    %133 = vector.load %arg15[%c3_145, %c1_146, %c0_147] : memref<12x12x64xf32, #tpu.memory_space<vmem>>, vector<8x8x64xf32>
    %134 = vector.shape_cast %133 : vector<8x8x64xf32> to vector<64x64xf32>
    %135 = arith.truncf %134 : vector<64x64xf32> to vector<64x64xbf16>
    %c1_148 = arith.constant 1 : index
    %c6_149 = arith.constant 6 : index
    %c0_150 = arith.constant 0 : index
    %c0_151 = arith.constant 0 : index
    %136 = vector.load %arg7[%c1_148, %c6_149, %c0_150, %c0_151] : memref<6x9x64x64xbf16, #tpu.memory_space<vmem>>, vector<1x1x64x64xbf16>
    %137 = vector.shape_cast %136 : vector<1x1x64x64xbf16> to vector<64x64xbf16>
    %cst_152 = arith.constant dense<0.000000e+00> : vector<64x64xf32>
    %138 = tpu.matmul %135, %137, %cst_152 {dimension_numbers = #tpu.dot_dimension_numbers<[1], [0], [0], [1], [0, 0, 1, 1], [], []>} : vector<64x64xbf16>, vector<64x64xbf16>, vector<64x64xf32> -> vector<64x64xf32>
    %139 = arith.addf %132, %138 : vector<64x64xf32>
    %c3_153 = arith.constant 3 : index
    %c2_154 = arith.constant 2 : index
    %c0_155 = arith.constant 0 : index
    %140 = vector.load %arg15[%c3_153, %c2_154, %c0_155] : memref<12x12x64xf32, #tpu.memory_space<vmem>>, vector<8x8x64xf32>
    %141 = vector.shape_cast %140 : vector<8x8x64xf32> to vector<64x64xf32>
    %142 = arith.truncf %141 : vector<64x64xf32> to vector<64x64xbf16>
    %c1_156 = arith.constant 1 : index
    %c7_157 = arith.constant 7 : index
    %c0_158 = arith.constant 0 : index
    %c0_159 = arith.constant 0 : index
    %143 = vector.load %arg7[%c1_156, %c7_157, %c0_158, %c0_159] : memref<6x9x64x64xbf16, #tpu.memory_space<vmem>>, vector<1x1x64x64xbf16>
    %144 = vector.shape_cast %143 : vector<1x1x64x64xbf16> to vector<64x64xbf16>
    %cst_160 = arith.constant dense<0.000000e+00> : vector<64x64xf32>
    %145 = tpu.matmul %142, %144, %cst_160 {dimension_numbers = #tpu.dot_dimension_numbers<[1], [0], [0], [1], [0, 0, 1, 1], [], []>} : vector<64x64xbf16>, vector<64x64xbf16>, vector<64x64xf32> -> vector<64x64xf32>
    %146 = arith.addf %139, %145 : vector<64x64xf32>
    %c3_161 = arith.constant 3 : index
    %c3_162 = arith.constant 3 : index
    %c0_163 = arith.constant 0 : index
    %147 = vector.load %arg15[%c3_161, %c3_162, %c0_163] : memref<12x12x64xf32, #tpu.memory_space<vmem>>, vector<8x8x64xf32>
    %148 = vector.shape_cast %147 : vector<8x8x64xf32> to vector<64x64xf32>
    %149 = arith.truncf %148 : vector<64x64xf32> to vector<64x64xbf16>
    %c1_164 = arith.constant 1 : index
    %c8_165 = arith.constant 8 : index
    %c0_166 = arith.constant 0 : index
    %c0_167 = arith.constant 0 : index
    %150 = vector.load %arg7[%c1_164, %c8_165, %c0_166, %c0_167] : memref<6x9x64x64xbf16, #tpu.memory_space<vmem>>, vector<1x1x64x64xbf16>
    %151 = vector.shape_cast %150 : vector<1x1x64x64xbf16> to vector<64x64xbf16>
    %cst_168 = arith.constant dense<0.000000e+00> : vector<64x64xf32>
    %152 = tpu.matmul %149, %151, %cst_168 {dimension_numbers = #tpu.dot_dimension_numbers<[1], [0], [0], [1], [0, 0, 1, 1], [], []>} : vector<64x64xbf16>, vector<64x64xbf16>, vector<64x64xf32> -> vector<64x64xf32>
    %153 = arith.addf %146, %152 : vector<64x64xf32>
    %c1_169 = arith.constant 1 : index
    %c0_170 = arith.constant 0 : index
    %154 = vector.load %arg8[%c1_169, %c0_170] : memref<6x64xf32, #tpu.memory_space<vmem>>, vector<1x64xf32>
    %155 = vector.broadcast %154 : vector<1x64xf32> to vector<64x64xf32>
    %156 = arith.addf %153, %155 : vector<64x64xf32>
    %157 = arith.addf %156, %20 : vector<64x64xf32>
    %cst_171 = arith.constant 0.000000e+00 : f32
    %158 = vector.broadcast %cst_171 : f32 to vector<64x64xf32>
    %159 = arith.maximumf %157, %158 : vector<64x64xf32>
    %160 = vector.shape_cast %159 : vector<64x64xf32> to vector<8x8x64xf32>
    %c2_172 = arith.constant 2 : index
    %c2_173 = arith.constant 2 : index
    %c0_174 = arith.constant 0 : index
    %161 = vector.load %arg14[%c2_172, %c2_173, %c0_174] : memref<12x12x64xf32, #tpu.memory_space<vmem>>, vector<8x8x64xf32>
    tpu.vector_store %arg14[%c2_172, %c2_173, %c0_174], %160 {strides = array<i32>} : memref<12x12x64xf32, #tpu.memory_space<vmem>>, vector<8x8x64xf32>,
    %c0_175 = arith.constant 0 : index
    %c0_176 = arith.constant 0 : index
    %c0_177 = arith.constant 0 : index
    %162 = vector.load %arg14[%c0_175, %c0_176, %c0_177] : memref<12x12x64xf32, #tpu.memory_space<vmem>>, vector<8x8x64xf32>
    %163 = vector.shape_cast %162 : vector<8x8x64xf32> to vector<64x64xf32>
    %164 = arith.truncf %163 : vector<64x64xf32> to vector<64x64xbf16>
    %c2_178 = arith.constant 2 : index
    %c0_179 = arith.constant 0 : index
    %c0_180 = arith.constant 0 : index
    %c0_181 = arith.constant 0 : index
    %165 = vector.load %arg7[%c2_178, %c0_179, %c0_180, %c0_181] : memref<6x9x64x64xbf16, #tpu.memory_space<vmem>>, vector<1x1x64x64xbf16>
    %166 = vector.shape_cast %165 : vector<1x1x64x64xbf16> to vector<64x64xbf16>
    %cst_182 = arith.constant dense<0.000000e+00> : vector<64x64xf32>
    %167 = tpu.matmul %164, %166, %cst_182 {dimension_numbers = #tpu.dot_dimension_numbers<[1], [0], [0], [1], [0, 0, 1, 1], [], []>} : vector<64x64xbf16>, vector<64x64xbf16>, vector<64x64xf32> -> vector<64x64xf32>
    %c0_183 = arith.constant 0 : index
    %c2_184 = arith.constant 2 : index
    %c0_185 = arith.constant 0 : index
    %168 = vector.load %arg14[%c0_183, %c2_184, %c0_185] : memref<12x12x64xf32, #tpu.memory_space<vmem>>, vector<8x8x64xf32>
    %169 = vector.shape_cast %168 : vector<8x8x64xf32> to vector<64x64xf32>
    %170 = arith.truncf %169 : vector<64x64xf32> to vector<64x64xbf16>
    %c2_186 = arith.constant 2 : index
    %c1_187 = arith.constant 1 : index
    %c0_188 = arith.constant 0 : index
    %c0_189 = arith.constant 0 : index
    %171 = vector.load %arg7[%c2_186, %c1_187, %c0_188, %c0_189] : memref<6x9x64x64xbf16, #tpu.memory_space<vmem>>, vector<1x1x64x64xbf16>
    %172 = vector.shape_cast %171 : vector<1x1x64x64xbf16> to vector<64x64xbf16>
    %cst_190 = arith.constant dense<0.000000e+00> : vector<64x64xf32>
    %173 = tpu.matmul %170, %172, %cst_190 {dimension_numbers = #tpu.dot_dimension_numbers<[1], [0], [0], [1], [0, 0, 1, 1], [], []>} : vector<64x64xbf16>, vector<64x64xbf16>, vector<64x64xf32> -> vector<64x64xf32>
    %174 = arith.addf %167, %173 : vector<64x64xf32>
    %c0_191 = arith.constant 0 : index
    %c4_192 = arith.constant 4 : index
    %c0_193 = arith.constant 0 : index
    %175 = vector.load %arg14[%c0_191, %c4_192, %c0_193] : memref<12x12x64xf32, #tpu.memory_space<vmem>>, vector<8x8x64xf32>
    %176 = vector.shape_cast %175 : vector<8x8x64xf32> to vector<64x64xf32>
    %177 = arith.truncf %176 : vector<64x64xf32> to vector<64x64xbf16>
    %c2_194 = arith.constant 2 : index
    %c2_195 = arith.constant 2 : index
    %c0_196 = arith.constant 0 : index
    %c0_197 = arith.constant 0 : index
    %178 = vector.load %arg7[%c2_194, %c2_195, %c0_196, %c0_197] : memref<6x9x64x64xbf16, #tpu.memory_space<vmem>>, vector<1x1x64x64xbf16>
    %179 = vector.shape_cast %178 : vector<1x1x64x64xbf16> to vector<64x64xbf16>
    %cst_198 = arith.constant dense<0.000000e+00> : vector<64x64xf32>
    %180 = tpu.matmul %177, %179, %cst_198 {dimension_numbers = #tpu.dot_dimension_numbers<[1], [0], [0], [1], [0, 0, 1, 1], [], []>} : vector<64x64xbf16>, vector<64x64xbf16>, vector<64x64xf32> -> vector<64x64xf32>
    %181 = arith.addf %174, %180 : vector<64x64xf32>
    %c2_199 = arith.constant 2 : index
    %c0_200 = arith.constant 0 : index
    %c0_201 = arith.constant 0 : index
    %182 = vector.load %arg14[%c2_199, %c0_200, %c0_201] : memref<12x12x64xf32, #tpu.memory_space<vmem>>, vector<8x8x64xf32>
    %183 = vector.shape_cast %182 : vector<8x8x64xf32> to vector<64x64xf32>
    %184 = arith.truncf %183 : vector<64x64xf32> to vector<64x64xbf16>
    %c2_202 = arith.constant 2 : index
    %c3_203 = arith.constant 3 : index
    %c0_204 = arith.constant 0 : index
    %c0_205 = arith.constant 0 : index
    %185 = vector.load %arg7[%c2_202, %c3_203, %c0_204, %c0_205] : memref<6x9x64x64xbf16, #tpu.memory_space<vmem>>, vector<1x1x64x64xbf16>
    %186 = vector.shape_cast %185 : vector<1x1x64x64xbf16> to vector<64x64xbf16>
    %cst_206 = arith.constant dense<0.000000e+00> : vector<64x64xf32>
    %187 = tpu.matmul %184, %186, %cst_206 {dimension_numbers = #tpu.dot_dimension_numbers<[1], [0], [0], [1], [0, 0, 1, 1], [], []>} : vector<64x64xbf16>, vector<64x64xbf16>, vector<64x64xf32> -> vector<64x64xf32>
    %188 = arith.addf %181, %187 : vector<64x64xf32>
    %c2_207 = arith.constant 2 : index
    %c2_208 = arith.constant 2 : index
    %c0_209 = arith.constant 0 : index
    %189 = vector.load %arg14[%c2_207, %c2_208, %c0_209] : memref<12x12x64xf32, #tpu.memory_space<vmem>>, vector<8x8x64xf32>
    %190 = vector.shape_cast %189 : vector<8x8x64xf32> to vector<64x64xf32>
    %191 = arith.truncf %190 : vector<64x64xf32> to vector<64x64xbf16>
    %c2_210 = arith.constant 2 : index
    %c4_211 = arith.constant 4 : index
    %c0_212 = arith.constant 0 : index
    %c0_213 = arith.constant 0 : index
    %192 = vector.load %arg7[%c2_210, %c4_211, %c0_212, %c0_213] : memref<6x9x64x64xbf16, #tpu.memory_space<vmem>>, vector<1x1x64x64xbf16>
    %193 = vector.shape_cast %192 : vector<1x1x64x64xbf16> to vector<64x64xbf16>
    %cst_214 = arith.constant dense<0.000000e+00> : vector<64x64xf32>
    %194 = tpu.matmul %191, %193, %cst_214 {dimension_numbers = #tpu.dot_dimension_numbers<[1], [0], [0], [1], [0, 0, 1, 1], [], []>} : vector<64x64xbf16>, vector<64x64xbf16>, vector<64x64xf32> -> vector<64x64xf32>
    %195 = arith.addf %188, %194 : vector<64x64xf32>
    %c2_215 = arith.constant 2 : index
    %c4_216 = arith.constant 4 : index
    %c0_217 = arith.constant 0 : index
    %196 = vector.load %arg14[%c2_215, %c4_216, %c0_217] : memref<12x12x64xf32, #tpu.memory_space<vmem>>, vector<8x8x64xf32>
    %197 = vector.shape_cast %196 : vector<8x8x64xf32> to vector<64x64xf32>
    %198 = arith.truncf %197 : vector<64x64xf32> to vector<64x64xbf16>
    %c2_218 = arith.constant 2 : index
    %c5_219 = arith.constant 5 : index
    %c0_220 = arith.constant 0 : index
    %c0_221 = arith.constant 0 : index
    %199 = vector.load %arg7[%c2_218, %c5_219, %c0_220, %c0_221] : memref<6x9x64x64xbf16, #tpu.memory_space<vmem>>, vector<1x1x64x64xbf16>
    %200 = vector.shape_cast %199 : vector<1x1x64x64xbf16> to vector<64x64xbf16>
    %cst_222 = arith.constant dense<0.000000e+00> : vector<64x64xf32>
    %201 = tpu.matmul %198, %200, %cst_222 {dimension_numbers = #tpu.dot_dimension_numbers<[1], [0], [0], [1], [0, 0, 1, 1], [], []>} : vector<64x64xbf16>, vector<64x64xbf16>, vector<64x64xf32> -> vector<64x64xf32>
    %202 = arith.addf %195, %201 : vector<64x64xf32>
    %c4_223 = arith.constant 4 : index
    %c0_224 = arith.constant 0 : index
    %c0_225 = arith.constant 0 : index
    %203 = vector.load %arg14[%c4_223, %c0_224, %c0_225] : memref<12x12x64xf32, #tpu.memory_space<vmem>>, vector<8x8x64xf32>
    %204 = vector.shape_cast %203 : vector<8x8x64xf32> to vector<64x64xf32>
    %205 = arith.truncf %204 : vector<64x64xf32> to vector<64x64xbf16>
    %c2_226 = arith.constant 2 : index
    %c6_227 = arith.constant 6 : index
    %c0_228 = arith.constant 0 : index
    %c0_229 = arith.constant 0 : index
    %206 = vector.load %arg7[%c2_226, %c6_227, %c0_228, %c0_229] : memref<6x9x64x64xbf16, #tpu.memory_space<vmem>>, vector<1x1x64x64xbf16>
    %207 = vector.shape_cast %206 : vector<1x1x64x64xbf16> to vector<64x64xbf16>
    %cst_230 = arith.constant dense<0.000000e+00> : vector<64x64xf32>
    %208 = tpu.matmul %205, %207, %cst_230 {dimension_numbers = #tpu.dot_dimension_numbers<[1], [0], [0], [1], [0, 0, 1, 1], [], []>} : vector<64x64xbf16>, vector<64x64xbf16>, vector<64x64xf32> -> vector<64x64xf32>
    %209 = arith.addf %202, %208 : vector<64x64xf32>
    %c4_231 = arith.constant 4 : index
    %c2_232 = arith.constant 2 : index
    %c0_233 = arith.constant 0 : index
    %210 = vector.load %arg14[%c4_231, %c2_232, %c0_233] : memref<12x12x64xf32, #tpu.memory_space<vmem>>, vector<8x8x64xf32>
    %211 = vector.shape_cast %210 : vector<8x8x64xf32> to vector<64x64xf32>
    %212 = arith.truncf %211 : vector<64x64xf32> to vector<64x64xbf16>
    %c2_234 = arith.constant 2 : index
    %c7_235 = arith.constant 7 : index
    %c0_236 = arith.constant 0 : index
    %c0_237 = arith.constant 0 : index
    %213 = vector.load %arg7[%c2_234, %c7_235, %c0_236, %c0_237] : memref<6x9x64x64xbf16, #tpu.memory_space<vmem>>, vector<1x1x64x64xbf16>
    %214 = vector.shape_cast %213 : vector<1x1x64x64xbf16> to vector<64x64xbf16>
    %cst_238 = arith.constant dense<0.000000e+00> : vector<64x64xf32>
    %215 = tpu.matmul %212, %214, %cst_238 {dimension_numbers = #tpu.dot_dimension_numbers<[1], [0], [0], [1], [0, 0, 1, 1], [], []>} : vector<64x64xbf16>, vector<64x64xbf16>, vector<64x64xf32> -> vector<64x64xf32>
    %216 = arith.addf %209, %215 : vector<64x64xf32>
    %c4_239 = arith.constant 4 : index
    %c4_240 = arith.constant 4 : index
    %c0_241 = arith.constant 0 : index
    %217 = vector.load %arg14[%c4_239, %c4_240, %c0_241] : memref<12x12x64xf32, #tpu.memory_space<vmem>>, vector<8x8x64xf32>
    %218 = vector.shape_cast %217 : vector<8x8x64xf32> to vector<64x64xf32>
    %219 = arith.truncf %218 : vector<64x64xf32> to vector<64x64xbf16>
    %c2_242 = arith.constant 2 : index
    %c8_243 = arith.constant 8 : index
    %c0_244 = arith.constant 0 : index
    %c0_245 = arith.constant 0 : index
    %220 = vector.load %arg7[%c2_242, %c8_243, %c0_244, %c0_245] : memref<6x9x64x64xbf16, #tpu.memory_space<vmem>>, vector<1x1x64x64xbf16>
    %221 = vector.shape_cast %220 : vector<1x1x64x64xbf16> to vector<64x64xbf16>
    %cst_246 = arith.constant dense<0.000000e+00> : vector<64x64xf32>
    %222 = tpu.matmul %219, %221, %cst_246 {dimension_numbers = #tpu.dot_dimension_numbers<[1], [0], [0], [1], [0, 0, 1, 1], [], []>} : vector<64x64xbf16>, vector<64x64xbf16>, vector<64x64xf32> -> vector<64x64xf32>
    %223 = arith.addf %216, %222 : vector<64x64xf32>
    %c2_247 = arith.constant 2 : index
    %c0_248 = arith.constant 0 : index
    %224 = vector.load %arg8[%c2_247, %c0_248] : memref<6x64xf32, #tpu.memory_space<vmem>>, vector<1x64xf32>
    %225 = vector.broadcast %224 : vector<1x64xf32> to vector<64x64xf32>
    %226 = arith.addf %223, %225 : vector<64x64xf32>
    %cst_249 = arith.constant 0.000000e+00 : f32
    %227 = vector.broadcast %cst_249 : f32 to vector<64x64xf32>
    %228 = arith.maximumf %226, %227 : vector<64x64xf32>
    %229 = vector.shape_cast %228 : vector<64x64xf32> to vector<8x8x64xf32>
    %c2_250 = arith.constant 2 : index
    %c2_251 = arith.constant 2 : index
    %c0_252 = arith.constant 0 : index
    %230 = vector.load %arg15[%c2_250, %c2_251, %c0_252] : memref<12x12x64xf32, #tpu.memory_space<vmem>>, vector<8x8x64xf32>
    tpu.vector_store %arg15[%c2_250, %c2_251, %c0_252], %229 {strides = array<i32>} : memref<12x12x64xf32, #tpu.memory_space<vmem>>, vector<8x8x64xf32>,
    %c0_253 = arith.constant 0 : index
    %c0_254 = arith.constant 0 : index
    %c0_255 = arith.constant 0 : index
    %231 = vector.load %arg15[%c0_253, %c0_254, %c0_255] : memref<12x12x64xf32, #tpu.memory_space<vmem>>, vector<8x8x64xf32>
    %232 = vector.shape_cast %231 : vector<8x8x64xf32> to vector<64x64xf32>
    %233 = arith.truncf %232 : vector<64x64xf32> to vector<64x64xbf16>
    %c3_256 = arith.constant 3 : index
    %c0_257 = arith.constant 0 : index
    %c0_258 = arith.constant 0 : index
    %c0_259 = arith.constant 0 : index
    %234 = vector.load %arg7[%c3_256, %c0_257, %c0_258, %c0_259] : memref<6x9x64x64xbf16, #tpu.memory_space<vmem>>, vector<1x1x64x64xbf16>
    %235 = vector.shape_cast %234 : vector<1x1x64x64xbf16> to vector<64x64xbf16>
    %cst_260 = arith.constant dense<0.000000e+00> : vector<64x64xf32>
    %236 = tpu.matmul %233, %235, %cst_260 {dimension_numbers = #tpu.dot_dimension_numbers<[1], [0], [0], [1], [0, 0, 1, 1], [], []>} : vector<64x64xbf16>, vector<64x64xbf16>, vector<64x64xf32> -> vector<64x64xf32>
    %c0_261 = arith.constant 0 : index
    %c2_262 = arith.constant 2 : index
    %c0_263 = arith.constant 0 : index
    %237 = vector.load %arg15[%c0_261, %c2_262, %c0_263] : memref<12x12x64xf32, #tpu.memory_space<vmem>>, vector<8x8x64xf32>
    %238 = vector.shape_cast %237 : vector<8x8x64xf32> to vector<64x64xf32>
    %239 = arith.truncf %238 : vector<64x64xf32> to vector<64x64xbf16>
    %c3_264 = arith.constant 3 : index
    %c1_265 = arith.constant 1 : index
    %c0_266 = arith.constant 0 : index
    %c0_267 = arith.constant 0 : index
    %240 = vector.load %arg7[%c3_264, %c1_265, %c0_266, %c0_267] : memref<6x9x64x64xbf16, #tpu.memory_space<vmem>>, vector<1x1x64x64xbf16>
    %241 = vector.shape_cast %240 : vector<1x1x64x64xbf16> to vector<64x64xbf16>
    %cst_268 = arith.constant dense<0.000000e+00> : vector<64x64xf32>
    %242 = tpu.matmul %239, %241, %cst_268 {dimension_numbers = #tpu.dot_dimension_numbers<[1], [0], [0], [1], [0, 0, 1, 1], [], []>} : vector<64x64xbf16>, vector<64x64xbf16>, vector<64x64xf32> -> vector<64x64xf32>
    %243 = arith.addf %236, %242 : vector<64x64xf32>
    %c0_269 = arith.constant 0 : index
    %c4_270 = arith.constant 4 : index
    %c0_271 = arith.constant 0 : index
    %244 = vector.load %arg15[%c0_269, %c4_270, %c0_271] : memref<12x12x64xf32, #tpu.memory_space<vmem>>, vector<8x8x64xf32>
    %245 = vector.shape_cast %244 : vector<8x8x64xf32> to vector<64x64xf32>
    %246 = arith.truncf %245 : vector<64x64xf32> to vector<64x64xbf16>
    %c3_272 = arith.constant 3 : index
    %c2_273 = arith.constant 2 : index
    %c0_274 = arith.constant 0 : index
    %c0_275 = arith.constant 0 : index
    %247 = vector.load %arg7[%c3_272, %c2_273, %c0_274, %c0_275] : memref<6x9x64x64xbf16, #tpu.memory_space<vmem>>, vector<1x1x64x64xbf16>
    %248 = vector.shape_cast %247 : vector<1x1x64x64xbf16> to vector<64x64xbf16>
    %cst_276 = arith.constant dense<0.000000e+00> : vector<64x64xf32>
    %249 = tpu.matmul %246, %248, %cst_276 {dimension_numbers = #tpu.dot_dimension_numbers<[1], [0], [0], [1], [0, 0, 1, 1], [], []>} : vector<64x64xbf16>, vector<64x64xbf16>, vector<64x64xf32> -> vector<64x64xf32>
    %250 = arith.addf %243, %249 : vector<64x64xf32>
    %c2_277 = arith.constant 2 : index
    %c0_278 = arith.constant 0 : index
    %c0_279 = arith.constant 0 : index
    %251 = vector.load %arg15[%c2_277, %c0_278, %c0_279] : memref<12x12x64xf32, #tpu.memory_space<vmem>>, vector<8x8x64xf32>
    %252 = vector.shape_cast %251 : vector<8x8x64xf32> to vector<64x64xf32>
    %253 = arith.truncf %252 : vector<64x64xf32> to vector<64x64xbf16>
    %c3_280 = arith.constant 3 : index
    %c3_281 = arith.constant 3 : index
    %c0_282 = arith.constant 0 : index
    %c0_283 = arith.constant 0 : index
    %254 = vector.load %arg7[%c3_280, %c3_281, %c0_282, %c0_283] : memref<6x9x64x64xbf16, #tpu.memory_space<vmem>>, vector<1x1x64x64xbf16>
    %255 = vector.shape_cast %254 : vector<1x1x64x64xbf16> to vector<64x64xbf16>
    %cst_284 = arith.constant dense<0.000000e+00> : vector<64x64xf32>
    %256 = tpu.matmul %253, %255, %cst_284 {dimension_numbers = #tpu.dot_dimension_numbers<[1], [0], [0], [1], [0, 0, 1, 1], [], []>} : vector<64x64xbf16>, vector<64x64xbf16>, vector<64x64xf32> -> vector<64x64xf32>
    %257 = arith.addf %250, %256 : vector<64x64xf32>
    %c2_285 = arith.constant 2 : index
    %c2_286 = arith.constant 2 : index
    %c0_287 = arith.constant 0 : index
    %258 = vector.load %arg15[%c2_285, %c2_286, %c0_287] : memref<12x12x64xf32, #tpu.memory_space<vmem>>, vector<8x8x64xf32>
    %259 = vector.shape_cast %258 : vector<8x8x64xf32> to vector<64x64xf32>
    %260 = arith.truncf %259 : vector<64x64xf32> to vector<64x64xbf16>
    %c3_288 = arith.constant 3 : index
    %c4_289 = arith.constant 4 : index
    %c0_290 = arith.constant 0 : index
    %c0_291 = arith.constant 0 : index
    %261 = vector.load %arg7[%c3_288, %c4_289, %c0_290, %c0_291] : memref<6x9x64x64xbf16, #tpu.memory_space<vmem>>, vector<1x1x64x64xbf16>
    %262 = vector.shape_cast %261 : vector<1x1x64x64xbf16> to vector<64x64xbf16>
    %cst_292 = arith.constant dense<0.000000e+00> : vector<64x64xf32>
    %263 = tpu.matmul %260, %262, %cst_292 {dimension_numbers = #tpu.dot_dimension_numbers<[1], [0], [0], [1], [0, 0, 1, 1], [], []>} : vector<64x64xbf16>, vector<64x64xbf16>, vector<64x64xf32> -> vector<64x64xf32>
    %264 = arith.addf %257, %263 : vector<64x64xf32>
    %c2_293 = arith.constant 2 : index
    %c4_294 = arith.constant 4 : index
    %c0_295 = arith.constant 0 : index
    %265 = vector.load %arg15[%c2_293, %c4_294, %c0_295] : memref<12x12x64xf32, #tpu.memory_space<vmem>>, vector<8x8x64xf32>
    %266 = vector.shape_cast %265 : vector<8x8x64xf32> to vector<64x64xf32>
    %267 = arith.truncf %266 : vector<64x64xf32> to vector<64x64xbf16>
    %c3_296 = arith.constant 3 : index
    %c5_297 = arith.constant 5 : index
    %c0_298 = arith.constant 0 : index
    %c0_299 = arith.constant 0 : index
    %268 = vector.load %arg7[%c3_296, %c5_297, %c0_298, %c0_299] : memref<6x9x64x64xbf16, #tpu.memory_space<vmem>>, vector<1x1x64x64xbf16>
    %269 = vector.shape_cast %268 : vector<1x1x64x64xbf16> to vector<64x64xbf16>
    %cst_300 = arith.constant dense<0.000000e+00> : vector<64x64xf32>
    %270 = tpu.matmul %267, %269, %cst_300 {dimension_numbers = #tpu.dot_dimension_numbers<[1], [0], [0], [1], [0, 0, 1, 1], [], []>} : vector<64x64xbf16>, vector<64x64xbf16>, vector<64x64xf32> -> vector<64x64xf32>
    %271 = arith.addf %264, %270 : vector<64x64xf32>
    %c4_301 = arith.constant 4 : index
    %c0_302 = arith.constant 0 : index
    %c0_303 = arith.constant 0 : index
    %272 = vector.load %arg15[%c4_301, %c0_302, %c0_303] : memref<12x12x64xf32, #tpu.memory_space<vmem>>, vector<8x8x64xf32>
    %273 = vector.shape_cast %272 : vector<8x8x64xf32> to vector<64x64xf32>
    %274 = arith.truncf %273 : vector<64x64xf32> to vector<64x64xbf16>
    %c3_304 = arith.constant 3 : index
    %c6_305 = arith.constant 6 : index
    %c0_306 = arith.constant 0 : index
    %c0_307 = arith.constant 0 : index
    %275 = vector.load %arg7[%c3_304, %c6_305, %c0_306, %c0_307] : memref<6x9x64x64xbf16, #tpu.memory_space<vmem>>, vector<1x1x64x64xbf16>
    %276 = vector.shape_cast %275 : vector<1x1x64x64xbf16> to vector<64x64xbf16>
    %cst_308 = arith.constant dense<0.000000e+00> : vector<64x64xf32>
    %277 = tpu.matmul %274, %276, %cst_308 {dimension_numbers = #tpu.dot_dimension_numbers<[1], [0], [0], [1], [0, 0, 1, 1], [], []>} : vector<64x64xbf16>, vector<64x64xbf16>, vector<64x64xf32> -> vector<64x64xf32>
    %278 = arith.addf %271, %277 : vector<64x64xf32>
    %c4_309 = arith.constant 4 : index
    %c2_310 = arith.constant 2 : index
    %c0_311 = arith.constant 0 : index
    %279 = vector.load %arg15[%c4_309, %c2_310, %c0_311] : memref<12x12x64xf32, #tpu.memory_space<vmem>>, vector<8x8x64xf32>
    %280 = vector.shape_cast %279 : vector<8x8x64xf32> to vector<64x64xf32>
    %281 = arith.truncf %280 : vector<64x64xf32> to vector<64x64xbf16>
    %c3_312 = arith.constant 3 : index
    %c7_313 = arith.constant 7 : index
    %c0_314 = arith.constant 0 : index
    %c0_315 = arith.constant 0 : index
    %282 = vector.load %arg7[%c3_312, %c7_313, %c0_314, %c0_315] : memref<6x9x64x64xbf16, #tpu.memory_space<vmem>>, vector<1x1x64x64xbf16>
    %283 = vector.shape_cast %282 : vector<1x1x64x64xbf16> to vector<64x64xbf16>
    %cst_316 = arith.constant dense<0.000000e+00> : vector<64x64xf32>
    %284 = tpu.matmul %281, %283, %cst_316 {dimension_numbers = #tpu.dot_dimension_numbers<[1], [0], [0], [1], [0, 0, 1, 1], [], []>} : vector<64x64xbf16>, vector<64x64xbf16>, vector<64x64xf32> -> vector<64x64xf32>
    %285 = arith.addf %278, %284 : vector<64x64xf32>
    %c4_317 = arith.constant 4 : index
    %c4_318 = arith.constant 4 : index
    %c0_319 = arith.constant 0 : index
    %286 = vector.load %arg15[%c4_317, %c4_318, %c0_319] : memref<12x12x64xf32, #tpu.memory_space<vmem>>, vector<8x8x64xf32>
    %287 = vector.shape_cast %286 : vector<8x8x64xf32> to vector<64x64xf32>
    %288 = arith.truncf %287 : vector<64x64xf32> to vector<64x64xbf16>
    %c3_320 = arith.constant 3 : index
    %c8_321 = arith.constant 8 : index
    %c0_322 = arith.constant 0 : index
    %c0_323 = arith.constant 0 : index
    %289 = vector.load %arg7[%c3_320, %c8_321, %c0_322, %c0_323] : memref<6x9x64x64xbf16, #tpu.memory_space<vmem>>, vector<1x1x64x64xbf16>
    %290 = vector.shape_cast %289 : vector<1x1x64x64xbf16> to vector<64x64xbf16>
    %cst_324 = arith.constant dense<0.000000e+00> : vector<64x64xf32>
    %291 = tpu.matmul %288, %290, %cst_324 {dimension_numbers = #tpu.dot_dimension_numbers<[1], [0], [0], [1], [0, 0, 1, 1], [], []>} : vector<64x64xbf16>, vector<64x64xbf16>, vector<64x64xf32> -> vector<64x64xf32>
    %292 = arith.addf %285, %291 : vector<64x64xf32>
    %c3_325 = arith.constant 3 : index
    %c0_326 = arith.constant 0 : index
    %293 = vector.load %arg8[%c3_325, %c0_326] : memref<6x64xf32, #tpu.memory_space<vmem>>, vector<1x64xf32>
    %294 = vector.broadcast %293 : vector<1x64xf32> to vector<64x64xf32>
    %295 = arith.addf %292, %294 : vector<64x64xf32>
    %296 = arith.addf %295, %159 : vector<64x64xf32>
    %cst_327 = arith.constant 0.000000e+00 : f32
    %297 = vector.broadcast %cst_327 : f32 to vector<64x64xf32>
    %298 = arith.maximumf %296, %297 : vector<64x64xf32>
    %299 = vector.shape_cast %298 : vector<64x64xf32> to vector<8x8x64xf32>
    %c2_328 = arith.constant 2 : index
    %c2_329 = arith.constant 2 : index
    %c0_330 = arith.constant 0 : index
    %300 = vector.load %arg14[%c2_328, %c2_329, %c0_330] : memref<12x12x64xf32, #tpu.memory_space<vmem>>, vector<8x8x64xf32>
    tpu.vector_store %arg14[%c2_328, %c2_329, %c0_330], %299 {strides = array<i32>} : memref<12x12x64xf32, #tpu.memory_space<vmem>>, vector<8x8x64xf32>,
    %c1_331 = arith.constant 1 : index
    %c1_332 = arith.constant 1 : index
    %c0_333 = arith.constant 0 : index
    %301 = vector.load %arg14[%c1_331, %c1_332, %c0_333] : memref<12x12x64xf32, #tpu.memory_space<vmem>>, vector<8x8x64xf32>
    %302 = vector.shape_cast %301 : vector<8x8x64xf32> to vector<64x64xf32>
    %303 = arith.truncf %302 : vector<64x64xf32> to vector<64x64xbf16>
    %c4_334 = arith.constant 4 : index
    %c0_335 = arith.constant 0 : index
    %c0_336 = arith.constant 0 : index
    %c0_337 = arith.constant 0 : index
    %304 = vector.load %arg7[%c4_334, %c0_335, %c0_336, %c0_337] : memref<6x9x64x64xbf16, #tpu.memory_space<vmem>>, vector<1x1x64x64xbf16>
    %305 = vector.shape_cast %304 : vector<1x1x64x64xbf16> to vector<64x64xbf16>
    %cst_338 = arith.constant dense<0.000000e+00> : vector<64x64xf32>
    %306 = tpu.matmul %303, %305, %cst_338 {dimension_numbers = #tpu.dot_dimension_numbers<[1], [0], [0], [1], [0, 0, 1, 1], [], []>} : vector<64x64xbf16>, vector<64x64xbf16>, vector<64x64xf32> -> vector<64x64xf32>
    %c1_339 = arith.constant 1 : index
    %c2_340 = arith.constant 2 : index
    %c0_341 = arith.constant 0 : index
    %307 = vector.load %arg14[%c1_339, %c2_340, %c0_341] : memref<12x12x64xf32, #tpu.memory_space<vmem>>, vector<8x8x64xf32>
    %308 = vector.shape_cast %307 : vector<8x8x64xf32> to vector<64x64xf32>
    %309 = arith.truncf %308 : vector<64x64xf32> to vector<64x64xbf16>
    %c4_342 = arith.constant 4 : index
    %c1_343 = arith.constant 1 : index
    %c0_344 = arith.constant 0 : index
    %c0_345 = arith.constant 0 : index
    %310 = vector.load %arg7[%c4_342, %c1_343, %c0_344, %c0_345] : memref<6x9x64x64xbf16, #tpu.memory_space<vmem>>, vector<1x1x64x64xbf16>
    %311 = vector.shape_cast %310 : vector<1x1x64x64xbf16> to vector<64x64xbf16>
    %cst_346 = arith.constant dense<0.000000e+00> : vector<64x64xf32>
    %312 = tpu.matmul %309, %311, %cst_346 {dimension_numbers = #tpu.dot_dimension_numbers<[1], [0], [0], [1], [0, 0, 1, 1], [], []>} : vector<64x64xbf16>, vector<64x64xbf16>, vector<64x64xf32> -> vector<64x64xf32>
    %313 = arith.addf %306, %312 : vector<64x64xf32>
    %c1_347 = arith.constant 1 : index
    %c3_348 = arith.constant 3 : index
    %c0_349 = arith.constant 0 : index
    %314 = vector.load %arg14[%c1_347, %c3_348, %c0_349] : memref<12x12x64xf32, #tpu.memory_space<vmem>>, vector<8x8x64xf32>
    %315 = vector.shape_cast %314 : vector<8x8x64xf32> to vector<64x64xf32>
    %316 = arith.truncf %315 : vector<64x64xf32> to vector<64x64xbf16>
    %c4_350 = arith.constant 4 : index
    %c2_351 = arith.constant 2 : index
    %c0_352 = arith.constant 0 : index
    %c0_353 = arith.constant 0 : index
    %317 = vector.load %arg7[%c4_350, %c2_351, %c0_352, %c0_353] : memref<6x9x64x64xbf16, #tpu.memory_space<vmem>>, vector<1x1x64x64xbf16>
    %318 = vector.shape_cast %317 : vector<1x1x64x64xbf16> to vector<64x64xbf16>
    %cst_354 = arith.constant dense<0.000000e+00> : vector<64x64xf32>
    %319 = tpu.matmul %316, %318, %cst_354 {dimension_numbers = #tpu.dot_dimension_numbers<[1], [0], [0], [1], [0, 0, 1, 1], [], []>} : vector<64x64xbf16>, vector<64x64xbf16>, vector<64x64xf32> -> vector<64x64xf32>
    %320 = arith.addf %313, %319 : vector<64x64xf32>
    %c2_355 = arith.constant 2 : index
    %c1_356 = arith.constant 1 : index
    %c0_357 = arith.constant 0 : index
    %321 = vector.load %arg14[%c2_355, %c1_356, %c0_357] : memref<12x12x64xf32, #tpu.memory_space<vmem>>, vector<8x8x64xf32>
    %322 = vector.shape_cast %321 : vector<8x8x64xf32> to vector<64x64xf32>
    %323 = arith.truncf %322 : vector<64x64xf32> to vector<64x64xbf16>
    %c4_358 = arith.constant 4 : index
    %c3_359 = arith.constant 3 : index
    %c0_360 = arith.constant 0 : index
    %c0_361 = arith.constant 0 : index
    %324 = vector.load %arg7[%c4_358, %c3_359, %c0_360, %c0_361] : memref<6x9x64x64xbf16, #tpu.memory_space<vmem>>, vector<1x1x64x64xbf16>
    %325 = vector.shape_cast %324 : vector<1x1x64x64xbf16> to vector<64x64xbf16>
    %cst_362 = arith.constant dense<0.000000e+00> : vector<64x64xf32>
    %326 = tpu.matmul %323, %325, %cst_362 {dimension_numbers = #tpu.dot_dimension_numbers<[1], [0], [0], [1], [0, 0, 1, 1], [], []>} : vector<64x64xbf16>, vector<64x64xbf16>, vector<64x64xf32> -> vector<64x64xf32>
    %327 = arith.addf %320, %326 : vector<64x64xf32>
    %c2_363 = arith.constant 2 : index
    %c2_364 = arith.constant 2 : index
    %c0_365 = arith.constant 0 : index
    %328 = vector.load %arg14[%c2_363, %c2_364, %c0_365] : memref<12x12x64xf32, #tpu.memory_space<vmem>>, vector<8x8x64xf32>
    %329 = vector.shape_cast %328 : vector<8x8x64xf32> to vector<64x64xf32>
    %330 = arith.truncf %329 : vector<64x64xf32> to vector<64x64xbf16>
    %c4_366 = arith.constant 4 : index
    %c4_367 = arith.constant 4 : index
    %c0_368 = arith.constant 0 : index
    %c0_369 = arith.constant 0 : index
    %331 = vector.load %arg7[%c4_366, %c4_367, %c0_368, %c0_369] : memref<6x9x64x64xbf16, #tpu.memory_space<vmem>>, vector<1x1x64x64xbf16>
    %332 = vector.shape_cast %331 : vector<1x1x64x64xbf16> to vector<64x64xbf16>
    %cst_370 = arith.constant dense<0.000000e+00> : vector<64x64xf32>
    %333 = tpu.matmul %330, %332, %cst_370 {dimension_numbers = #tpu.dot_dimension_numbers<[1], [0], [0], [1], [0, 0, 1, 1], [], []>} : vector<64x64xbf16>, vector<64x64xbf16>, vector<64x64xf32> -> vector<64x64xf32>
    %334 = arith.addf %327, %333 : vector<64x64xf32>
    %c2_371 = arith.constant 2 : index
    %c3_372 = arith.constant 3 : index
    %c0_373 = arith.constant 0 : index
    %335 = vector.load %arg14[%c2_371, %c3_372, %c0_373] : memref<12x12x64xf32, #tpu.memory_space<vmem>>, vector<8x8x64xf32>
    %336 = vector.shape_cast %335 : vector<8x8x64xf32> to vector<64x64xf32>
    %337 = arith.truncf %336 : vector<64x64xf32> to vector<64x64xbf16>
    %c4_374 = arith.constant 4 : index
    %c5_375 = arith.constant 5 : index
    %c0_376 = arith.constant 0 : index
    %c0_377 = arith.constant 0 : index
    %338 = vector.load %arg7[%c4_374, %c5_375, %c0_376, %c0_377] : memref<6x9x64x64xbf16, #tpu.memory_space<vmem>>, vector<1x1x64x64xbf16>
    %339 = vector.shape_cast %338 : vector<1x1x64x64xbf16> to vector<64x64xbf16>
    %cst_378 = arith.constant dense<0.000000e+00> : vector<64x64xf32>
    %340 = tpu.matmul %337, %339, %cst_378 {dimension_numbers = #tpu.dot_dimension_numbers<[1], [0], [0], [1], [0, 0, 1, 1], [], []>} : vector<64x64xbf16>, vector<64x64xbf16>, vector<64x64xf32> -> vector<64x64xf32>
    %341 = arith.addf %334, %340 : vector<64x64xf32>
    %c3_379 = arith.constant 3 : index
    %c1_380 = arith.constant 1 : index
    %c0_381 = arith.constant 0 : index
    %342 = vector.load %arg14[%c3_379, %c1_380, %c0_381] : memref<12x12x64xf32, #tpu.memory_space<vmem>>, vector<8x8x64xf32>
    %343 = vector.shape_cast %342 : vector<8x8x64xf32> to vector<64x64xf32>
    %344 = arith.truncf %343 : vector<64x64xf32> to vector<64x64xbf16>
    %c4_382 = arith.constant 4 : index
    %c6_383 = arith.constant 6 : index
    %c0_384 = arith.constant 0 : index
    %c0_385 = arith.constant 0 : index
    %345 = vector.load %arg7[%c4_382, %c6_383, %c0_384, %c0_385] : memref<6x9x64x64xbf16, #tpu.memory_space<vmem>>, vector<1x1x64x64xbf16>
    %346 = vector.shape_cast %345 : vector<1x1x64x64xbf16> to vector<64x64xbf16>
    %cst_386 = arith.constant dense<0.000000e+00> : vector<64x64xf32>
    %347 = tpu.matmul %344, %346, %cst_386 {dimension_numbers = #tpu.dot_dimension_numbers<[1], [0], [0], [1], [0, 0, 1, 1], [], []>} : vector<64x64xbf16>, vector<64x64xbf16>, vector<64x64xf32> -> vector<64x64xf32>
    %348 = arith.addf %341, %347 : vector<64x64xf32>
    %c3_387 = arith.constant 3 : index
    %c2_388 = arith.constant 2 : index
    %c0_389 = arith.constant 0 : index
    %349 = vector.load %arg14[%c3_387, %c2_388, %c0_389] : memref<12x12x64xf32, #tpu.memory_space<vmem>>, vector<8x8x64xf32>
    %350 = vector.shape_cast %349 : vector<8x8x64xf32> to vector<64x64xf32>
    %351 = arith.truncf %350 : vector<64x64xf32> to vector<64x64xbf16>
    %c4_390 = arith.constant 4 : index
    %c7_391 = arith.constant 7 : index
    %c0_392 = arith.constant 0 : index
    %c0_393 = arith.constant 0 : index
    %352 = vector.load %arg7[%c4_390, %c7_391, %c0_392, %c0_393] : memref<6x9x64x64xbf16, #tpu.memory_space<vmem>>, vector<1x1x64x64xbf16>
    %353 = vector.shape_cast %352 : vector<1x1x64x64xbf16> to vector<64x64xbf16>
    %cst_394 = arith.constant dense<0.000000e+00> : vector<64x64xf32>
    %354 = tpu.matmul %351, %353, %cst_394 {dimension_numbers = #tpu.dot_dimension_numbers<[1], [0], [0], [1], [0, 0, 1, 1], [], []>} : vector<64x64xbf16>, vector<64x64xbf16>, vector<64x64xf32> -> vector<64x64xf32>
    %355 = arith.addf %348, %354 : vector<64x64xf32>
    %c3_395 = arith.constant 3 : index
    %c3_396 = arith.constant 3 : index
    %c0_397 = arith.constant 0 : index
    %356 = vector.load %arg14[%c3_395, %c3_396, %c0_397] : memref<12x12x64xf32, #tpu.memory_space<vmem>>, vector<8x8x64xf32>
    %357 = vector.shape_cast %356 : vector<8x8x64xf32> to vector<64x64xf32>
    %358 = arith.truncf %357 : vector<64x64xf32> to vector<64x64xbf16>
    %c4_398 = arith.constant 4 : index
    %c8_399 = arith.constant 8 : index
    %c0_400 = arith.constant 0 : index
    %c0_401 = arith.constant 0 : index
    %359 = vector.load %arg7[%c4_398, %c8_399, %c0_400, %c0_401] : memref<6x9x64x64xbf16, #tpu.memory_space<vmem>>, vector<1x1x64x64xbf16>
    %360 = vector.shape_cast %359 : vector<1x1x64x64xbf16> to vector<64x64xbf16>
    %cst_402 = arith.constant dense<0.000000e+00> : vector<64x64xf32>
    %361 = tpu.matmul %358, %360, %cst_402 {dimension_numbers = #tpu.dot_dimension_numbers<[1], [0], [0], [1], [0, 0, 1, 1], [], []>} : vector<64x64xbf16>, vector<64x64xbf16>, vector<64x64xf32> -> vector<64x64xf32>
    %362 = arith.addf %355, %361 : vector<64x64xf32>
    %c4_403 = arith.constant 4 : index
    %c0_404 = arith.constant 0 : index
    %363 = vector.load %arg8[%c4_403, %c0_404] : memref<6x64xf32, #tpu.memory_space<vmem>>, vector<1x64xf32>
    %364 = vector.broadcast %363 : vector<1x64xf32> to vector<64x64xf32>
    %365 = arith.addf %362, %364 : vector<64x64xf32>
    %cst_405 = arith.constant 0.000000e+00 : f32
    %366 = vector.broadcast %cst_405 : f32 to vector<64x64xf32>
    %367 = arith.maximumf %365, %366 : vector<64x64xf32>
    %368 = vector.shape_cast %367 : vector<64x64xf32> to vector<8x8x64xf32>
    %c2_406 = arith.constant 2 : index
    %c2_407 = arith.constant 2 : index
    %c0_408 = arith.constant 0 : index
    %369 = vector.load %arg15[%c2_406, %c2_407, %c0_408] : memref<12x12x64xf32, #tpu.memory_space<vmem>>, vector<8x8x64xf32>
    tpu.vector_store %arg15[%c2_406, %c2_407, %c0_408], %368 {strides = array<i32>} : memref<12x12x64xf32, #tpu.memory_space<vmem>>, vector<8x8x64xf32>,
    %c1_409 = arith.constant 1 : index
    %c1_410 = arith.constant 1 : index
    %c0_411 = arith.constant 0 : index
    %370 = vector.load %arg15[%c1_409, %c1_410, %c0_411] : memref<12x12x64xf32, #tpu.memory_space<vmem>>, vector<8x8x64xf32>
    %371 = vector.shape_cast %370 : vector<8x8x64xf32> to vector<64x64xf32>
    %372 = arith.truncf %371 : vector<64x64xf32> to vector<64x64xbf16>
    %c5_412 = arith.constant 5 : index
    %c0_413 = arith.constant 0 : index
    %c0_414 = arith.constant 0 : index
    %c0_415 = arith.constant 0 : index
    %373 = vector.load %arg7[%c5_412, %c0_413, %c0_414, %c0_415] : memref<6x9x64x64xbf16, #tpu.memory_space<vmem>>, vector<1x1x64x64xbf16>
    %374 = vector.shape_cast %373 : vector<1x1x64x64xbf16> to vector<64x64xbf16>
    %cst_416 = arith.constant dense<0.000000e+00> : vector<64x64xf32>
    %375 = tpu.matmul %372, %374, %cst_416 {dimension_numbers = #tpu.dot_dimension_numbers<[1], [0], [0], [1], [0, 0, 1, 1], [], []>} : vector<64x64xbf16>, vector<64x64xbf16>, vector<64x64xf32> -> vector<64x64xf32>
    %c1_417 = arith.constant 1 : index
    %c2_418 = arith.constant 2 : index
    %c0_419 = arith.constant 0 : index
    %376 = vector.load %arg15[%c1_417, %c2_418, %c0_419] : memref<12x12x64xf32, #tpu.memory_space<vmem>>, vector<8x8x64xf32>
    %377 = vector.shape_cast %376 : vector<8x8x64xf32> to vector<64x64xf32>
    %378 = arith.truncf %377 : vector<64x64xf32> to vector<64x64xbf16>
    %c5_420 = arith.constant 5 : index
    %c1_421 = arith.constant 1 : index
    %c0_422 = arith.constant 0 : index
    %c0_423 = arith.constant 0 : index
    %379 = vector.load %arg7[%c5_420, %c1_421, %c0_422, %c0_423] : memref<6x9x64x64xbf16, #tpu.memory_space<vmem>>, vector<1x1x64x64xbf16>
    %380 = vector.shape_cast %379 : vector<1x1x64x64xbf16> to vector<64x64xbf16>
    %cst_424 = arith.constant dense<0.000000e+00> : vector<64x64xf32>
    %381 = tpu.matmul %378, %380, %cst_424 {dimension_numbers = #tpu.dot_dimension_numbers<[1], [0], [0], [1], [0, 0, 1, 1], [], []>} : vector<64x64xbf16>, vector<64x64xbf16>, vector<64x64xf32> -> vector<64x64xf32>
    %382 = arith.addf %375, %381 : vector<64x64xf32>
    %c1_425 = arith.constant 1 : index
    %c3_426 = arith.constant 3 : index
    %c0_427 = arith.constant 0 : index
    %383 = vector.load %arg15[%c1_425, %c3_426, %c0_427] : memref<12x12x64xf32, #tpu.memory_space<vmem>>, vector<8x8x64xf32>
    %384 = vector.shape_cast %383 : vector<8x8x64xf32> to vector<64x64xf32>
    %385 = arith.truncf %384 : vector<64x64xf32> to vector<64x64xbf16>
    %c5_428 = arith.constant 5 : index
    %c2_429 = arith.constant 2 : index
    %c0_430 = arith.constant 0 : index
    %c0_431 = arith.constant 0 : index
    %386 = vector.load %arg7[%c5_428, %c2_429, %c0_430, %c0_431] : memref<6x9x64x64xbf16, #tpu.memory_space<vmem>>, vector<1x1x64x64xbf16>
    %387 = vector.shape_cast %386 : vector<1x1x64x64xbf16> to vector<64x64xbf16>
    %cst_432 = arith.constant dense<0.000000e+00> : vector<64x64xf32>
    %388 = tpu.matmul %385, %387, %cst_432 {dimension_numbers = #tpu.dot_dimension_numbers<[1], [0], [0], [1], [0, 0, 1, 1], [], []>} : vector<64x64xbf16>, vector<64x64xbf16>, vector<64x64xf32> -> vector<64x64xf32>
    %389 = arith.addf %382, %388 : vector<64x64xf32>
    %c2_433 = arith.constant 2 : index
    %c1_434 = arith.constant 1 : index
    %c0_435 = arith.constant 0 : index
    %390 = vector.load %arg15[%c2_433, %c1_434, %c0_435] : memref<12x12x64xf32, #tpu.memory_space<vmem>>, vector<8x8x64xf32>
    %391 = vector.shape_cast %390 : vector<8x8x64xf32> to vector<64x64xf32>
    %392 = arith.truncf %391 : vector<64x64xf32> to vector<64x64xbf16>
    %c5_436 = arith.constant 5 : index
    %c3_437 = arith.constant 3 : index
    %c0_438 = arith.constant 0 : index
    %c0_439 = arith.constant 0 : index
    %393 = vector.load %arg7[%c5_436, %c3_437, %c0_438, %c0_439] : memref<6x9x64x64xbf16, #tpu.memory_space<vmem>>, vector<1x1x64x64xbf16>
    %394 = vector.shape_cast %393 : vector<1x1x64x64xbf16> to vector<64x64xbf16>
    %cst_440 = arith.constant dense<0.000000e+00> : vector<64x64xf32>
    %395 = tpu.matmul %392, %394, %cst_440 {dimension_numbers = #tpu.dot_dimension_numbers<[1], [0], [0], [1], [0, 0, 1, 1], [], []>} : vector<64x64xbf16>, vector<64x64xbf16>, vector<64x64xf32> -> vector<64x64xf32>
    %396 = arith.addf %389, %395 : vector<64x64xf32>
    %c2_441 = arith.constant 2 : index
    %c2_442 = arith.constant 2 : index
    %c0_443 = arith.constant 0 : index
    %397 = vector.load %arg15[%c2_441, %c2_442, %c0_443] : memref<12x12x64xf32, #tpu.memory_space<vmem>>, vector<8x8x64xf32>
    %398 = vector.shape_cast %397 : vector<8x8x64xf32> to vector<64x64xf32>
    %399 = arith.truncf %398 : vector<64x64xf32> to vector<64x64xbf16>
    %c5_444 = arith.constant 5 : index
    %c4_445 = arith.constant 4 : index
    %c0_446 = arith.constant 0 : index
    %c0_447 = arith.constant 0 : index
    %400 = vector.load %arg7[%c5_444, %c4_445, %c0_446, %c0_447] : memref<6x9x64x64xbf16, #tpu.memory_space<vmem>>, vector<1x1x64x64xbf16>
    %401 = vector.shape_cast %400 : vector<1x1x64x64xbf16> to vector<64x64xbf16>
    %cst_448 = arith.constant dense<0.000000e+00> : vector<64x64xf32>
    %402 = tpu.matmul %399, %401, %cst_448 {dimension_numbers = #tpu.dot_dimension_numbers<[1], [0], [0], [1], [0, 0, 1, 1], [], []>} : vector<64x64xbf16>, vector<64x64xbf16>, vector<64x64xf32> -> vector<64x64xf32>
    %403 = arith.addf %396, %402 : vector<64x64xf32>
    %c2_449 = arith.constant 2 : index
    %c3_450 = arith.constant 3 : index
    %c0_451 = arith.constant 0 : index
    %404 = vector.load %arg15[%c2_449, %c3_450, %c0_451] : memref<12x12x64xf32, #tpu.memory_space<vmem>>, vector<8x8x64xf32>
    %405 = vector.shape_cast %404 : vector<8x8x64xf32> to vector<64x64xf32>
    %406 = arith.truncf %405 : vector<64x64xf32> to vector<64x64xbf16>
    %c5_452 = arith.constant 5 : index
    %c5_453 = arith.constant 5 : index
    %c0_454 = arith.constant 0 : index
    %c0_455 = arith.constant 0 : index
    %407 = vector.load %arg7[%c5_452, %c5_453, %c0_454, %c0_455] : memref<6x9x64x64xbf16, #tpu.memory_space<vmem>>, vector<1x1x64x64xbf16>
    %408 = vector.shape_cast %407 : vector<1x1x64x64xbf16> to vector<64x64xbf16>
    %cst_456 = arith.constant dense<0.000000e+00> : vector<64x64xf32>
    %409 = tpu.matmul %406, %408, %cst_456 {dimension_numbers = #tpu.dot_dimension_numbers<[1], [0], [0], [1], [0, 0, 1, 1], [], []>} : vector<64x64xbf16>, vector<64x64xbf16>, vector<64x64xf32> -> vector<64x64xf32>
    %410 = arith.addf %403, %409 : vector<64x64xf32>
    %c3_457 = arith.constant 3 : index
    %c1_458 = arith.constant 1 : index
    %c0_459 = arith.constant 0 : index
    %411 = vector.load %arg15[%c3_457, %c1_458, %c0_459] : memref<12x12x64xf32, #tpu.memory_space<vmem>>, vector<8x8x64xf32>
    %412 = vector.shape_cast %411 : vector<8x8x64xf32> to vector<64x64xf32>
    %413 = arith.truncf %412 : vector<64x64xf32> to vector<64x64xbf16>
    %c5_460 = arith.constant 5 : index
    %c6_461 = arith.constant 6 : index
    %c0_462 = arith.constant 0 : index
    %c0_463 = arith.constant 0 : index
    %414 = vector.load %arg7[%c5_460, %c6_461, %c0_462, %c0_463] : memref<6x9x64x64xbf16, #tpu.memory_space<vmem>>, vector<1x1x64x64xbf16>
    %415 = vector.shape_cast %414 : vector<1x1x64x64xbf16> to vector<64x64xbf16>
    %cst_464 = arith.constant dense<0.000000e+00> : vector<64x64xf32>
    %416 = tpu.matmul %413, %415, %cst_464 {dimension_numbers = #tpu.dot_dimension_numbers<[1], [0], [0], [1], [0, 0, 1, 1], [], []>} : vector<64x64xbf16>, vector<64x64xbf16>, vector<64x64xf32> -> vector<64x64xf32>
    %417 = arith.addf %410, %416 : vector<64x64xf32>
    %c3_465 = arith.constant 3 : index
    %c2_466 = arith.constant 2 : index
    %c0_467 = arith.constant 0 : index
    %418 = vector.load %arg15[%c3_465, %c2_466, %c0_467] : memref<12x12x64xf32, #tpu.memory_space<vmem>>, vector<8x8x64xf32>
    %419 = vector.shape_cast %418 : vector<8x8x64xf32> to vector<64x64xf32>
    %420 = arith.truncf %419 : vector<64x64xf32> to vector<64x64xbf16>
    %c5_468 = arith.constant 5 : index
    %c7_469 = arith.constant 7 : index
    %c0_470 = arith.constant 0 : index
    %c0_471 = arith.constant 0 : index
    %421 = vector.load %arg7[%c5_468, %c7_469, %c0_470, %c0_471] : memref<6x9x64x64xbf16, #tpu.memory_space<vmem>>, vector<1x1x64x64xbf16>
    %422 = vector.shape_cast %421 : vector<1x1x64x64xbf16> to vector<64x64xbf16>
    %cst_472 = arith.constant dense<0.000000e+00> : vector<64x64xf32>
    %423 = tpu.matmul %420, %422, %cst_472 {dimension_numbers = #tpu.dot_dimension_numbers<[1], [0], [0], [1], [0, 0, 1, 1], [], []>} : vector<64x64xbf16>, vector<64x64xbf16>, vector<64x64xf32> -> vector<64x64xf32>
    %424 = arith.addf %417, %423 : vector<64x64xf32>
    %c3_473 = arith.constant 3 : index
    %c3_474 = arith.constant 3 : index
    %c0_475 = arith.constant 0 : index
    %425 = vector.load %arg15[%c3_473, %c3_474, %c0_475] : memref<12x12x64xf32, #tpu.memory_space<vmem>>, vector<8x8x64xf32>
    %426 = vector.shape_cast %425 : vector<8x8x64xf32> to vector<64x64xf32>
    %427 = arith.truncf %426 : vector<64x64xf32> to vector<64x64xbf16>
    %c5_476 = arith.constant 5 : index
    %c8_477 = arith.constant 8 : index
    %c0_478 = arith.constant 0 : index
    %c0_479 = arith.constant 0 : index
    %428 = vector.load %arg7[%c5_476, %c8_477, %c0_478, %c0_479] : memref<6x9x64x64xbf16, #tpu.memory_space<vmem>>, vector<1x1x64x64xbf16>
    %429 = vector.shape_cast %428 : vector<1x1x64x64xbf16> to vector<64x64xbf16>
    %cst_480 = arith.constant dense<0.000000e+00> : vector<64x64xf32>
    %430 = tpu.matmul %427, %429, %cst_480 {dimension_numbers = #tpu.dot_dimension_numbers<[1], [0], [0], [1], [0, 0, 1, 1], [], []>} : vector<64x64xbf16>, vector<64x64xbf16>, vector<64x64xf32> -> vector<64x64xf32>
    %431 = arith.addf %424, %430 : vector<64x64xf32>
    %c5_481 = arith.constant 5 : index
    %c0_482 = arith.constant 0 : index
    %432 = vector.load %arg8[%c5_481, %c0_482] : memref<6x64xf32, #tpu.memory_space<vmem>>, vector<1x64xf32>
    %433 = vector.broadcast %432 : vector<1x64xf32> to vector<64x64xf32>
    %434 = arith.addf %431, %433 : vector<64x64xf32>
    %435 = arith.addf %434, %298 : vector<64x64xf32>
    %cst_483 = arith.constant 0.000000e+00 : f32
    %436 = vector.broadcast %cst_483 : f32 to vector<64x64xf32>
    %437 = arith.maximumf %435, %436 : vector<64x64xf32>
    %438 = vector.shape_cast %437 : vector<64x64xf32> to vector<8x8x64xf32>
    %c2_484 = arith.constant 2 : index
    %c2_485 = arith.constant 2 : index
    %c0_486 = arith.constant 0 : index
    %439 = vector.load %arg14[%c2_484, %c2_485, %c0_486] : memref<12x12x64xf32, #tpu.memory_space<vmem>>, vector<8x8x64xf32>
    tpu.vector_store %arg14[%c2_484, %c2_485, %c0_486], %438 {strides = array<i32>} : memref<12x12x64xf32, #tpu.memory_space<vmem>>, vector<8x8x64xf32>,
    %c1_487 = arith.constant 1 : index
    %c1_488 = arith.constant 1 : index
    %c0_489 = arith.constant 0 : index
    %440 = vector.load %arg14[%c1_487, %c1_488, %c0_489] : memref<12x12x64xf32, #tpu.memory_space<vmem>>, vector<8x8x64xf32>
    %441 = vector.shape_cast %440 : vector<8x8x64xf32> to vector<64x64xf32>
    %442 = arith.truncf %441 : vector<64x64xf32> to vector<64x64xbf16>
    %c0_490 = arith.constant 0 : index
    %c0_491 = arith.constant 0 : index
    %c0_492 = arith.constant 0 : index
    %443 = vector.load %arg9[%c0_490, %c0_491, %c0_492] : memref<9x64x128xbf16, #tpu.memory_space<vmem>>, vector<1x64x128xbf16>
    %444 = vector.shape_cast %443 : vector<1x64x128xbf16> to vector<64x128xbf16>
    %cst_493 = arith.constant dense<0.000000e+00> : vector<64x128xf32>
    %445 = tpu.matmul %442, %444, %cst_493 {dimension_numbers = #tpu.dot_dimension_numbers<[1], [0], [0], [1], [0, 0, 1, 1], [], []>} : vector<64x64xbf16>, vector<64x128xbf16>, vector<64x128xf32> -> vector<64x128xf32>
    %c1_494 = arith.constant 1 : index
    %c2_495 = arith.constant 2 : index
    %c0_496 = arith.constant 0 : index
    %446 = vector.load %arg14[%c1_494, %c2_495, %c0_496] : memref<12x12x64xf32, #tpu.memory_space<vmem>>, vector<8x8x64xf32>
    %447 = vector.shape_cast %446 : vector<8x8x64xf32> to vector<64x64xf32>
    %448 = arith.truncf %447 : vector<64x64xf32> to vector<64x64xbf16>
    %c1_497 = arith.constant 1 : index
    %c0_498 = arith.constant 0 : index
    %c0_499 = arith.constant 0 : index
    %449 = vector.load %arg9[%c1_497, %c0_498, %c0_499] : memref<9x64x128xbf16, #tpu.memory_space<vmem>>, vector<1x64x128xbf16>
    %450 = vector.shape_cast %449 : vector<1x64x128xbf16> to vector<64x128xbf16>
    %cst_500 = arith.constant dense<0.000000e+00> : vector<64x128xf32>
    %451 = tpu.matmul %448, %450, %cst_500 {dimension_numbers = #tpu.dot_dimension_numbers<[1], [0], [0], [1], [0, 0, 1, 1], [], []>} : vector<64x64xbf16>, vector<64x128xbf16>, vector<64x128xf32> -> vector<64x128xf32>
    %452 = arith.addf %445, %451 : vector<64x128xf32>
    %c1_501 = arith.constant 1 : index
    %c3_502 = arith.constant 3 : index
    %c0_503 = arith.constant 0 : index
    %453 = vector.load %arg14[%c1_501, %c3_502, %c0_503] : memref<12x12x64xf32, #tpu.memory_space<vmem>>, vector<8x8x64xf32>
    %454 = vector.shape_cast %453 : vector<8x8x64xf32> to vector<64x64xf32>
    %455 = arith.truncf %454 : vector<64x64xf32> to vector<64x64xbf16>
    %c2_504 = arith.constant 2 : index
    %c0_505 = arith.constant 0 : index
    %c0_506 = arith.constant 0 : index
    %456 = vector.load %arg9[%c2_504, %c0_505, %c0_506] : memref<9x64x128xbf16, #tpu.memory_space<vmem>>, vector<1x64x128xbf16>
    %457 = vector.shape_cast %456 : vector<1x64x128xbf16> to vector<64x128xbf16>
    %cst_507 = arith.constant dense<0.000000e+00> : vector<64x128xf32>
    %458 = tpu.matmul %455, %457, %cst_507 {dimension_numbers = #tpu.dot_dimension_numbers<[1], [0], [0], [1], [0, 0, 1, 1], [], []>} : vector<64x64xbf16>, vector<64x128xbf16>, vector<64x128xf32> -> vector<64x128xf32>
    %459 = arith.addf %452, %458 : vector<64x128xf32>
    %c2_508 = arith.constant 2 : index
    %c1_509 = arith.constant 1 : index
    %c0_510 = arith.constant 0 : index
    %460 = vector.load %arg14[%c2_508, %c1_509, %c0_510] : memref<12x12x64xf32, #tpu.memory_space<vmem>>, vector<8x8x64xf32>
    %461 = vector.shape_cast %460 : vector<8x8x64xf32> to vector<64x64xf32>
    %462 = arith.truncf %461 : vector<64x64xf32> to vector<64x64xbf16>
    %c3_511 = arith.constant 3 : index
    %c0_512 = arith.constant 0 : index
    %c0_513 = arith.constant 0 : index
    %463 = vector.load %arg9[%c3_511, %c0_512, %c0_513] : memref<9x64x128xbf16, #tpu.memory_space<vmem>>, vector<1x64x128xbf16>
    %464 = vector.shape_cast %463 : vector<1x64x128xbf16> to vector<64x128xbf16>
    %cst_514 = arith.constant dense<0.000000e+00> : vector<64x128xf32>
    %465 = tpu.matmul %462, %464, %cst_514 {dimension_numbers = #tpu.dot_dimension_numbers<[1], [0], [0], [1], [0, 0, 1, 1], [], []>} : vector<64x64xbf16>, vector<64x128xbf16>, vector<64x128xf32> -> vector<64x128xf32>
    %466 = arith.addf %459, %465 : vector<64x128xf32>
    %c2_515 = arith.constant 2 : index
    %c2_516 = arith.constant 2 : index
    %c0_517 = arith.constant 0 : index
    %467 = vector.load %arg14[%c2_515, %c2_516, %c0_517] : memref<12x12x64xf32, #tpu.memory_space<vmem>>, vector<8x8x64xf32>
    %468 = vector.shape_cast %467 : vector<8x8x64xf32> to vector<64x64xf32>
    %469 = arith.truncf %468 : vector<64x64xf32> to vector<64x64xbf16>
    %c4_518 = arith.constant 4 : index
    %c0_519 = arith.constant 0 : index
    %c0_520 = arith.constant 0 : index
    %470 = vector.load %arg9[%c4_518, %c0_519, %c0_520] : memref<9x64x128xbf16, #tpu.memory_space<vmem>>, vector<1x64x128xbf16>
    %471 = vector.shape_cast %470 : vector<1x64x128xbf16> to vector<64x128xbf16>
    %cst_521 = arith.constant dense<0.000000e+00> : vector<64x128xf32>
    %472 = tpu.matmul %469, %471, %cst_521 {dimension_numbers = #tpu.dot_dimension_numbers<[1], [0], [0], [1], [0, 0, 1, 1], [], []>} : vector<64x64xbf16>, vector<64x128xbf16>, vector<64x128xf32> -> vector<64x128xf32>
    %473 = arith.addf %466, %472 : vector<64x128xf32>
    %c2_522 = arith.constant 2 : index
    %c3_523 = arith.constant 3 : index
    %c0_524 = arith.constant 0 : index
    %474 = vector.load %arg14[%c2_522, %c3_523, %c0_524] : memref<12x12x64xf32, #tpu.memory_space<vmem>>, vector<8x8x64xf32>
    %475 = vector.shape_cast %474 : vector<8x8x64xf32> to vector<64x64xf32>
    %476 = arith.truncf %475 : vector<64x64xf32> to vector<64x64xbf16>
    %c5_525 = arith.constant 5 : index
    %c0_526 = arith.constant 0 : index
    %c0_527 = arith.constant 0 : index
    %477 = vector.load %arg9[%c5_525, %c0_526, %c0_527] : memref<9x64x128xbf16, #tpu.memory_space<vmem>>, vector<1x64x128xbf16>
    %478 = vector.shape_cast %477 : vector<1x64x128xbf16> to vector<64x128xbf16>
    %cst_528 = arith.constant dense<0.000000e+00> : vector<64x128xf32>
    %479 = tpu.matmul %476, %478, %cst_528 {dimension_numbers = #tpu.dot_dimension_numbers<[1], [0], [0], [1], [0, 0, 1, 1], [], []>} : vector<64x64xbf16>, vector<64x128xbf16>, vector<64x128xf32> -> vector<64x128xf32>
    %480 = arith.addf %473, %479 : vector<64x128xf32>
    %c3_529 = arith.constant 3 : index
    %c1_530 = arith.constant 1 : index
    %c0_531 = arith.constant 0 : index
    %481 = vector.load %arg14[%c3_529, %c1_530, %c0_531] : memref<12x12x64xf32, #tpu.memory_space<vmem>>, vector<8x8x64xf32>
    %482 = vector.shape_cast %481 : vector<8x8x64xf32> to vector<64x64xf32>
    %483 = arith.truncf %482 : vector<64x64xf32> to vector<64x64xbf16>
    %c6_532 = arith.constant 6 : index
    %c0_533 = arith.constant 0 : index
    %c0_534 = arith.constant 0 : index
    %484 = vector.load %arg9[%c6_532, %c0_533, %c0_534] : memref<9x64x128xbf16, #tpu.memory_space<vmem>>, vector<1x64x128xbf16>
    %485 = vector.shape_cast %484 : vector<1x64x128xbf16> to vector<64x128xbf16>
    %cst_535 = arith.constant dense<0.000000e+00> : vector<64x128xf32>
    %486 = tpu.matmul %483, %485, %cst_535 {dimension_numbers = #tpu.dot_dimension_numbers<[1], [0], [0], [1], [0, 0, 1, 1], [], []>} : vector<64x64xbf16>, vector<64x128xbf16>, vector<64x128xf32> -> vector<64x128xf32>
    %487 = arith.addf %480, %486 : vector<64x128xf32>
    %c3_536 = arith.constant 3 : index
    %c2_537 = arith.constant 2 : index
    %c0_538 = arith.constant 0 : index
    %488 = vector.load %arg14[%c3_536, %c2_537, %c0_538] : memref<12x12x64xf32, #tpu.memory_space<vmem>>, vector<8x8x64xf32>
    %489 = vector.shape_cast %488 : vector<8x8x64xf32> to vector<64x64xf32>
    %490 = arith.truncf %489 : vector<64x64xf32> to vector<64x64xbf16>
    %c7_539 = arith.constant 7 : index
    %c0_540 = arith.constant 0 : index
    %c0_541 = arith.constant 0 : index
    %491 = vector.load %arg9[%c7_539, %c0_540, %c0_541] : memref<9x64x128xbf16, #tpu.memory_space<vmem>>, vector<1x64x128xbf16>
    %492 = vector.shape_cast %491 : vector<1x64x128xbf16> to vector<64x128xbf16>
    %cst_542 = arith.constant dense<0.000000e+00> : vector<64x128xf32>
    %493 = tpu.matmul %490, %492, %cst_542 {dimension_numbers = #tpu.dot_dimension_numbers<[1], [0], [0], [1], [0, 0, 1, 1], [], []>} : vector<64x64xbf16>, vector<64x128xbf16>, vector<64x128xf32> -> vector<64x128xf32>
    %494 = arith.addf %487, %493 : vector<64x128xf32>
    %c3_543 = arith.constant 3 : index
    %c3_544 = arith.constant 3 : index
    %c0_545 = arith.constant 0 : index
    %495 = vector.load %arg14[%c3_543, %c3_544, %c0_545] : memref<12x12x64xf32, #tpu.memory_space<vmem>>, vector<8x8x64xf32>
    %496 = vector.shape_cast %495 : vector<8x8x64xf32> to vector<64x64xf32>
    %497 = arith.truncf %496 : vector<64x64xf32> to vector<64x64xbf16>
    %c8_546 = arith.constant 8 : index
    %c0_547 = arith.constant 0 : index
    %c0_548 = arith.constant 0 : index
    %498 = vector.load %arg9[%c8_546, %c0_547, %c0_548] : memref<9x64x128xbf16, #tpu.memory_space<vmem>>, vector<1x64x128xbf16>
    %499 = vector.shape_cast %498 : vector<1x64x128xbf16> to vector<64x128xbf16>
    %cst_549 = arith.constant dense<0.000000e+00> : vector<64x128xf32>
    %500 = tpu.matmul %497, %499, %cst_549 {dimension_numbers = #tpu.dot_dimension_numbers<[1], [0], [0], [1], [0, 0, 1, 1], [], []>} : vector<64x64xbf16>, vector<64x128xbf16>, vector<64x128xf32> -> vector<64x128xf32>
    %501 = arith.addf %494, %500 : vector<64x128xf32>
    %c0_550 = arith.constant 0 : index
    %c0_551 = arith.constant 0 : index
    %502 = vector.load %arg10[%c0_550, %c0_551] : memref<1x128xf32, #tpu.memory_space<vmem>>, vector<1x128xf32>
    %503 = vector.broadcast %502 : vector<1x128xf32> to vector<64x128xf32>
    %504 = arith.addf %501, %503 : vector<64x128xf32>
    %cst_552 = arith.constant 0.000000e+00 : f32
    %505 = vector.broadcast %cst_552 : f32 to vector<64x128xf32>
    %506 = arith.maximumf %504, %505 : vector<64x128xf32>
    %507 = vector.shape_cast %506 : vector<64x128xf32> to vector<8x8x128xf32>
    %c1_553 = arith.constant 1 : index
    %c1_554 = arith.constant 1 : index
    %c0_555 = arith.constant 0 : index
    %508 = vector.load %arg16[%c1_553, %c1_554, %c0_555] : memref<10x10x128xf32, #tpu.memory_space<vmem>>, vector<8x8x128xf32>
    tpu.vector_store %arg16[%c1_553, %c1_554, %c0_555], %507 {strides = array<i32>} : memref<10x10x128xf32, #tpu.memory_space<vmem>>, vector<8x8x128xf32>,
    %c0_556 = arith.constant 0 : index
    %c0_557 = arith.constant 0 : index
    %c0_558 = arith.constant 0 : index
    %509 = vector.load %arg16[%c0_556, %c0_557, %c0_558] : memref<10x10x128xf32, #tpu.memory_space<vmem>>, vector<8x8x128xf32>
    %510 = vector.shape_cast %509 : vector<8x8x128xf32> to vector<64x128xf32>
    %511 = arith.truncf %510 : vector<64x128xf32> to vector<64x128xbf16>
    %c0_559 = arith.constant 0 : index
    %c0_560 = arith.constant 0 : index
    %c0_561 = arith.constant 0 : index
    %512 = vector.load %arg11[%c0_559, %c0_560, %c0_561] : memref<9x128x12xbf16, #tpu.memory_space<vmem>>, vector<1x128x12xbf16>
    %513 = vector.shape_cast %512 : vector<1x128x12xbf16> to vector<128x12xbf16>
    %cst_562 = arith.constant dense<0.000000e+00> : vector<64x12xf32>
    %514 = tpu.matmul %511, %513, %cst_562 {dimension_numbers = #tpu.dot_dimension_numbers<[1], [0], [0], [1], [0, 0, 1, 1], [], []>} : vector<64x128xbf16>, vector<128x12xbf16>, vector<64x12xf32> -> vector<64x12xf32>
    %c0_563 = arith.constant 0 : index
    %c1_564 = arith.constant 1 : index
    %c0_565 = arith.constant 0 : index
    %515 = vector.load %arg16[%c0_563, %c1_564, %c0_565] : memref<10x10x128xf32, #tpu.memory_space<vmem>>, vector<8x8x128xf32>
    %516 = vector.shape_cast %515 : vector<8x8x128xf32> to vector<64x128xf32>
    %517 = arith.truncf %516 : vector<64x128xf32> to vector<64x128xbf16>
    %c1_566 = arith.constant 1 : index
    %c0_567 = arith.constant 0 : index
    %c0_568 = arith.constant 0 : index
    %518 = vector.load %arg11[%c1_566, %c0_567, %c0_568] : memref<9x128x12xbf16, #tpu.memory_space<vmem>>, vector<1x128x12xbf16>
    %519 = vector.shape_cast %518 : vector<1x128x12xbf16> to vector<128x12xbf16>
    %cst_569 = arith.constant dense<0.000000e+00> : vector<64x12xf32>
    %520 = tpu.matmul %517, %519, %cst_569 {dimension_numbers = #tpu.dot_dimension_numbers<[1], [0], [0], [1], [0, 0, 1, 1], [], []>} : vector<64x128xbf16>, vector<128x12xbf16>, vector<64x12xf32> -> vector<64x12xf32>
    %521 = arith.addf %514, %520 : vector<64x12xf32>
    %c0_570 = arith.constant 0 : index
    %c2_571 = arith.constant 2 : index
    %c0_572 = arith.constant 0 : index
    %522 = vector.load %arg16[%c0_570, %c2_571, %c0_572] : memref<10x10x128xf32, #tpu.memory_space<vmem>>, vector<8x8x128xf32>
    %523 = vector.shape_cast %522 : vector<8x8x128xf32> to vector<64x128xf32>
    %524 = arith.truncf %523 : vector<64x128xf32> to vector<64x128xbf16>
    %c2_573 = arith.constant 2 : index
    %c0_574 = arith.constant 0 : index
    %c0_575 = arith.constant 0 : index
    %525 = vector.load %arg11[%c2_573, %c0_574, %c0_575] : memref<9x128x12xbf16, #tpu.memory_space<vmem>>, vector<1x128x12xbf16>
    %526 = vector.shape_cast %525 : vector<1x128x12xbf16> to vector<128x12xbf16>
    %cst_576 = arith.constant dense<0.000000e+00> : vector<64x12xf32>
    %527 = tpu.matmul %524, %526, %cst_576 {dimension_numbers = #tpu.dot_dimension_numbers<[1], [0], [0], [1], [0, 0, 1, 1], [], []>} : vector<64x128xbf16>, vector<128x12xbf16>, vector<64x12xf32> -> vector<64x12xf32>
    %528 = arith.addf %521, %527 : vector<64x12xf32>
    %c1_577 = arith.constant 1 : index
    %c0_578 = arith.constant 0 : index
    %c0_579 = arith.constant 0 : index
    %529 = vector.load %arg16[%c1_577, %c0_578, %c0_579] : memref<10x10x128xf32, #tpu.memory_space<vmem>>, vector<8x8x128xf32>
    %530 = vector.shape_cast %529 : vector<8x8x128xf32> to vector<64x128xf32>
    %531 = arith.truncf %530 : vector<64x128xf32> to vector<64x128xbf16>
    %c3_580 = arith.constant 3 : index
    %c0_581 = arith.constant 0 : index
    %c0_582 = arith.constant 0 : index
    %532 = vector.load %arg11[%c3_580, %c0_581, %c0_582] : memref<9x128x12xbf16, #tpu.memory_space<vmem>>, vector<1x128x12xbf16>
    %533 = vector.shape_cast %532 : vector<1x128x12xbf16> to vector<128x12xbf16>
    %cst_583 = arith.constant dense<0.000000e+00> : vector<64x12xf32>
    %534 = tpu.matmul %531, %533, %cst_583 {dimension_numbers = #tpu.dot_dimension_numbers<[1], [0], [0], [1], [0, 0, 1, 1], [], []>} : vector<64x128xbf16>, vector<128x12xbf16>, vector<64x12xf32> -> vector<64x12xf32>
    %535 = arith.addf %528, %534 : vector<64x12xf32>
    %c1_584 = arith.constant 1 : index
    %c1_585 = arith.constant 1 : index
    %c0_586 = arith.constant 0 : index
    %536 = vector.load %arg16[%c1_584, %c1_585, %c0_586] : memref<10x10x128xf32, #tpu.memory_space<vmem>>, vector<8x8x128xf32>
    %537 = vector.shape_cast %536 : vector<8x8x128xf32> to vector<64x128xf32>
    %538 = arith.truncf %537 : vector<64x128xf32> to vector<64x128xbf16>
    %c4_587 = arith.constant 4 : index
    %c0_588 = arith.constant 0 : index
    %c0_589 = arith.constant 0 : index
    %539 = vector.load %arg11[%c4_587, %c0_588, %c0_589] : memref<9x128x12xbf16, #tpu.memory_space<vmem>>, vector<1x128x12xbf16>
    %540 = vector.shape_cast %539 : vector<1x128x12xbf16> to vector<128x12xbf16>
    %cst_590 = arith.constant dense<0.000000e+00> : vector<64x12xf32>
    %541 = tpu.matmul %538, %540, %cst_590 {dimension_numbers = #tpu.dot_dimension_numbers<[1], [0], [0], [1], [0, 0, 1, 1], [], []>} : vector<64x128xbf16>, vector<128x12xbf16>, vector<64x12xf32> -> vector<64x12xf32>
    %542 = arith.addf %535, %541 : vector<64x12xf32>
    %c1_591 = arith.constant 1 : index
    %c2_592 = arith.constant 2 : index
    %c0_593 = arith.constant 0 : index
    %543 = vector.load %arg16[%c1_591, %c2_592, %c0_593] : memref<10x10x128xf32, #tpu.memory_space<vmem>>, vector<8x8x128xf32>
    %544 = vector.shape_cast %543 : vector<8x8x128xf32> to vector<64x128xf32>
    %545 = arith.truncf %544 : vector<64x128xf32> to vector<64x128xbf16>
    %c5_594 = arith.constant 5 : index
    %c0_595 = arith.constant 0 : index
    %c0_596 = arith.constant 0 : index
    %546 = vector.load %arg11[%c5_594, %c0_595, %c0_596] : memref<9x128x12xbf16, #tpu.memory_space<vmem>>, vector<1x128x12xbf16>
    %547 = vector.shape_cast %546 : vector<1x128x12xbf16> to vector<128x12xbf16>
    %cst_597 = arith.constant dense<0.000000e+00> : vector<64x12xf32>
    %548 = tpu.matmul %545, %547, %cst_597 {dimension_numbers = #tpu.dot_dimension_numbers<[1], [0], [0], [1], [0, 0, 1, 1], [], []>} : vector<64x128xbf16>, vector<128x12xbf16>, vector<64x12xf32> -> vector<64x12xf32>
    %549 = arith.addf %542, %548 : vector<64x12xf32>
    %c2_598 = arith.constant 2 : index
    %c0_599 = arith.constant 0 : index
    %c0_600 = arith.constant 0 : index
    %550 = vector.load %arg16[%c2_598, %c0_599, %c0_600] : memref<10x10x128xf32, #tpu.memory_space<vmem>>, vector<8x8x128xf32>
    %551 = vector.shape_cast %550 : vector<8x8x128xf32> to vector<64x128xf32>
    %552 = arith.truncf %551 : vector<64x128xf32> to vector<64x128xbf16>
    %c6_601 = arith.constant 6 : index
    %c0_602 = arith.constant 0 : index
    %c0_603 = arith.constant 0 : index
    %553 = vector.load %arg11[%c6_601, %c0_602, %c0_603] : memref<9x128x12xbf16, #tpu.memory_space<vmem>>, vector<1x128x12xbf16>
    %554 = vector.shape_cast %553 : vector<1x128x12xbf16> to vector<128x12xbf16>
    %cst_604 = arith.constant dense<0.000000e+00> : vector<64x12xf32>
    %555 = tpu.matmul %552, %554, %cst_604 {dimension_numbers = #tpu.dot_dimension_numbers<[1], [0], [0], [1], [0, 0, 1, 1], [], []>} : vector<64x128xbf16>, vector<128x12xbf16>, vector<64x12xf32> -> vector<64x12xf32>
    %556 = arith.addf %549, %555 : vector<64x12xf32>
    %c2_605 = arith.constant 2 : index
    %c1_606 = arith.constant 1 : index
    %c0_607 = arith.constant 0 : index
    %557 = vector.load %arg16[%c2_605, %c1_606, %c0_607] : memref<10x10x128xf32, #tpu.memory_space<vmem>>, vector<8x8x128xf32>
    %558 = vector.shape_cast %557 : vector<8x8x128xf32> to vector<64x128xf32>
    %559 = arith.truncf %558 : vector<64x128xf32> to vector<64x128xbf16>
    %c7_608 = arith.constant 7 : index
    %c0_609 = arith.constant 0 : index
    %c0_610 = arith.constant 0 : index
    %560 = vector.load %arg11[%c7_608, %c0_609, %c0_610] : memref<9x128x12xbf16, #tpu.memory_space<vmem>>, vector<1x128x12xbf16>
    %561 = vector.shape_cast %560 : vector<1x128x12xbf16> to vector<128x12xbf16>
    %cst_611 = arith.constant dense<0.000000e+00> : vector<64x12xf32>
    %562 = tpu.matmul %559, %561, %cst_611 {dimension_numbers = #tpu.dot_dimension_numbers<[1], [0], [0], [1], [0, 0, 1, 1], [], []>} : vector<64x128xbf16>, vector<128x12xbf16>, vector<64x12xf32> -> vector<64x12xf32>
    %563 = arith.addf %556, %562 : vector<64x12xf32>
    %c2_612 = arith.constant 2 : index
    %c2_613 = arith.constant 2 : index
    %c0_614 = arith.constant 0 : index
    %564 = vector.load %arg16[%c2_612, %c2_613, %c0_614] : memref<10x10x128xf32, #tpu.memory_space<vmem>>, vector<8x8x128xf32>
    %565 = vector.shape_cast %564 : vector<8x8x128xf32> to vector<64x128xf32>
    %566 = arith.truncf %565 : vector<64x128xf32> to vector<64x128xbf16>
    %c8_615 = arith.constant 8 : index
    %c0_616 = arith.constant 0 : index
    %c0_617 = arith.constant 0 : index
    %567 = vector.load %arg11[%c8_615, %c0_616, %c0_617] : memref<9x128x12xbf16, #tpu.memory_space<vmem>>, vector<1x128x12xbf16>
    %568 = vector.shape_cast %567 : vector<1x128x12xbf16> to vector<128x12xbf16>
    %cst_618 = arith.constant dense<0.000000e+00> : vector<64x12xf32>
    %569 = tpu.matmul %566, %568, %cst_618 {dimension_numbers = #tpu.dot_dimension_numbers<[1], [0], [0], [1], [0, 0, 1, 1], [], []>} : vector<64x128xbf16>, vector<128x12xbf16>, vector<64x12xf32> -> vector<64x12xf32>
    %570 = arith.addf %563, %569 : vector<64x12xf32>
    %c0_619 = arith.constant 0 : index
    %c0_620 = arith.constant 0 : index
    %571 = vector.load %arg12[%c0_619, %c0_620] : memref<1x12xf32, #tpu.memory_space<vmem>>, vector<1x12xf32>
    %572 = vector.broadcast %571 : vector<1x12xf32> to vector<64x12xf32>
    %573 = arith.addf %570, %572 : vector<64x12xf32>
    %c0_621 = arith.constant 0 : index
    %c0_622 = arith.constant 0 : index
    %c0_623 = arith.constant 0 : index
    %574 = vector.load %arg2[%c0_621, %c0_622, %c0_623] : memref<1x64x12xf32, #tpu.memory_space<vmem>>, vector<1x64x12xf32>
    %575 = vector.shape_cast %574 : vector<1x64x12xf32> to vector<64x12xf32>
    %576 = arith.addf %573, %575 : vector<64x12xf32>
    %cst_624 = arith.constant 0.000000e+00 : f32
    %cst_625 = arith.constant 1.000000e+00 : f32
    %577 = vector.broadcast %cst_624 : f32 to vector<64x12xf32>
    %578 = arith.maximumf %577, %576 : vector<64x12xf32>
    %579 = vector.broadcast %cst_625 : f32 to vector<64x12xf32>
    %580 = arith.minimumf %579, %578 : vector<64x12xf32>
    %c0_626 = arith.constant 0 : index
    %c0_627 = arith.constant 0 : index
    %c0_628 = arith.constant 0 : index
    %581 = vector.load %arg13[%c0_626, %c0_627, %c0_628] : memref<1x64x12xf32, #tpu.memory_space<vmem>>, vector<1x64x12xf32>
    %582 = vector.shape_cast %581 : vector<1x64x12xf32> to vector<64x12xf32>
    %583 = vector.shape_cast %580 : vector<64x12xf32> to vector<1x64x12xf32>
    tpu.vector_store %arg13[%c0_626, %c0_627, %c0_628], %583 {strides = array<i32>} : memref<1x64x12xf32, #tpu.memory_space<vmem>>, vector<1x64x12xf32>,
    return
  }
  func.func @transform_0(%arg0: i32) -> (i32, i32, i32) {
    %c0_i32 = arith.constant 0 : i32
    %c0_i32_0 = arith.constant 0 : i32
    %c0_i32_1 = arith.constant 0 : i32
    return %arg0, %c0_i32, %c0_i32_0 : i32, i32, i32
  }
  func.func @transform_1(%arg0: i32) -> (i32, i32, i32) {
    %c0_i32 = arith.constant 0 : i32
    %c0_i32_0 = arith.constant 0 : i32
    %c0_i32_1 = arith.constant 0 : i32
    return %arg0, %c0_i32, %c0_i32_0 : i32, i32, i32
  }
  func.func @transform_2(%arg0: i32) -> (i32, i32) {
    %c0_i32 = arith.constant 0 : i32
    %c0_i32_0 = arith.constant 0 : i32
    %c0_i32_1 = arith.constant 0 : i32
    return %c0_i32, %c0_i32_0 : i32, i32
  }
  func.func @transform_3(%arg0: i32) -> (i32, i32) {
    %c0_i32 = arith.constant 0 : i32
    %c0_i32_0 = arith.constant 0 : i32
    %c0_i32_1 = arith.constant 0 : i32
    return %c0_i32, %c0_i32_0 : i32, i32
  }
  func.func @transform_4(%arg0: i32) -> (i32, i32) {
    %c0_i32 = arith.constant 0 : i32
    %c0_i32_0 = arith.constant 0 : i32
    %c0_i32_1 = arith.constant 0 : i32
    return %c0_i32, %c0_i32_0 : i32, i32
  }
  func.func @transform_5(%arg0: i32) -> (i32, i32) {
    %c0_i32 = arith.constant 0 : i32
    %c0_i32_0 = arith.constant 0 : i32
    %c0_i32_1 = arith.constant 0 : i32
    return %c0_i32, %c0_i32_0 : i32, i32
  }
  func.func @transform_6(%arg0: i32) -> (i32, i32, i32, i32) {
    %c0_i32 = arith.constant 0 : i32
    %c0_i32_0 = arith.constant 0 : i32
    %c0_i32_1 = arith.constant 0 : i32
    %c0_i32_2 = arith.constant 0 : i32
    %c0_i32_3 = arith.constant 0 : i32
    return %c0_i32, %c0_i32_0, %c0_i32_1, %c0_i32_2 : i32, i32, i32, i32
  }
  func.func @transform_7(%arg0: i32) -> (i32, i32) {
    %c0_i32 = arith.constant 0 : i32
    %c0_i32_0 = arith.constant 0 : i32
    %c0_i32_1 = arith.constant 0 : i32
    return %c0_i32, %c0_i32_0 : i32, i32
  }
  func.func @transform_8(%arg0: i32) -> (i32, i32, i32) {
    %c0_i32 = arith.constant 0 : i32
    %c0_i32_0 = arith.constant 0 : i32
    %c0_i32_1 = arith.constant 0 : i32
    %c0_i32_2 = arith.constant 0 : i32
    return %c0_i32, %c0_i32_0, %c0_i32_1 : i32, i32, i32
  }
  func.func @transform_9(%arg0: i32) -> (i32, i32) {
    %c0_i32 = arith.constant 0 : i32
    %c0_i32_0 = arith.constant 0 : i32
    %c0_i32_1 = arith.constant 0 : i32
    return %c0_i32, %c0_i32_0 : i32, i32
  }
  func.func @transform_10(%arg0: i32) -> (i32, i32, i32) {
    %c0_i32 = arith.constant 0 : i32
    %c0_i32_0 = arith.constant 0 : i32
    %c0_i32_1 = arith.constant 0 : i32
    %c0_i32_2 = arith.constant 0 : i32
    return %c0_i32, %c0_i32_0, %c0_i32_1 : i32, i32, i32
  }
  func.func @transform_11(%arg0: i32) -> (i32, i32) {
    %c0_i32 = arith.constant 0 : i32
    %c0_i32_0 = arith.constant 0 : i32
    %c0_i32_1 = arith.constant 0 : i32
    return %c0_i32, %c0_i32_0 : i32, i32
  }
  func.func @transform_12(%arg0: i32) -> (i32, i32, i32) {
    %c0_i32 = arith.constant 0 : i32
    %c0_i32_0 = arith.constant 0 : i32
    %c0_i32_1 = arith.constant 0 : i32
    return %arg0, %c0_i32, %c0_i32_0 : i32, i32, i32
  }
}

</mosaic_0001>

<bundles_post_ra>
// kernel: ddgn_forward.1
= control target key start
LH: loop header
LB: loop body
LE: loop exit
PB: predicated region body
PF: predicated region fallthrough
CT: control target
= control target key end

     0   :  { %s14573_s21 = smov 0   ;;  %s16951_s0 = inlined_call_operand.vmem [shape: bf16[2,64,48], index: 0, kind: input, shape index: {}]   ;;  %s16952_s1 = inlined_call_operand.vmem [shape: f32[2,64,12], index: 1, kind: input, shape index: {}]   ;;  %s16953_s2 = inlined_call_operand.vmem [shape: bf16[48,32], index: 2, kind: input, shape index: {}]   ;;  %s16954_s3 = inlined_call_operand.vmem [shape: f32[1,32], index: 3, kind: input, shape index: {}]   ;;  %s16955_s4 = inlined_call_operand.vmem [shape: bf16[32,64], index: 4, kind: input, shape index: {}]   ;;  %s16956_s5 = inlined_call_operand.vmem [shape: f32[1,64], index: 5, kind: input, shape index: {}]   ;;  %s16957_s6 = inlined_call_operand.vmem [shape: bf16[6,9,64,64], index: 6, kind: input, shape index: {}]   ;;  %s16958_s7 = inlined_call_operand.vmem [shape: f32[6,64], index: 7, kind: input, shape index: {}]   ;;  %s16959_s8 = inlined_call_operand.vmem [shape: bf16[9,64,128], index: 8, kind: input, shape index: {}]   ;;  %s16960_s9 = inlined_call_operand.vmem [shape: f32[1,128], index: 9, kind: input, shape index: {}]   ;;  %s16961_s10 = inlined_call_operand.vmem [shape: bf16[9,128,12], index: 10, kind: input, shape index: {}]   ;;  %s16962_s11 = inlined_call_operand.vmem [shape: f32[1,12], index: 11, kind: input, shape index: {}]   ;;  %s16963_s12 = inlined_call_operand.vmem [shape: f32[2,64,12], index: 12, kind: output, shape index: {}]  }
   0x1 LB: > { %s10534_s22 = sadd.s32 4294967295, %s14505_s21   ;;  %p10538_p0 = scmp.ge.s32.totalorder %s14505_s21, 1  ;;  %s14505_s21 = sphi %s14573_s21, %s22_s21  }
   0x2   : > { %p372_p1 = scmp.lt.s32.totalorder %s14505_s21, 3 }
   0x4   : > { %p373_p2 = pnand %p10538_p0, %p372_p1 }
   0x5   : > { %v14165_v0 = vld [vmem:[%s16953_s2] sm:$0xff] (!%p373_p2)   ;;  %p419_p3 = scmp.lt.s32.totalorder (!%p373_p2), %s10534_s22, 1  ;;  %v14166_v1 = vld [vmem:[%s16953_s2 + $0x8] sm:$0xff] (!%p373_p2)   ;;  %vm564_vm0 = vcmask (!%p373_p2), 392192   ;;  %v14167_v2 = vld [vmem:[%s16953_s2 + $0x10] sm:$0xff] (!%p373_p2)   ;;  %vm435_vm1 = vcmask (!%p373_p2), 523264  }
   0x6   : > { %376 = sbr.rel (%p373_p2) target bundleno = 3385 (0xd39), region = 68  ;;  %12394 = vmatprep.subr.bf16.mxu0 (!%p373_p2), %v14165_v0  ;;  %v14172_v7 = vld [vmem:[%s16955_s4] sm:$0xff] (!%p373_p2)   ;;  %v14173_v8 = vld [vmem:[%s16955_s4 + $0x8] sm:$0xff] (!%p373_p2)   ;;  %vm437_vm2 = vcmask (!%p373_p2), 519168   ;;  %v14507_v10 = vmov (!%p373_p2), 0.0   ;;  %vm677_vm3 = vcmask (!%p373_p2), 261120  }
   0x7   : > { %12395 = vmatpush3.bf16.msra.mxu0 (!%p373_p2), %v14165_v0  ;;  %12408 = vmatprep.subr.bf16.mxu1 (!%p373_p2), %v14172_v7  ;;  %v14609_v9 = vld [vmem:[%s16957_s6 + $0x20] sm:$0xff] (!%p373_p2)   ;;  %445 = vst.msk [vmem:[#allocation2 + $0x40] sm:$0xff] (!%p373_p2), %vm435_vm1, %v14507_v10  ;;  %436 = vst.msk [vmem:[#allocation2] sm:$0xff] (!%p373_p2), %vm435_vm1, %v14507_v10  ;;  %v14175_v40 = vld [vmem:[%s16957_s6 + $0x28] sm:$0xff] (!%p373_p2)   ;;  %vm10458_vm4 = vcmask (!%p373_p2), 97280  }
   0x8   : > { %12396 = vmatprep.subr.bf16.mxu0 (!%p373_p2), %v14166_v1  ;;  %12409 = vmatpush3.bf16.msra.mxu1 (!%p373_p2), %v14172_v7  ;;  %446 = vst.msk [vmem:[#allocation2 + $0x48] sm:$0xf] (!%p373_p2), %vm437_vm2, %v14507_v10  ;;  %438 = vst.msk [vmem:[#allocation2 + $0x8] sm:$0xf] (!%p373_p2), %vm437_vm2, %v14507_v10  ;;  %v10545_v11 = vld [vmem:[%s16954_s3] ss:$0 sm:$0xff] (!%p373_p2) }
   0x9   : > { %12410 = vmatprep.subr.bf16.mxu1 (!%p373_p2), %v14173_v8  ;;  %439 = vst.msk [vmem:[#allocation2 + $0x10] sm:$0xff] (!%p373_p2), %vm435_vm1, %v14507_v10  ;;  %441 = vst.msk [vmem:[#allocation2 + $0x20] sm:$0xff] (!%p373_p2), %vm435_vm1, %v14507_v10  ;;  %v14176_v41 = vld [vmem:[%s16957_s6 + $0x30] sm:$0xff] (!%p373_p2)   ;;  %v14177_v42 = vld [vmem:[%s16957_s6 + $0x38] sm:$0xff] (!%p373_p2)  }
   0xa   : > { %440 = vst.msk [vmem:[#allocation2 + $0x18] sm:$0xf] (!%p373_p2), %vm437_vm2, %v14507_v10  ;;  %442 = vst.msk [vmem:[#allocation2 + $0x28] sm:$0xf] (!%p373_p2), %vm437_vm2, %v14507_v10  ;;  %v14178_v43 = vld [vmem:[%s16957_s6] sm:$0xff] (!%p373_p2)  }
   0xb   : > { %12397 = vmatpush3.bf16.msra.mxu0 (!%p373_p2), %v14166_v1  ;;  %443 = vst.msk [vmem:[#allocation2 + $0x30] sm:$0xff] (!%p373_p2), %vm435_vm1, %v14507_v10  ;;  %447 = vst.msk [vmem:[#allocation2 + $0x50] sm:$0xff] (!%p373_p2), %vm435_vm1, %v14507_v10  ;;  %v10557_v44 = vld [vmem:[%s16956_s5] ss:$0 sm:$0xff] (!%p373_p2) }
   0xc   : > { %12398 = vmatprep.subr.bf16.mxu0 (!%p373_p2), %v14167_v2  ;;  %12411 = vmatpush3.bf16.msra.mxu1 (!%p373_p2), %v14173_v8  ;;  %444 = vst.msk [vmem:[#allocation2 + $0x38] sm:$0xf] (!%p373_p2), %vm437_vm2, %v14507_v10  ;;  %448 = vst.msk [vmem:[#allocation2 + $0x58] sm:$0xf] (!%p373_p2), %vm437_vm2, %v14507_v10 }
   0xd   : > { %s16965_s22 = smov (!%p419_p3, %s10534_s22), 1  ;;  %449 = vst.msk [vmem:[#allocation2 + $0x60] sm:$0xff] %vm435_vm1, %v14507_v10  ;;  %451 = vst.msk [vmem:[#allocation2 + $0x70] sm:$0xff] %vm435_vm1, %v14507_v10  ;;  %12420 = vmatprep.subr.bf16.mxu1 %v14609_v9 }
   0xe   : > { %s11766_s29 = sshll.u32 %s16965_s22, 5  ;;  %450 = vst.msk [vmem:[#allocation2 + $0x68] sm:$0xf] %vm437_vm2, %v14507_v10  ;;  %452 = vst.msk [vmem:[#allocation2 + $0x78] sm:$0xf] %vm437_vm2, %v14507_v10  ;;  %s11767_s13 = sshll.u32 %s16965_s22, 6 }
   0xf   : > { %s423_s14 = scalar_lea.vmem %s16951_s0, %s11766_s29  ;;  %12399 = vmatpush3.bf16.msra.mxu0 %v14167_v2  ;;  %453 = vst.msk [vmem:[#allocation2 + $0x80] sm:$0xff] %vm435_vm1, %v14507_v10  ;;  %455 = vst.msk [vmem:[#allocation2 + $0x90] sm:$0xff] %vm435_vm1, %v14507_v10  ;;  %s16914_s16 = scalar_lea.vmem %s16952_s1, %s11767_s13 }
  0x10   : > { %v14168_v3 = vld [vmem:[%s423_s14] sm:$0xff]   ;;  %v14169_v4 = vld [vmem:[%s423_s14 + $0x8] sm:$0xff]   ;;  %v14170_v5 = vld [vmem:[%s423_s14 + $0x10] sm:$0xff]   ;;  %454 = vst.msk [vmem:[#allocation2 + $0x88] sm:$0xf] %vm437_vm2, %v14507_v10  ;;  %s16926_s20 = scalar_lea.vmem %s16963_s12, %s11767_s13 }
  0x11   : > { %12400 = vmatprep.mubr.msk.bf16.mxu0 %vm564_vm0, %v14168_v3  ;;  %v14171_v6 = vld [vmem:[%s423_s14 + $0x18] sm:$0xff]   ;;  %456 = vst.msk [vmem:[#allocation2 + $0x98] sm:$0xf] %vm437_vm2, %v14507_v10  ;;  %458 = vst.msk [vmem:[#allocation2 + $0xa8] sm:$0xf] %vm437_vm2, %v14507_v10  ;;  %v14179_v3 = vld [vmem:[%s16957_s6 + $0x8] sm:$0xff]  }
  0x12   : > { %12401 = vmatmul.mubr.msk.bf16.vlgmr.msra.gmra.mrb[0].mxu0 %vm564_vm0, %v14169_v4  ;;  %457 = vst.msk [vmem:[#allocation2 + $0xa0] sm:$0xff] %vm435_vm1, %v14507_v10  ;;  %459 = vst.msk [vmem:[#allocation2 + $0xb0] sm:$0xff] %vm435_vm1, %v14507_v10  ;;  %v785_v56 = vld [vmem:[#allocation2 + $0x12] sm:$0xff] }
  0x13   : > { %12404 = vmatprep.mubr.msk.bf16.mxu0 %vm564_vm0, %v14170_v5  ;;  %460 = vst.msk [vmem:[#allocation2 + $0xb8] sm:$0xf] %vm437_vm2, %v14507_v10  ;;  %462 = vst.msk [vmem:[#allocation3 + $0x8] sm:$0xf] %vm437_vm2, %v14507_v10  ;;  %v14180_v4 = vld [vmem:[%s16957_s6 + $0x10] sm:$0xff]  }
  0x14   : > { %461 = vst.msk [vmem:[#allocation3] sm:$0xff] %vm435_vm1, %v14507_v10  ;;  %463 = vst.msk [vmem:[#allocation3 + $0x10] sm:$0xff] %vm435_vm1, %v14507_v10  ;;  %v765_v8 = vld [vmem:[#allocation2 + $0x11] sm:$0xff] }
  0x15   : > { %464 = vst.msk [vmem:[#allocation3 + $0x18] sm:$0xf] %vm437_vm2, %v14507_v10  ;;  %466 = vst.msk [vmem:[#allocation3 + $0x28] sm:$0xf] %vm437_vm2, %v14507_v10 }
  0x16   : > { %465 = vst.msk [vmem:[#allocation3 + $0x20] sm:$0xff] %vm435_vm1, %v14507_v10  ;;  %467 = vst.msk [vmem:[#allocation3 + $0x30] sm:$0xff] %vm435_vm1, %v14507_v10 }
  0x17   : > { %468 = vst.msk [vmem:[#allocation3 + $0x38] sm:$0xf] %vm437_vm2, %v14507_v10  ;;  %470 = vst.msk [vmem:[#allocation3 + $0x48] sm:$0xf] %vm437_vm2, %v14507_v10 }
  0x18   : > { %469 = vst.msk [vmem:[#allocation3 + $0x40] sm:$0xff] %vm435_vm1, %v14507_v10  ;;  %471 = vst.msk [vmem:[#allocation3 + $0x50] sm:$0xff] %vm435_vm1, %v14507_v10 }
  0x19   : > { %472 = vst.msk [vmem:[#allocation3 + $0x58] sm:$0xf] %vm437_vm2, %v14507_v10  ;;  %474 = vst.msk [vmem:[#allocation3 + $0x68] sm:$0xf] %vm437_vm2, %v14507_v10 }
  0x1a   : > { %12405 = vmatmul.mubr.msk.bf16.gmra.mrb[4].mxu0 %vm564_vm0, %v14171_v6  ;;  %473 = vst.msk [vmem:[#allocation3 + $0x60] sm:$0xff] %vm435_vm1, %v14507_v10  ;;  %475 = vst.msk [vmem:[#allocation3 + $0x70] sm:$0xff] %vm435_vm1, %v14507_v10 }
  0x1b   : > { %476 = vst.msk [vmem:[#allocation3 + $0x78] sm:$0xf] %vm437_vm2, %v14507_v10  ;;  %478 = vst.msk [vmem:[#allocation3 + $0x88] sm:$0xf] %vm437_vm2, %v14507_v10 }
  0x1c   : > { %477 = vst.msk [vmem:[#allocation3 + $0x80] sm:$0xff] %vm435_vm1, %v14507_v10  ;;  %479 = vst.msk [vmem:[#allocation3 + $0x90] sm:$0xff] %vm435_vm1, %v14507_v10 }
  0x1d   : > { %480 = vst.msk [vmem:[#allocation3 + $0x98] sm:$0xf] %vm437_vm2, %v14507_v10  ;;  %482 = vst.msk [vmem:[#allocation3 + $0xa8] sm:$0xf] %vm437_vm2, %v14507_v10 }
  0x1e   : > { %481 = vst.msk [vmem:[#allocation3 + $0xa0] sm:$0xff] %vm435_vm1, %v14507_v10  ;;  %483 = vst.msk [vmem:[#allocation3 + $0xb0] sm:$0xff] %vm435_vm1, %v14507_v10 }
  0x1f   : > { %484 = vst.msk [vmem:[#allocation3 + $0xb8] sm:$0xf] %vm437_vm2, %v14507_v10  ;;  %485 = vst [vmem:[#allocation4] sm:$0xff] %v14507_v10 }
  0x20   : > { %486 = vst [vmem:[#allocation4 + $0x8] sm:$0x3] %v14507_v10  ;;  %487 = vst [vmem:[#allocation4 + $0x10] sm:$0xff] %v14507_v10 }
  0x21   : > { %488 = vst [vmem:[#allocation4 + $0x18] sm:$0x3] %v14507_v10  ;;  %489 = vst [vmem:[#allocation4 + $0x20] sm:$0xff] %v14507_v10 }
  0x22   : > { %490 = vst [vmem:[#allocation4 + $0x28] sm:$0x3] %v14507_v10  ;;  %491 = vst [vmem:[#allocation4 + $0x30] sm:$0xff] %v14507_v10 }
  0x23   : > { %492 = vst [vmem:[#allocation4 + $0x38] sm:$0x3] %v14507_v10  ;;  %493 = vst [vmem:[#allocation4 + $0x40] sm:$0xff] %v14507_v10 }
  0x24   : > { %494 = vst [vmem:[#allocation4 + $0x48] sm:$0x3] %v14507_v10  ;;  %495 = vst [vmem:[#allocation4 + $0x50] sm:$0xff] %v14507_v10 }
  0x25   : > { %496 = vst [vmem:[#allocation4 + $0x58] sm:$0x3] %v14507_v10  ;;  %497 = vst [vmem:[#allocation4 + $0x60] sm:$0xff] %v14507_v10 }
  0x26   : > { %498 = vst [vmem:[#allocation4 + $0x68] sm:$0x3] %v14507_v10  ;;  %499 = vst [vmem:[#allocation4 + $0x70] sm:$0xff] %v14507_v10 }
  0x27   : > { %500 = vst [vmem:[#allocation4 + $0x78] sm:$0x3] %v14507_v10  ;;  %501 = vst [vmem:[#allocation4 + $0x80] sm:$0xff] %v14507_v10 }
  0x28   : > { %502 = vst [vmem:[#allocation4 + $0x88] sm:$0x3] %v14507_v10  ;;  %503 = vst [vmem:[#allocation4 + $0x90] sm:$0xff] %v14507_v10 }
  0x29   : > { %504 = vst [vmem:[#allocation4 + $0x98] sm:$0x3] %v14507_v10 }
  0xe5   : > { %v12402_v12 = vpop.f32.mrb[0].mxu0 }
  0xe6   : > { %v620_v13 = vadd.f32 %v12402_v12, %v10545_v11  ;;  %v611_v14 = vpop.f32.mrb[1].mxu0 }
  0xe7   : > { %v612_v15 = vadd.f32 %v10545_v11, %v611_v14  ;;  %v12403_v16 = vpop.f32.mrb[2].mxu0 }
  0xe8   : > { %v623_v17 = vadd.f32 %v12403_v16, %v10545_v11  ;;  %v614_v18 = vpop.f32.mrb[3].mxu0  ;;  %v644_v20 = vmax.f32 %v620_v13, 0.0  ;;  %v14181_v13 = vld [vmem:[%s16957_s6 + $0x18] sm:$0xff]  }
  0xe9   : > { %v615_v19 = vadd.f32 %v10545_v11, %v614_v18  ;;  %v642_v22 = vmax.f32 %v612_v15, 0.0  ;;  %v14182_v15 = vld [vmem:[%s16957_s6 + $0x40] sm:$0xff]  }
  0xea   : > { %v645_v21 = vmax.f32 %v623_v17, 0.0 }
  0xeb   : > { %v643_v23 = vmax.f32 %v615_v19, 0.0 }
  0xec   : > { %v651_v24 = vpack.c.bf16 %v645_v21, %v644_v20  ;;  %v14183_v21 = vld [vmem:[%s16957_s6 + $0x48] sm:$0xff]  }
  0xed   : > { %v12406_v25 = vpop.f32.mrb[4].mxu0  ;;  %v650_v26 = vpack.c.bf16 %v643_v23, %v642_v22  ;;  %v14184_v23 = vld [vmem:[%s16957_s6 + $0x50] sm:$0xff]  }
  0xee   : > { %v636_v27 = vadd.f32 %v12406_v25, %v10545_v11  ;;  %v627_v28 = vpop.f32.mrb[5].mxu0  ;;  %v1008_v25 = vld [vmem:[#allocation2 + $0x13] sm:$0xff] }
  0xef   : > { %v628_v29 = vadd.f32 %v10545_v11, %v627_v28  ;;  %v12407_v30 = vpop.f32.mrb[6].mxu0  ;;  %12412 = vmatprep.mubr.msk.bf16.mxu1 %vm677_vm3, %v650_v26 }
  0xf0   : > { %v639_v31 = vadd.f32 %v12407_v30, %v10545_v11  ;;  %v630_v32 = vpop.f32.mrb[7].mxu0  ;;  %12413 = vmatmul.mubr.msk.bf16.vlgmr.msra.gmra.mrb[0].mxu1 %vm677_vm3, %v651_v24  ;;  %v648_v34 = vmax.f32 %v636_v27, 0.0 }
  0xf1   : > { %v631_v33 = vadd.f32 %v10545_v11, %v630_v32  ;;  %12421 = vmatpush3.bf16.msra.mxu1 %v14609_v9  ;;  %v646_v36 = vmax.f32 %v628_v29, 0.0  ;;  %v14185_v29 = vld [vmem:[%s16957_s6 + $0x58] sm:$0xff]  }
  0xf2   : > { %v649_v35 = vmax.f32 %v639_v31, 0.0  ;;  %12422 = vmatprep.subr.bf16.mxu1 %v14175_v40  ;;  %v14186_v31 = vld [vmem:[%s16957_s6 + $0x60] sm:$0xff]  }
  0xf3   : > { %v647_v37 = vmax.f32 %v631_v33, 0.0 }
  0xf4   : > { %v653_v38 = vpack.c.bf16 %v649_v35, %v648_v34 }
  0xf5   : > { %v652_v39 = vpack.c.bf16 %v647_v37, %v646_v36  ;;  %12423 = vmatpush3.bf16.msra.mxu1 %v14175_v40  ;;  %v14187_v37 = vld [vmem:[%s16957_s6 + $0x68] sm:$0xff]  }
  0xf6   : > { %12424 = vmatprep.subr.bf16.mxu1 %v14176_v41 }
  0xf7   : > { %12416 = vmatprep.mubr.msk.bf16.mxu1 %vm677_vm3, %v652_v39  ;;  %v14188_v39 = vld [vmem:[%s16957_s6 + $0x70] sm:$0xff]  }
  0xf8   : > { %12417 = vmatmul.mubr.msk.bf16.gmra.mrb[4].mxu1 %vm677_vm3, %v653_v38 }
  0xf9   : > { %12425 = vmatpush3.bf16.msra.mxu1 %v14176_v41 }
  0xfa   : > { %12426 = vmatprep.subr.bf16.mxu1 %v14177_v42 }
  0xfd   : > { %12427 = vmatpush3.bf16.msra.mxu1 %v14177_v42 }
  0xfe   : > { %12436 = vmatprep.subr.bf16.mxu1 %v14178_v43 }
 0x1c3   : > { %v12414_v45 = vpop.f32.mrb[0].mxu1 }
 0x1c4   : > { %v14751_v46 = vadd.f32 %v12414_v45, %v10557_v44  ;;  %v724_v47 = vpop.f32.mrb[1].mxu1  ;;  %v14190_v45 = vld [vmem:[%s16957_s6 + $0x80] sm:$0xff]  }
 0x1c5   : > { %v14753_v48 = vadd.f32 %v10557_v44, %v724_v47  ;;  %v12415_v49 = vpop.f32.mrb[2].mxu1 }
 0x1c6   : > { %758 = vst.msk [vmem:[#allocation2 + $0x42] sm:$0xff] %vm435_vm1, %v14751_v46  ;;  %v14757_v50 = vadd.f32 %v12415_v49, %v10557_v44  ;;  %v727_v51 = vpop.f32.mrb[3].mxu1  ;;  %v14191_v49 = vld [vmem:[%s16957_s6 + $0x88] sm:$0xff]  }
 0x1c7   : > { %756 = vst.msk [vmem:[#allocation2 + $0x22] sm:$0xff] %vm435_vm1, %v14753_v48  ;;  %v14761_v52 = vadd.f32 %v10557_v44, %v727_v51 }
 0x1c8   : > { %759 = vst.msk [vmem:[#allocation2 + $0x52] sm:$0xff] %vm435_vm1, %v14757_v50 }
 0x1c9   : > { %757 = vst.msk [vmem:[#allocation2 + $0x32] sm:$0xff] %vm435_vm1, %v14761_v52 }
 0x1cb   : > { %v12418_v53 = vpop.f32.mrb[4].mxu1 }
 0x1cc   : > { %v14767_v54 = vadd.f32 %v12418_v53, %v10557_v44  ;;  %v740_v55 = vpop.f32.mrb[5].mxu1  ;;  %v14192_v53 = vld [vmem:[%s16957_s6 + $0x90] sm:$0xff]  }
 0x1cd   : > { %v14769_v57 = vadd.f32 %v10557_v44, %v740_v55  ;;  %v12419_v58 = vpop.f32.mrb[6].mxu1  ;;  %v14786_v1 = vld [vmem:[#allocation2 + $0x42] sm:$0xff] }
 0x1ce   : > { %762 = vst.msk [vmem:[#allocation2 + $0x82] sm:$0xff] %vm435_vm1, %v14767_v54  ;;  %v14773_v59 = vadd.f32 %v12419_v58, %v10557_v44  ;;  %v743_v60 = vpop.f32.mrb[7].mxu1  ;;  %v14775_v61 = vld [vmem:[#allocation2 + $0x22] sm:$0xff]  ;;  %v14193_v58 = vld [vmem:[%s16957_s6 + $0x98] sm:$0xff]  }
 0x1cf   : > { %760 = vst.msk [vmem:[#allocation2 + $0x62] sm:$0xff] %vm435_vm1, %v14769_v57  ;;  %v14779_v62 = vadd.f32 %v10557_v44, %v743_v60  ;;  %v793_v63 = vpack.c.bf16 %v14775_v61, %v785_v56  ;;  %v14803_v5 = vld [vmem:[#allocation2 + $0x52] sm:$0xff]  ;;  %v14811_v9 = vld [vmem:[#allocation2 + $0x21] sm:$0xff] }
 0x1d0   : > { %763 = vst.msk [vmem:[#allocation2 + $0x92] sm:$0xff] %vm435_vm1, %v14773_v59  ;;  %v14784_v0 = vld [vmem:[#allocation2 + $0x32] sm:$0xff]  ;;  %v773_v14 = vpack.c.bf16 %v14811_v9, %v765_v8  ;;  %v768_v18 = vld [vmem:[#allocation2 + $0x41] sm:$0xff] }
 0x1d1   : > { %761 = vst.msk [vmem:[#allocation2 + $0x72] sm:$0xff] %vm435_vm1, %v14779_v62  ;;  %12428 = vmatprep.mubr.msk.bf16.mxu1 %vm435_vm1, %v793_v63  ;;  %v14793_v2 = vpack.c.bf16 %v14786_v1, %v14784_v0  ;;  %v767_v16 = vld [vmem:[#allocation2 + $0x31] sm:$0xff]  ;;  %v14847_v26 = vld [vmem:[#allocation2 + $0x23] sm:$0xff]  ;;  %v1276_v60 = vpack.c.bf16 %v14784_v0, %v14775_v61 }
 0x1d2   : > { %v14833_v19 = vpack.c.bf16 %v768_v18, %v767_v16  ;;  %v769_v20 = vld [vmem:[#allocation2 + $0x51] sm:$0xff]  ;;  %v1016_v30 = vpack.c.bf16 %v14847_v26, %v1008_v25  ;;  %v14865_v34 = vld [vmem:[#allocation2 + $0x43] sm:$0xff]  ;;  %v1146_v44 = vpack.c.bf16 %v767_v16, %v14811_v9 }
 0x1d3   : > { %12429 = vmatmul.mubr.msk.bf16.vlgmr.msra.gmra.mrb[8].mxu1 %vm435_vm1, %v14793_v2  ;;  %v14861_v32 = vld [vmem:[#allocation2 + $0x33] sm:$0xff]  ;;  %v1147_v47 = vpack.c.bf16 %v769_v20, %v768_v18  ;;  %v14194_v63 = vld [vmem:[%s16957_s6 + $0xa0] sm:$0xff]   ;;  %v14207_v25 = vld [vmem:[%s16957_s6 + $0x108] sm:$0xff]  }
 0x1d4   : > { %12437 = vmatpush3.bf16.msra.mxu1 %v14178_v43  ;;  %v14869_v35 = vpack.c.bf16 %v14865_v34, %v14861_v32  ;;  %v14871_v36 = vld [vmem:[#allocation2 + $0x53] sm:$0xff]  ;;  %v14198_v9 = vld [vmem:[%s16957_s6 + $0xc0] sm:$0xff]  }
 0x1d5   : > { %12438 = vmatprep.subr.bf16.mxu1 %v14179_v3  ;;  %v14815_v11 = vld [vmem:[#allocation2 + $0x82] sm:$0xff]  ;;  %v14189_v43 = vld [vmem:[%s16957_s6 + $0x78] sm:$0xff]   ;;  %v14196_v0 = vld [vmem:[%s16957_s6 + $0xb0] sm:$0xff]  }
 0x1d6   : > { %v14805_v6 = vld [vmem:[#allocation2 + $0x62] sm:$0xff] }
 0x1d7   : > { %v14809_v7 = vpack.c.bf16 %v14805_v6, %v14803_v5  ;;  %v770_v17 = vld [vmem:[#allocation2 + $0x61] sm:$0xff]  ;;  %v14910_v55 = vld [vmem:[#allocation2 + $0x91] sm:$0xff] }
 0x1d8   : > { %12439 = vmatpush3.bf16.msra.mxu1 %v14179_v3  ;;  %v14813_v10 = vld [vmem:[#allocation2 + $0x72] sm:$0xff]  ;;  %v14838_v22 = vpack.c.bf16 %v770_v17, %v769_v20  ;;  %v772_v27 = vld [vmem:[#allocation2 + $0x81] sm:$0xff]  ;;  %v1277_v3 = vpack.c.bf16 %v14803_v5, %v14786_v1 }
 0x1d9   : > { %12432 = vmatprep.mubr.msk.bf16.mxu1 %vm435_vm1, %v14809_v7  ;;  %12440 = vmatprep.subr.bf16.mxu1 %v14180_v4  ;;  %v14821_v12 = vpack.c.bf16 %v14815_v11, %v14813_v10  ;;  %v771_v24 = vld [vmem:[#allocation2 + $0x71] sm:$0xff]  ;;  %v14863_v33 = vld [vmem:[#allocation2 + $0x63] sm:$0xff]  ;;  %v1149_v56 = vpack.c.bf16 %v14910_v55, %v772_v27  ;;  %v1278_v61 = vpack.c.bf16 %v14813_v10, %v14805_v6 }
 0x1da   : > { %v14849_v28 = vpack.c.bf16 %v772_v27, %v771_v24  ;;  %v14878_v38 = vpack.c.bf16 %v14863_v33, %v14871_v36  ;;  %v1014_v40 = vld [vmem:[#allocation2 + $0x73] sm:$0xff]  ;;  %v14887_v41 = vld [vmem:[#allocation2 + $0x83] sm:$0xff]  ;;  %v1148_v51 = vpack.c.bf16 %v771_v24, %v770_v17  ;;  %v1406_v6 = vpack.c.bf16 %v14861_v32, %v14847_v26 }
 0x1db   : > { %12433 = vmatmul.mubr.msk.bf16.gmra.mrb[12].mxu1 %vm435_vm1, %v14821_v12  ;;  %v14890_v42 = vpack.c.bf16 %v14887_v41, %v1014_v40  ;;  %v14935_v8 = vld [vmem:[#allocation2 + $0x92] sm:$0xff]  ;;  %v1407_v10 = vpack.c.bf16 %v14871_v36, %v14865_v34  ;;  %v14202_v18 = vld [vmem:[%s16957_s6 + $0xe0] sm:$0xff]   ;;  %v14203_v20 = vld [vmem:[%s16957_s6 + $0xe8] sm:$0xff]  }
 0x1dc   : > { %12441 = vmatpush3.bf16.msra.mxu1 %v14180_v4  ;;  %12444 = vmatprep.mubr.msk.bf16.mxu1 %vm435_vm1, %v773_v14  ;;  %v14195_v4 = vld [vmem:[%s16957_s6 + $0xa8] sm:$0xff]   ;;  %v1279_v1 = vpack.c.bf16 %v14935_v8, %v14815_v11  ;;  %v14197_v5 = vld [vmem:[%s16957_s6 + $0xb8] sm:$0xff]   ;;  %v14200_v14 = vld [vmem:[%s16957_s6 + $0xd0] sm:$0xff]  }
 0x1dd   : > { %12442 = vmatprep.subr.bf16.mxu1 %v14181_v13  ;;  %v14199_v11 = vld [vmem:[%s16957_s6 + $0xc8] sm:$0xff]   ;;  %v14201_v17 = vld [vmem:[%s16957_s6 + $0xd8] sm:$0xff]   ;;  %v14215_v34 = vld [vmem:[%s16957_s6 + $0x150] sm:$0xff]  }
 0x1de   : > { %v14205_v24 = vld [vmem:[%s16957_s6 + $0xf8] sm:$0xff]   ;;  %v1666_v26 = vld [vmem:[#allocation2 + $0xa2] sm:$0xff] }
 0x1df   : > { %v1670_v27 = vpack.c.bf16 %v1666_v26, %v14935_v8  ;;  %v14213_v32 = vld [vmem:[%s16957_s6 + $0x148] sm:$0xff]   ;;  %v14217_v36 = vld [vmem:[%s16957_s6 + $0x158] sm:$0xff]  }
 0x1e0   : > { %12443 = vmatpush3.bf16.msra.mxu1 %v14181_v13  ;;  %v1408_v13 = vpack.c.bf16 %v1014_v40, %v14863_v33  ;;  %v14214_v33 = vld [vmem:[%s16957_s6 + $0x130] sm:$0xff]  }
 0x1e1   : > { %12452 = vmatprep.subr.bf16.mxu1 %v14182_v15  ;;  %v1971_v8 = vld [vmem:[#allocation3 + $0x12] sm:$0xff] }
 0x1e3   : > { %12445 = vmatmul.mubr.msk.bf16.vlgmr.msra.gmra.mrb[8].mxu1 %vm435_vm1, %v14833_v19 }
 0x1e4   : > { %12453 = vmatpush3.bf16.msra.mxu1 %v14182_v15  ;;  %12448 = vmatprep.mubr.msk.bf16.mxu1 %vm435_vm1, %v14838_v22  ;;  %v1405_v15 = vld [vmem:[#allocation2 + $0x93] sm:$0xff] }
 0x1e5   : > { %12454 = vmatprep.subr.bf16.mxu1 %v14183_v21  ;;  %v1409_v16 = vpack.c.bf16 %v1405_v15, %v14887_v41 }
 0x1e8   : > { %12455 = vmatpush3.bf16.msra.mxu1 %v14183_v21  ;;  %v1536_v21 = vld [vmem:[#allocation2 + $0xa1] sm:$0xff] }
 0x1e9   : > { %12456 = vmatprep.subr.bf16.mxu1 %v14184_v23 }
 0x1eb   : > { %12449 = vmatmul.mubr.msk.bf16.gmra.mrb[12].mxu1 %vm435_vm1, %v14849_v28 }
 0x1ec   : > { %12457 = vmatpush3.bf16.msra.mxu1 %v14184_v23  ;;  %12460 = vmatprep.mubr.msk.bf16.mxu1 %vm435_vm1, %v1016_v30  ;;  %v1540_v23 = vpack.c.bf16 %v1536_v21, %v14910_v55  ;;  %v14211_v30 = vld [vmem:[%s16957_s6 + $0x140] sm:$0xff]  }
 0x1ed   : > { %12458 = vmatprep.subr.bf16.mxu1 %v14185_v29 }
 0x1f0   : > { %12459 = vmatpush3.bf16.msra.mxu1 %v14185_v29  ;;  %v14210_v29 = vld [vmem:[%s16957_s6 + $0x120] sm:$0xff]  }
 0x1f1   : > { %12468 = vmatprep.subr.bf16.mxu1 %v14186_v31  ;;  %12580 = vmatprep.subr.bf16.mxu0 %v14210_v29 }
 0x1f2   : > { %12581 = vmatpush3.bf16.msra.mxu0 %v14210_v29 }
 0x1f3   : > { %12461 = vmatmul.mubr.msk.bf16.vlgmr.msra.gmra.mrb[8].mxu1 %vm435_vm1, %v14869_v35 }
 0x1f4   : > { %12469 = vmatpush3.bf16.msra.mxu1 %v14186_v31  ;;  %12464 = vmatprep.mubr.msk.bf16.mxu1 %vm435_vm1, %v14878_v38  ;;  %v14212_v31 = vld [vmem:[%s16957_s6 + $0x128] sm:$0xff]  }
 0x1f5   : > { %12470 = vmatprep.subr.bf16.mxu1 %v14187_v37  ;;  %12582 = vmatprep.subr.bf16.mxu0 %v14212_v31 }
 0x1f6   : > { %12583 = vmatpush3.bf16.msra.mxu0 %v14212_v31 }
 0x1f7   : > { %12584 = vmatprep.subr.bf16.mxu0 %v14214_v33 }
 0x1f8   : > { %12471 = vmatpush3.bf16.msra.mxu1 %v14187_v37  ;;  %v14218_v37 = vld [vmem:[%s16957_s6 + $0x160] sm:$0xff]  }
 0x1f9   : > { %12472 = vmatprep.subr.bf16.mxu1 %v14188_v39 }
 0x1fa   : > { %12585 = vmatpush3.bf16.msra.mxu0 %v14214_v33 }
 0x1fb   : > { %12465 = vmatmul.mubr.msk.bf16.gmra.mrb[12].mxu1 %vm435_vm1, %v14890_v42 }
 0x1fc   : > { %12473 = vmatpush3.bf16.msra.mxu1 %v14188_v39  ;;  %12476 = vmatprep.mubr.msk.bf16.mxu1 %vm435_vm1, %v1146_v44 }
 0x1fd   : > { %12474 = vmatprep.subr.bf16.mxu1 %v14189_v43 }
 0x200   : > { %12475 = vmatpush3.bf16.msra.mxu1 %v14189_v43 }
 0x201   : > { %12484 = vmatprep.subr.bf16.mxu1 %v14190_v45 }
 0x203   : > { %12477 = vmatmul.mubr.msk.bf16.vlgmr.msra.gmra.mrb[8].mxu1 %vm435_vm1, %v1147_v47 }
 0x204   : > { %12485 = vmatpush3.bf16.msra.mxu1 %v14190_v45  ;;  %12480 = vmatprep.mubr.msk.bf16.mxu1 %vm435_vm1, %v1148_v51 }
 0x205   : > { %12486 = vmatprep.subr.bf16.mxu1 %v14191_v49 }
 0x208   : > { %12487 = vmatpush3.bf16.msra.mxu1 %v14191_v49 }
 0x209   : > { %12488 = vmatprep.subr.bf16.mxu1 %v14192_v53 }
 0x20b   : > { %12481 = vmatmul.mubr.msk.bf16.gmra.mrb[12].mxu1 %vm435_vm1, %v1149_v56 }
 0x20c   : > { %12489 = vmatpush3.bf16.msra.mxu1 %v14192_v53  ;;  %12492 = vmatprep.mubr.msk.bf16.mxu1 %vm435_vm1, %v1276_v60 }
 0x20d   : > { %12490 = vmatprep.subr.bf16.mxu1 %v14193_v58 }
 0x210   : > { %12491 = vmatpush3.bf16.msra.mxu1 %v14193_v58 }
 0x211   : > { %12500 = vmatprep.subr.bf16.mxu1 %v14194_v63 }
 0x213   : > { %12493 = vmatmul.mubr.msk.bf16.vlgmr.msra.gmra.mrb[8].mxu1 %vm435_vm1, %v1277_v3 }
 0x214   : > { %12501 = vmatpush3.bf16.msra.mxu1 %v14194_v63  ;;  %12496 = vmatprep.mubr.msk.bf16.mxu1 %vm435_vm1, %v1278_v61 }
 0x215   : > { %12502 = vmatprep.subr.bf16.mxu1 %v14195_v4 }
 0x218   : > { %12503 = vmatpush3.bf16.msra.mxu1 %v14195_v4 }
 0x219   : > { %12504 = vmatprep.subr.bf16.mxu1 %v14196_v0 }
 0x21b   : > { %12497 = vmatmul.mubr.msk.bf16.gmra.mrb[12].mxu1 %vm435_vm1, %v1279_v1  ;;  %v1950_v1 = vld [vmem:[#allocation3 + $0x11] sm:$0xff] }
 0x21c   : > { %12505 = vmatpush3.bf16.msra.mxu1 %v14196_v0  ;;  %12508 = vmatprep.mubr.msk.bf16.mxu1 %vm435_vm1, %v1406_v6 }
 0x21d   : > { %12506 = vmatprep.subr.bf16.mxu1 %v14197_v5 }
 0x220   : > { %12507 = vmatpush3.bf16.msra.mxu1 %v14197_v5 }
 0x221   : > { %12516 = vmatprep.subr.bf16.mxu1 %v14198_v9 }
 0x223   : > { %12509 = vmatmul.mubr.msk.bf16.vlgmr.msra.gmra.mrb[8].mxu1 %vm435_vm1, %v1407_v10 }
 0x224   : > { %12517 = vmatpush3.bf16.msra.mxu1 %v14198_v9  ;;  %12512 = vmatprep.mubr.msk.bf16.mxu1 %vm435_vm1, %v1408_v13 }
 0x225   : > { %12518 = vmatprep.subr.bf16.mxu1 %v14199_v11 }
 0x228   : > { %12519 = vmatpush3.bf16.msra.mxu1 %v14199_v11 }
 0x229   : > { %12520 = vmatprep.subr.bf16.mxu1 %v14200_v14 }
 0x22b   : > { %12513 = vmatmul.mubr.msk.bf16.gmra.mrb[12].mxu1 %vm435_vm1, %v1409_v16 }
 0x22c   : > { %12521 = vmatpush3.bf16.msra.mxu1 %v14200_v14  ;;  %12524 = vmatprep.mubr.msk.bf16.mxu1 %vm435_vm1, %v14833_v19  ;;  %v14204_v19 = vld [vmem:[%s16957_s6 + $0xf0] sm:$0xff]  }
 0x22d   : > { %12522 = vmatprep.subr.bf16.mxu1 %v14201_v17 }
 0x230   : > { %12523 = vmatpush3.bf16.msra.mxu1 %v14201_v17 }
 0x231   : > { %12532 = vmatprep.subr.bf16.mxu1 %v14202_v18 }
 0x233   : > { %12525 = vmatmul.mubr.msk.bf16.vlgmr.msra.gmra.mrb[8].mxu1 %vm435_vm1, %v14838_v22  ;;  %v14206_v22 = vld [vmem:[%s16957_s6 + $0x100] sm:$0xff]  }
 0x234   : > { %12533 = vmatpush3.bf16.msra.mxu1 %v14202_v18  ;;  %12528 = vmatprep.mubr.msk.bf16.mxu1 %vm435_vm1, %v14849_v28  ;;  %v14209_v28 = vld [vmem:[%s16957_s6 + $0x118] sm:$0xff]  }
 0x235   : > { %12534 = vmatprep.subr.bf16.mxu1 %v14203_v20 }
 0x238   : > { %12535 = vmatpush3.bf16.msra.mxu1 %v14203_v20 }
 0x239   : > { %12536 = vmatprep.subr.bf16.mxu1 %v14204_v19 }
 0x23b   : > { %12529 = vmatmul.mubr.msk.bf16.gmra.mrb[12].mxu1 %vm435_vm1, %v1540_v23  ;;  %v14219_v23 = vld [vmem:[%s16957_s6 + $0x168] sm:$0xff]  }
 0x23c   : > { %12537 = vmatpush3.bf16.msra.mxu1 %v14204_v19  ;;  %12540 = vmatprep.mubr.msk.bf16.mxu1 %vm435_vm1, %v14793_v2  ;;  %v14208_v2 = vld [vmem:[%s16957_s6 + $0x110] sm:$0xff]  }
 0x23d   : > { %12538 = vmatprep.subr.bf16.mxu1 %v14205_v24 }
 0x240   : > { %12539 = vmatpush3.bf16.msra.mxu1 %v14205_v24 }
 0x241   : > { %12548 = vmatprep.subr.bf16.mxu1 %v14206_v22 }
 0x243   : > { %12541 = vmatmul.mubr.msk.bf16.vlgmr.msra.gmra.mrb[8].mxu1 %vm435_vm1, %v14809_v7  ;;  %v1796_v7 = vld [vmem:[#allocation2 + $0xa3] sm:$0xff] }
 0x244   : > { %12549 = vmatpush3.bf16.msra.mxu1 %v14206_v22  ;;  %12544 = vmatprep.mubr.msk.bf16.mxu1 %vm435_vm1, %v14821_v12  ;;  %v1800_v12 = vpack.c.bf16 %v1796_v7, %v1405_v15  ;;  %v14220_v22 = vld [vmem:[%s16957_s6 + $0x170] sm:$0xff]  }
 0x245   : > { %12550 = vmatprep.subr.bf16.mxu1 %v14207_v25 }
 0x248   : > { %12551 = vmatpush3.bf16.msra.mxu1 %v14207_v25 }
 0x249   : > { %12552 = vmatprep.subr.bf16.mxu1 %v14208_v2 }
 0x24b   : > { %12545 = vmatmul.mubr.msk.bf16.gmra.mrb[12].mxu1 %vm435_vm1, %v1670_v27 }
 0x24c   : > { %12553 = vmatpush3.bf16.msra.mxu1 %v14208_v2  ;;  %12556 = vmatprep.mubr.msk.bf16.mxu1 %vm435_vm1, %v14869_v35  ;;  %v14216_v35 = vld [vmem:[%s16957_s6 + $0x138] sm:$0xff]  }
 0x24d   : > { %12554 = vmatprep.subr.bf16.mxu1 %v14209_v28  ;;  %12586 = vmatprep.subr.bf16.mxu0 %v14216_v35 }
 0x24e   : > { %12587 = vmatpush3.bf16.msra.mxu0 %v14216_v35  ;;  %v14221_v35 = vld [vmem:[%s16957_s6 + $0x178] sm:$0xff]  }
 0x24f   : > { %12596 = vmatprep.subr.bf16.mxu0 %v14218_v37 }
 0x250   : > { %12555 = vmatpush3.bf16.msra.mxu1 %v14209_v28 }
 0x251   : > { %12564 = vmatprep.subr.bf16.mxu1 %v14211_v30 }
 0x253   : > { %12557 = vmatmul.mubr.msk.bf16.vlgmr.msra.gmra.mrb[8].mxu1 %vm435_vm1, %v14878_v38  ;;  %v10700_v38 = vld [vmem:[%s16958_s7] ss:$0 sm:$0xff] }
 0x254   : > { %12560 = vmatprep.mubr.msk.bf16.mxu1 %vm435_vm1, %v14890_v42  ;;  %12565 = vmatpush3.bf16.msra.mxu1 %v14211_v30 }
 0x255   : > { %12566 = vmatprep.subr.bf16.mxu1 %v14213_v32 }
 0x258   : > { %12567 = vmatpush3.bf16.msra.mxu1 %v14213_v32 }
 0x259   : > { %12568 = vmatprep.subr.bf16.mxu1 %v14215_v34 }
 0x25b   : > { %12561 = vmatmul.mubr.msk.bf16.gmra.mrb[12].mxu1 %vm435_vm1, %v1800_v12  ;;  %v2194_v12 = vld [vmem:[#allocation3 + $0x13] sm:$0xff] }
 0x25c   : > { %12569 = vmatpush3.bf16.msra.mxu1 %v14215_v34 }
 0x25d   : > { %12570 = vmatprep.subr.bf16.mxu1 %v14217_v36 }
 0x260   : > { %12571 = vmatpush3.bf16.msra.mxu1 %v14217_v36 }
 0x326   : > { %v12558_v39 = vpop.f32.mrb[8].mxu1 }
 0x327   : > { %v1926_v40 = vadd.f32 %v12558_v39, %v10700_v38  ;;  %v1880_v41 = vpop.f32.mrb[9].mxu1 }
 0x328   : > { %v1924_v42 = vadd.f32 %v10700_v38, %v1880_v41  ;;  %v12559_v43 = vpop.f32.mrb[10].mxu1 }
 0x329   : > { %v1934_v44 = vmax.f32 %v1926_v40, 0.0  ;;  %v1927_v45 = vadd.f32 %v12559_v43, %v10700_v38  ;;  %v1883_v47 = vpop.f32.mrb[11].mxu1  ;;  %v14223_v43 = vld [vmem:[%s16957_s6 + $0x188] sm:$0xff]  }
 0x32a   : > { %v1932_v49 = vmax.f32 %v1924_v42, 0.0  ;;  %v1925_v51 = vadd.f32 %v10700_v38, %v1883_v47 }
 0x32b   : > { %1943 = vst.msk [vmem:[#allocation3 + $0x42] sm:$0xff] %vm435_vm1, %v1934_v44  ;;  %v1935_v53 = vmax.f32 %v1927_v45, 0.0  ;;  %v14224_v45 = vld [vmem:[%s16957_s6 + $0x190] sm:$0xff]  }
 0x32c   : > { %1941 = vst.msk [vmem:[#allocation3 + $0x22] sm:$0xff] %vm435_vm1, %v1932_v49  ;;  %v1933_v55 = vmax.f32 %v1925_v51, 0.0 }
 0x32d   : > { %1944 = vst.msk [vmem:[#allocation3 + $0x52] sm:$0xff] %vm435_vm1, %v1935_v53  ;;  %v14225_v53 = vld [vmem:[%s16957_s6 + $0x198] sm:$0xff]  }
 0x32e   : > { %1942 = vst.msk [vmem:[#allocation3 + $0x32] sm:$0xff] %vm435_vm1, %v1933_v55  ;;  %v12562_v56 = vpop.f32.mrb[12].mxu1 }
 0x32f   : > { %v1930_v58 = vadd.f32 %v12562_v56, %v10700_v38  ;;  %v1896_v60 = vpop.f32.mrb[13].mxu1  ;;  %v14226_v56 = vld [vmem:[%s16957_s6 + $0x1a0] sm:$0xff]  }
 0x330   : > { %v1928_v63 = vadd.f32 %v10700_v38, %v1896_v60  ;;  %v12563_v3 = vpop.f32.mrb[14].mxu1  ;;  %v14227_v60 = vld [vmem:[%s16957_s6 + $0x1a8] sm:$0xff]  }
 0x331   : > { %v1938_v4 = vmax.f32 %v1930_v58, 0.0  ;;  %v1931_v61 = vadd.f32 %v12563_v3, %v10700_v38  ;;  %v1899_v0 = vpop.f32.mrb[15].mxu1  ;;  %v14228_v3 = vld [vmem:[%s16957_s6 + $0x1b0] sm:$0xff]  }
 0x332   : > { %v1936_v5 = vmax.f32 %v1928_v63, 0.0  ;;  %v1929_v6 = vadd.f32 %v10700_v38, %v1899_v0  ;;  %v15054_v16 = vld [vmem:[#allocation3 + $0x42] sm:$0xff]  ;;  %v14229_v0 = vld [vmem:[%s16957_s6 + $0x1b8] sm:$0xff]  }
 0x333   : > { %1947 = vst.msk [vmem:[#allocation3 + $0x82] sm:$0xff] %vm435_vm1, %v1938_v4  ;;  %v1939_v9 = vmax.f32 %v1931_v61, 0.0  ;;  %v15047_v10 = vld [vmem:[#allocation3 + $0x22] sm:$0xff] }
 0x334   : > { %v15049_v11 = vld [vmem:[#allocation3 + $0x21] sm:$0xff]  ;;  %1945 = vst.msk [vmem:[#allocation3 + $0x62] sm:$0xff] %vm435_vm1, %v1936_v5  ;;  %v1937_v13 = vmax.f32 %v1929_v6, 0.0  ;;  %v1979_v14 = vpack.c.bf16 %v15047_v10, %v1971_v8  ;;  %v15081_v24 = vld [vmem:[#allocation3 + $0x52] sm:$0xff] }
 0x335   : > { %v1958_v15 = vpack.c.bf16 %v15049_v11, %v1950_v1  ;;  %1948 = vst.msk [vmem:[#allocation3 + $0x92] sm:$0xff] %vm435_vm1, %v1939_v9  ;;  %v15057_v17 = vld [vmem:[#allocation3 + $0x32] sm:$0xff]  ;;  %v15061_v20 = vld [vmem:[#allocation3 + $0x41] sm:$0xff]  ;;  %v2463_v5 = vpack.c.bf16 %v15081_v24, %v15054_v16 }
 0x336   : > { %v15059_v18 = vld [vmem:[#allocation3 + $0x31] sm:$0xff]  ;;  %1946 = vst.msk [vmem:[#allocation3 + $0x72] sm:$0xff] %vm435_vm1, %v1937_v13  ;;  %12572 = vmatprep.mubr.msk.bf16.mxu1 %vm435_vm1, %v1979_v14  ;;  %v15068_v19 = vpack.c.bf16 %v15054_v16, %v15057_v17  ;;  %v15096_v29 = vld [vmem:[#allocation3 + $0x23] sm:$0xff]  ;;  %v2462_v8 = vpack.c.bf16 %v15057_v17, %v15047_v10 }
 0x337   : > { %12588 = vmatprep.mubr.msk.bf16.mxu0 %vm435_vm1, %v1958_v15  ;;  %v15072_v21 = vpack.c.bf16 %v15061_v20, %v15059_v18  ;;  %v1954_v2 = vld [vmem:[#allocation3 + $0x51] sm:$0xff]  ;;  %v2202_v36 = vpack.c.bf16 %v15096_v29, %v2194_v12  ;;  %v15126_v40 = vld [vmem:[#allocation3 + $0x43] sm:$0xff]  ;;  %v2332_v55 = vpack.c.bf16 %v15059_v18, %v15049_v11 }
 0x338   : > { %12573 = vmatmul.mubr.msk.bf16.vlgmr.msra.gmra.mrb[16].mxu1 %vm435_vm1, %v15068_v19  ;;  %v15122_v38 = vld [vmem:[#allocation3 + $0x33] sm:$0xff]  ;;  %v2333_v58 = vpack.c.bf16 %v1954_v2, %v15061_v20  ;;  %v14230_v1 = vld [vmem:[%s16957_s6 + $0x1c0] sm:$0xff]   ;;  %v14231_v6 = vld [vmem:[%s16957_s6 + $0x1c8] sm:$0xff]  }
 0x339   : > { %12589 = vmatmul.mubr.msk.bf16.vlgmr.msra.gmra.mrb[8].mxu0 %vm435_vm1, %v15072_v21  ;;  %v15130_v41 = vpack.c.bf16 %v15126_v40, %v15122_v38  ;;  %v15132_v42 = vld [vmem:[#allocation3 + $0x53] sm:$0xff]  ;;  %v2592_v15 = vpack.c.bf16 %v15122_v38, %v15096_v29  ;;  %v14234_v16 = vld [vmem:[%s16957_s6 + $0x1e0] sm:$0xff]   ;;  %v14235_v18 = vld [vmem:[%s16957_s6 + $0x1e8] sm:$0xff]  }
 0x33a   : > { %12597 = vmatpush3.bf16.msra.mxu0 %v14218_v37  ;;  %v15094_v7 = vld [vmem:[#allocation3 + $0x82] sm:$0xff]  ;;  %v14232_v10 = vld [vmem:[%s16957_s6 + $0x1d0] sm:$0xff]   ;;  %v14233_v14 = vld [vmem:[%s16957_s6 + $0x1d8] sm:$0xff]   ;;  %v2593_v17 = vpack.c.bf16 %v15132_v42, %v15126_v40 }
 0x33b   : > { %12598 = vmatprep.subr.bf16.mxu0 %v14219_v23  ;;  %v15086_v25 = vld [vmem:[#allocation3 + $0x62] sm:$0xff]  ;;  %v14241_v29 = vld [vmem:[%s16957_s6 + $0x218] sm:$0xff]  }
 0x33c   : > { %v1955_v26 = vld [vmem:[#allocation3 + $0x61] sm:$0xff]  ;;  %v15090_v27 = vpack.c.bf16 %v15086_v25, %v15081_v24  ;;  %v15173_v4 = vld [vmem:[#allocation3 + $0x91] sm:$0xff] }
 0x33d   : > { %v15092_v28 = vpack.c.bf16 %v1955_v26, %v1954_v2  ;;  %v15098_v30 = vld [vmem:[#allocation3 + $0x72] sm:$0xff]  ;;  %v1957_v32 = vld [vmem:[#allocation3 + $0x81] sm:$0xff] }
 0x33e   : > { %12599 = vmatpush3.bf16.msra.mxu0 %v14219_v23  ;;  %v1956_v31 = vld [vmem:[#allocation3 + $0x71] sm:$0xff]  ;;  %12576 = vmatprep.mubr.msk.bf16.mxu1 %vm435_vm1, %v15090_v27  ;;  %v15106_v33 = vpack.c.bf16 %v15094_v7, %v15098_v30  ;;  %v14222_v37 = vld [vmem:[%s16957_s6 + $0x180] sm:$0xff]   ;;  %v2335_v61 = vpack.c.bf16 %v15173_v4, %v1957_v32  ;;  %v2464_v9 = vpack.c.bf16 %v15098_v30, %v15086_v25  ;;  %v14243_v30 = vld [vmem:[%s16957_s6 + $0x228] sm:$0xff]  }
 0x33f   : > { %12592 = vmatprep.mubr.msk.bf16.mxu0 %vm435_vm1, %v15092_v28  ;;  %v15108_v34 = vpack.c.bf16 %v1957_v32, %v1956_v31  ;;  %12600 = vmatprep.subr.bf16.mxu0 %v14220_v22  ;;  %v15124_v39 = vld [vmem:[#allocation3 + $0x63] sm:$0xff]  ;;  %v2200_v47 = vld [vmem:[#allocation3 + $0x73] sm:$0xff]  ;;  %v2334_v63 = vpack.c.bf16 %v1956_v31, %v1955_v26 }
 0x340   : > { %12577 = vmatmul.mubr.msk.bf16.gmra.mrb[20].mxu1 %vm435_vm1, %v15106_v33  ;;  %v15139_v44 = vpack.c.bf16 %v15124_v39, %v15132_v42  ;;  %v15148_v49 = vld [vmem:[#allocation3 + $0x83] sm:$0xff]  ;;  %v15198_v11 = vld [vmem:[#allocation3 + $0x92] sm:$0xff]  ;;  %v2594_v20 = vpack.c.bf16 %v2200_v47, %v15124_v39 }
 0x341   : > { %12593 = vmatmul.mubr.msk.bf16.gmra.mrb[12].mxu0 %vm435_vm1, %v15108_v34  ;;  %v15151_v51 = vpack.c.bf16 %v15148_v49, %v2200_v47  ;;  %v2465_v13 = vpack.c.bf16 %v15198_v11, %v15094_v7  ;;  %v14236_v23 = vld [vmem:[%s16957_s6 + $0x1f0] sm:$0xff]   ;;  %v14237_v25 = vld [vmem:[%s16957_s6 + $0x1f8] sm:$0xff]   ;;  %v14238_v2 = vld [vmem:[%s16957_s6 + $0x200] sm:$0xff]  }
 0x342   : > { %12601 = vmatpush3.bf16.msra.mxu0 %v14220_v22  ;;  %12604 = vmatprep.mubr.msk.bf16.mxu0 %vm435_vm1, %v2202_v36  ;;  %v2591_v24 = vld [vmem:[#allocation3 + $0x93] sm:$0xff]  ;;  %v14239_v26 = vld [vmem:[%s16957_s6 + $0x208] sm:$0xff]  }
 0x343   : > { %12602 = vmatprep.subr.bf16.mxu0 %v14221_v35  ;;  %v2595_v22 = vpack.c.bf16 %v2591_v24, %v15148_v49  ;;  %v2722_v7 = vld [vmem:[#allocation3 + $0xa1] sm:$0xff]  ;;  %v14249_v42 = vld [vmem:[%s16957_s6 + $0x278] sm:$0xff]  }
 0x344   : > { %v2726_v12 = vpack.c.bf16 %v2722_v7, %v15173_v4  ;;  %v2852_v31 = vld [vmem:[#allocation3 + $0xa2] sm:$0xff] }
 0x345   : > { %v2856_v32 = vpack.c.bf16 %v2852_v31, %v15198_v11  ;;  %v14247_v36 = vld [vmem:[%s16957_s6 + $0x268] sm:$0xff]  }
 0x346   : > { %12603 = vmatpush3.bf16.msra.mxu0 %v14221_v35  ;;  %v14246_v35 = vld [vmem:[%s16957_s6 + $0x260] sm:$0xff]  }
 0x347   : > { %12612 = vmatprep.subr.bf16.mxu0 %v14222_v37  ;;  %12708 = vmatprep.subr.bf16.mxu1 %v14246_v35 }
 0x348   : > { %12709 = vmatpush3.bf16.msra.mxu1 %v14246_v35  ;;  %v14252_v35 = vld [vmem:[%s16957_s6 + $0x250] sm:$0xff]  }
 0x349   : > { %12605 = vmatmul.mubr.msk.bf16.vlgmr.msra.gmra.mrb[8].mxu0 %vm435_vm1, %v15130_v41  ;;  %12710 = vmatprep.subr.bf16.mxu1 %v14247_v36 }
 0x34a   : > { %12613 = vmatpush3.bf16.msra.mxu0 %v14222_v37  ;;  %12608 = vmatprep.mubr.msk.bf16.mxu0 %vm435_vm1, %v15139_v44  ;;  %v14248_v37 = vld [vmem:[%s16957_s6 + $0x270] sm:$0xff]  }
 0x34b   : > { %12614 = vmatprep.subr.bf16.mxu0 %v14223_v43 }
 0x34c   : > { %12711 = vmatpush3.bf16.msra.mxu1 %v14247_v36  ;;  %v3142_v36 = vld [vmem:[#allocation2] sm:$0xff] }
 0x34d   : > { %12712 = vmatprep.subr.bf16.mxu1 %v14248_v37 }
 0x34e   : > { %12615 = vmatpush3.bf16.msra.mxu0 %v14223_v43  ;;  %v3163_v43 = vld [vmem:[#allocation2 + $0x2] sm:$0xff] }
 0x34f   : > { %12616 = vmatprep.subr.bf16.mxu0 %v14224_v45 }
 0x350   : > { %12713 = vmatpush3.bf16.msra.mxu1 %v14248_v37  ;;  %v3143_v37 = vld [vmem:[#allocation2 + $0x10] sm:$0xff] }
 0x351   : > { %12609 = vmatmul.mubr.msk.bf16.gmra.mrb[12].mxu0 %vm435_vm1, %v15151_v51  ;;  %12714 = vmatprep.subr.bf16.mxu1 %v14249_v42 }
 0x352   : > { %12617 = vmatpush3.bf16.msra.mxu0 %v14224_v45  ;;  %12620 = vmatprep.mubr.msk.bf16.mxu0 %vm435_vm1, %v2332_v55  ;;  %v15290_v45 = vld [vmem:[%s16957_s6 + $0x240] sm:$0xff]  }
 0x353   : > { %12618 = vmatprep.subr.bf16.mxu0 %v14225_v53 }
 0x354   : > { %12715 = vmatpush3.bf16.msra.mxu1 %v14249_v42  ;;  %v14253_v42 = vld [vmem:[%s16957_s6 + $0x258] sm:$0xff]  }
 0x355   : > { %12724 = vmatprep.subr.bf16.mxu1 %v15290_v45 }
 0x356   : > { %12619 = vmatpush3.bf16.msra.mxu0 %v14225_v53 }
 0x357   : > { %12628 = vmatprep.subr.bf16.mxu0 %v14226_v56 }
 0x359   : > { %12621 = vmatmul.mubr.msk.bf16.vlgmr.msra.gmra.mrb[8].mxu0 %vm435_vm1, %v2333_v58  ;;  %v10845_v58 = vld [vmem:[%s16958_s7 + $0x1] ss:$0 sm:$0xff] }
 0x35a   : > { %12629 = vmatpush3.bf16.msra.mxu0 %v14226_v56  ;;  %12624 = vmatprep.mubr.msk.bf16.mxu0 %vm435_vm1, %v2334_v63 }
 0x35b   : > { %12630 = vmatprep.subr.bf16.mxu0 %v14227_v60 }
 0x35e   : > { %12631 = vmatpush3.bf16.msra.mxu0 %v14227_v60 }
 0x35f   : > { %12632 = vmatprep.subr.bf16.mxu0 %v14228_v3 }
 0x361   : > { %12625 = vmatmul.mubr.msk.bf16.gmra.mrb[12].mxu0 %vm435_vm1, %v2335_v61 }
 0x362   : > { %12633 = vmatpush3.bf16.msra.mxu0 %v14228_v3  ;;  %12636 = vmatprep.mubr.msk.bf16.mxu0 %vm435_vm1, %v2462_v8 }
 0x363   : > { %12634 = vmatprep.subr.bf16.mxu0 %v14229_v0 }
 0x366   : > { %12635 = vmatpush3.bf16.msra.mxu0 %v14229_v0 }
 0x367   : > { %12644 = vmatprep.subr.bf16.mxu0 %v14230_v1 }
 0x369   : > { %12637 = vmatmul.mubr.msk.bf16.vlgmr.msra.gmra.mrb[8].mxu0 %vm435_vm1, %v2463_v5 }
 0x36a   : > { %12645 = vmatpush3.bf16.msra.mxu0 %v14230_v1  ;;  %12640 = vmatprep.mubr.msk.bf16.mxu0 %vm435_vm1, %v2464_v9 }
 0x36b   : > { %12646 = vmatprep.subr.bf16.mxu0 %v14231_v6 }
 0x36e   : > { %12647 = vmatpush3.bf16.msra.mxu0 %v14231_v6 }
 0x36f   : > { %12648 = vmatprep.subr.bf16.mxu0 %v14232_v10 }
 0x371   : > { %12641 = vmatmul.mubr.msk.bf16.gmra.mrb[12].mxu0 %vm435_vm1, %v2465_v13 }
 0x372   : > { %12649 = vmatpush3.bf16.msra.mxu0 %v14232_v10  ;;  %12652 = vmatprep.mubr.msk.bf16.mxu0 %vm435_vm1, %v2592_v15 }
 0x373   : > { %12650 = vmatprep.subr.bf16.mxu0 %v14233_v14 }
 0x376   : > { %12651 = vmatpush3.bf16.msra.mxu0 %v14233_v14 }
 0x377   : > { %12660 = vmatprep.subr.bf16.mxu0 %v14234_v16 }
 0x379   : > { %12653 = vmatmul.mubr.msk.bf16.vlgmr.msra.gmra.mrb[8].mxu0 %vm435_vm1, %v2593_v17 }
 0x37a   : > { %12661 = vmatpush3.bf16.msra.mxu0 %v14234_v16  ;;  %12656 = vmatprep.mubr.msk.bf16.mxu0 %vm435_vm1, %v2594_v20 }
 0x37b   : > { %12662 = vmatprep.subr.bf16.mxu0 %v14235_v18 }
 0x37e   : > { %12663 = vmatpush3.bf16.msra.mxu0 %v14235_v18 }
 0x37f   : > { %12664 = vmatprep.subr.bf16.mxu0 %v14236_v23 }
 0x381   : > { %12657 = vmatmul.mubr.msk.bf16.gmra.mrb[12].mxu0 %vm435_vm1, %v2595_v22 }
 0x382   : > { %12665 = vmatpush3.bf16.msra.mxu0 %v14236_v23  ;;  %12668 = vmatprep.mubr.msk.bf16.mxu0 %vm435_vm1, %v15072_v21  ;;  %v14240_v21 = vld [vmem:[%s16957_s6 + $0x210] sm:$0xff]  }
 0x383   : > { %12666 = vmatprep.subr.bf16.mxu0 %v14237_v25 }
 0x386   : > { %12667 = vmatpush3.bf16.msra.mxu0 %v14237_v25 }
 0x387   : > { %12676 = vmatprep.subr.bf16.mxu0 %v14238_v2 }
 0x389   : > { %12669 = vmatmul.mubr.msk.bf16.vlgmr.msra.gmra.mrb[8].mxu0 %vm435_vm1, %v15092_v28  ;;  %v14242_v28 = vld [vmem:[%s16957_s6 + $0x220] sm:$0xff]  }
 0x38a   : > { %12677 = vmatpush3.bf16.msra.mxu0 %v14238_v2  ;;  %12672 = vmatprep.mubr.msk.bf16.mxu0 %vm435_vm1, %v15108_v34  ;;  %v14245_v34 = vld [vmem:[%s16957_s6 + $0x238] sm:$0xff]  }
 0x38b   : > { %12678 = vmatprep.subr.bf16.mxu0 %v14239_v26 }
 0x38e   : > { %12679 = vmatpush3.bf16.msra.mxu0 %v14239_v26 }
 0x38f   : > { %12680 = vmatprep.subr.bf16.mxu0 %v14240_v21 }
 0x391   : > { %12673 = vmatmul.mubr.msk.bf16.gmra.mrb[12].mxu0 %vm435_vm1, %v2726_v12 }
 0x392   : > { %12681 = vmatpush3.bf16.msra.mxu0 %v14240_v21  ;;  %12684 = vmatprep.mubr.msk.bf16.mxu0 %vm435_vm1, %v15068_v19  ;;  %v14244_v19 = vld [vmem:[%s16957_s6 + $0x230] sm:$0xff]  }
 0x393   : > { %12682 = vmatprep.subr.bf16.mxu0 %v14241_v29 }
 0x396   : > { %12683 = vmatpush3.bf16.msra.mxu0 %v14241_v29 }
 0x397   : > { %12692 = vmatprep.subr.bf16.mxu0 %v14242_v28 }
 0x399   : > { %12685 = vmatmul.mubr.msk.bf16.vlgmr.msra.gmra.mrb[8].mxu0 %vm435_vm1, %v15090_v27  ;;  %v2982_v27 = vld [vmem:[#allocation3 + $0xa3] sm:$0xff] }
 0x39a   : > { %12693 = vmatpush3.bf16.msra.mxu0 %v14242_v28  ;;  %12688 = vmatprep.mubr.msk.bf16.mxu0 %vm435_vm1, %v15106_v33  ;;  %v2986_v33 = vpack.c.bf16 %v2982_v27, %v2591_v24  ;;  %v14251_v27 = vld [vmem:[%s16957_s6 + $0x248] sm:$0xff]  }
 0x39b   : > { %12694 = vmatprep.subr.bf16.mxu0 %v14243_v30 }
 0x39e   : > { %12695 = vmatpush3.bf16.msra.mxu0 %v14243_v30 }
 0x39f   : > { %12696 = vmatprep.subr.bf16.mxu0 %v14244_v19 }
 0x3a1   : > { %12689 = vmatmul.mubr.msk.bf16.gmra.mrb[12].mxu0 %vm435_vm1, %v2856_v32 }
 0x3a2   : > { %12697 = vmatpush3.bf16.msra.mxu0 %v14244_v19  ;;  %12700 = vmatprep.mubr.msk.bf16.mxu0 %vm435_vm1, %v15130_v41 }
 0x3a3   : > { %12698 = vmatprep.subr.bf16.mxu0 %v14245_v34 }
 0x3a6   : > { %12699 = vmatpush3.bf16.msra.mxu0 %v14245_v34 }
 0x3a9   : > { %12701 = vmatmul.mubr.msk.bf16.vlgmr.msra.gmra.mrb[8].mxu0 %vm435_vm1, %v15139_v44  ;;  %v3164_v44 = vld [vmem:[#allocation2 + $0x12] sm:$0xff] }
 0x3aa   : > { %12704 = vmatprep.mubr.msk.bf16.mxu0 %vm435_vm1, %v15151_v51  ;;  %v3171_v47 = vpack.c.bf16 %v3164_v44, %v3163_v43  ;;  %v14254_v43 = vld [vmem:[%s16957_s6 + $0x280] sm:$0xff]  }
 0x3ac   : > { %12716 = vmatprep.mubr.msk.bf16.mxu1 %vm435_vm1, %v3171_v47 }
 0x3b1   : > { %12705 = vmatmul.mubr.msk.bf16.gmra.mrb[12].mxu0 %vm435_vm1, %v2986_v33 }
 0x40b   : > { %v12574_v38 = vpop.f32.mrb[16].mxu1 }
 0x40c   : > { %v2062_v39 = vpop.f32.mrb[17].mxu1 }
 0x40d   : > { %v12575_v40 = vpop.f32.mrb[18].mxu1 }
 0x40e   : > { %v2065_v41 = vpop.f32.mrb[19].mxu1 }
 0x413   : > { %v12578_v49 = vpop.f32.mrb[20].mxu1 }
 0x414   : > { %v2078_v51 = vpop.f32.mrb[21].mxu1 }
 0x415   : > { %v12579_v53 = vpop.f32.mrb[22].mxu1 }
 0x416   : > { %v2081_v55 = vpop.f32.mrb[23].mxu1 }
 0x47c   : > { %v12702_v56 = vpop.f32.mrb[8].mxu0 }
 0x47d   : > { %v13644_v60 = vadd.f32 %v12702_v56, %v12574_v38  ;;  %v3066_v63 = vpop.f32.mrb[9].mxu0  ;;  %v14256_v56 = vld [vmem:[%s16957_s6 + $0x290] sm:$0xff]  }
 0x47e   : > { %v13645_v3 = vadd.f32 %v3066_v63, %v2062_v39  ;;  %v12703_v4 = vpop.f32.mrb[10].mxu0 }
 0x47f   : > { %v3112_v61 = vadd.f32 %v13644_v60, %v10845_v58  ;;  %v13646_v0 = vadd.f32 %v12703_v4, %v12575_v40  ;;  %v3069_v8 = vpop.f32.mrb[11].mxu0  ;;  %v3150_v40 = vpack.c.bf16 %v3143_v37, %v3142_v36  ;;  %v3387_v60 = vld [vmem:[#allocation2 + $0x14] sm:$0xff] }
 0x480   : > { %v3110_v1 = vadd.f32 %v13645_v3, %v10845_v58  ;;  %v13647_v5 = vadd.f32 %v3069_v8, %v2065_v41  ;;  %v14258_v8 = vld [vmem:[%s16957_s6 + $0x2a0] sm:$0xff]  }
 0x481   : > { %v15298_v6 = vadd.f32 %v3112_v61, %v14751_v46  ;;  %v3113_v9 = vadd.f32 %v13646_v0, %v10845_v58  ;;  %v14257_v0 = vld [vmem:[%s16957_s6 + $0x298] sm:$0xff]  }
 0x482   : > { %v15301_v10 = vadd.f32 %v3110_v1, %v14753_v48  ;;  %v3111_v11 = vadd.f32 %v13647_v5, %v10845_v58 }
 0x483   : > { %v3128_v13 = vmax.f32 %v15298_v6, 0.0  ;;  %v15305_v14 = vadd.f32 %v3113_v9, %v14757_v50 }
 0x484   : > { %v3126_v15 = vmax.f32 %v15301_v10, 0.0  ;;  %v15309_v16 = vadd.f32 %v3111_v11, %v14761_v52  ;;  %v12706_v17 = vpop.f32.mrb[12].mxu0 }
 0x485   : > { %3136 = vst.msk [vmem:[#allocation2 + $0x42] sm:$0xff] %vm435_vm1, %v3128_v13  ;;  %v3129_v46 = vmax.f32 %v15305_v14, 0.0  ;;  %v13648_v48 = vadd.f32 %v12706_v17, %v12578_v49  ;;  %v3082_v18 = vpop.f32.mrb[13].mxu0 }
 0x486   : > { %3134 = vst.msk [vmem:[#allocation2 + $0x22] sm:$0xff] %vm435_vm1, %v3126_v15  ;;  %v3127_v50 = vmax.f32 %v15309_v16, 0.0  ;;  %v13649_v20 = vadd.f32 %v3082_v18, %v2078_v51  ;;  %v12707_v23 = vpop.f32.mrb[14].mxu0 }
 0x487   : > { %3137 = vst.msk [vmem:[#allocation2 + $0x52] sm:$0xff] %vm435_vm1, %v3129_v46  ;;  %v3116_v52 = vadd.f32 %v13648_v48, %v10845_v58  ;;  %v13650_v24 = vadd.f32 %v12707_v23, %v12579_v53  ;;  %v3085_v22 = vpop.f32.mrb[15].mxu0  ;;  %v14255_v53 = vld [vmem:[%s16957_s6 + $0x288] sm:$0xff]  }
 0x488   : > { %3135 = vst.msk [vmem:[#allocation2 + $0x32] sm:$0xff] %vm435_vm1, %v3127_v50  ;;  %v3114_v25 = vadd.f32 %v13649_v20, %v10845_v58  ;;  %v13651_v2 = vadd.f32 %v3085_v22, %v2081_v55  ;;  %v14259_v48 = vld [vmem:[%s16957_s6 + $0x2a8] sm:$0xff]   ;;  %v14260_v20 = vld [vmem:[%s16957_s6 + $0x2b0] sm:$0xff]   ;;  %v14261_v22 = vld [vmem:[%s16957_s6 + $0x2b8] sm:$0xff]  }
 0x489   : > { %v15326_v26 = vadd.f32 %v3116_v52, %v14767_v54  ;;  %v3117_v21 = vadd.f32 %v13650_v24, %v10845_v58 }
 0x48a   : > { %v15329_v7 = vadd.f32 %v3114_v25, %v14769_v57  ;;  %v3115_v12 = vadd.f32 %v13651_v2, %v10845_v58  ;;  %v3386_v58 = vld [vmem:[#allocation2 + $0x4] sm:$0xff] }
 0x48b   : > { %v3132_v29 = vmax.f32 %v15326_v26, 0.0  ;;  %v15333_v28 = vadd.f32 %v3117_v21, %v14773_v59  ;;  %v3394_v4 = vpack.c.bf16 %v3387_v60, %v3386_v58  ;;  %v14262_v25 = vld [vmem:[%s16957_s6 + $0x2c0] sm:$0xff]   ;;  %v14263_v2 = vld [vmem:[%s16957_s6 + $0x2c8] sm:$0xff]   ;;  %v14264_v21 = vld [vmem:[%s16957_s6 + $0x2d0] sm:$0xff]  }
 0x48c   : > { %v3130_v30 = vmax.f32 %v15329_v7, 0.0  ;;  %v15337_v19 = vadd.f32 %v3115_v12, %v14779_v62  ;;  %v3167_v34 = vld [vmem:[#allocation2 + $0x42] sm:$0xff]  ;;  %v14277_v60 = vld [vmem:[%s16957_s6 + $0x338] sm:$0xff]  }
 0x48d   : > { %3140 = vst.msk [vmem:[#allocation2 + $0x82] sm:$0xff] %vm435_vm1, %v3132_v29  ;;  %v3133_v54 = vmax.f32 %v15333_v28, 0.0  ;;  %v3165_v59 = vld [vmem:[#allocation2 + $0x22] sm:$0xff] }
 0x48e   : > { %3138 = vst.msk [vmem:[#allocation2 + $0x62] sm:$0xff] %vm435_vm1, %v3130_v30  ;;  %v3131_v57 = vmax.f32 %v15337_v19, 0.0  ;;  %v3168_v31 = vld [vmem:[#allocation2 + $0x52] sm:$0xff]  ;;  %v3144_v47 = vld [vmem:[#allocation2 + $0x20] sm:$0xff] }
 0x48f   : > { %3141 = vst.msk [vmem:[#allocation2 + $0x92] sm:$0xff] %vm435_vm1, %v3133_v54  ;;  %v3166_v62 = vld [vmem:[#allocation2 + $0x32] sm:$0xff]  ;;  %v15358_v33 = vpack.c.bf16 %v3168_v31, %v3167_v34  ;;  %v3146_v51 = vld [vmem:[#allocation2 + $0x40] sm:$0xff] }
 0x490   : > { %3139 = vst.msk [vmem:[#allocation2 + $0x72] sm:$0xff] %vm435_vm1, %v3131_v57  ;;  %v15353_v32 = vpack.c.bf16 %v3166_v62, %v3165_v59  ;;  %v3145_v44 = vld [vmem:[#allocation2 + $0x30] sm:$0xff]  ;;  %v3388_v9 = vld [vmem:[#allocation2 + $0x24] sm:$0xff]  ;;  %v14265_v62 = vld [vmem:[%s16957_s6 + $0x2d8] sm:$0xff]  }
 0x491   : > { %v3151_v49 = vpack.c.bf16 %v3145_v44, %v3144_v47  ;;  %v3389_v1 = vld [vmem:[#allocation2 + $0x34] sm:$0xff]  ;;  %v3390_v17 = vld [vmem:[#allocation2 + $0x44] sm:$0xff] }
 0x492   : > { %12717 = vmatmul.mubr.msk.bf16.vlgmr.msra.gmra.mrb[24].mxu1 %vm435_vm1, %v15353_v32  ;;  %v3391_v5 = vld [vmem:[#allocation2 + $0x54] sm:$0xff]  ;;  %v3395_v11 = vpack.c.bf16 %v3389_v1, %v3388_v9  ;;  %v14266_v34 = vld [vmem:[%s16957_s6 + $0x2e0] sm:$0xff]  }
 0x493   : > { %12725 = vmatpush3.bf16.msra.mxu1 %v15290_v45  ;;  %12720 = vmatprep.mubr.msk.bf16.mxu1 %vm435_vm1, %v15358_v33  ;;  %v3147_v45 = vld [vmem:[#allocation2 + $0x50] sm:$0xff]  ;;  %v15404_v18 = vpack.c.bf16 %v3391_v5, %v3390_v17  ;;  %v14273_v47 = vld [vmem:[%s16957_s6 + $0x318] sm:$0xff]   ;;  %v14282_v9 = vld [vmem:[%s16957_s6 + $0x380] sm:$0xff]  }
 0x494   : > { %12726 = vmatprep.subr.bf16.mxu1 %v14251_v27  ;;  %v15382_v55 = vpack.c.bf16 %v3147_v45, %v3146_v51  ;;  %v3522_v31 = vld [vmem:[#allocation2 + $0x80] sm:$0xff]  ;;  %v14275_v51 = vld [vmem:[%s16957_s6 + $0x328] sm:$0xff]   ;;  %v4174_v1 = vld [vmem:[#allocation2 + $0xb4] sm:$0xff]  ;;  %12852 = vmatprep.subr.bf16.mxu0 %v14282_v9 }
 0x495   : > { %v3169_v38 = vld [vmem:[#allocation2 + $0x62] sm:$0xff]  ;;  %12853 = vmatpush3.bf16.msra.mxu0 %v14282_v9  ;;  %v14284_v17 = vld [vmem:[%s16957_s6 + $0x390] sm:$0xff]  }
 0x496   : > { %v3148_v3 = vld [vmem:[#allocation2 + $0x60] sm:$0xff]  ;;  %v3523_v12 = vld [vmem:[#allocation2 + $0x90] sm:$0xff] }
 0x497   : > { %12727 = vmatpush3.bf16.msra.mxu1 %v14251_v27  ;;  %v3170_v39 = vld [vmem:[#allocation2 + $0x72] sm:$0xff]  ;;  %v3392_v52 = vld [vmem:[#allocation2 + $0x64] sm:$0xff]  ;;  %v3527_v59 = vpack.c.bf16 %v3523_v12, %v3522_v31 }
 0x498   : > { %12728 = vmatprep.subr.bf16.mxu1 %v14252_v35  ;;  %v15368_v41 = vpack.c.bf16 %v3170_v39, %v3169_v38  ;;  %v3149_v63 = vld [vmem:[#allocation2 + $0x70] sm:$0xff]  ;;  %v14267_v27 = vld [vmem:[%s16957_s6 + $0x2e8] sm:$0xff]   ;;  %v14269_v38 = vld [vmem:[%s16957_s6 + $0x2f8] sm:$0xff]  }
 0x499   : > { %v15390_v61 = vpack.c.bf16 %v3149_v63, %v3148_v3  ;;  %v3393_v23 = vld [vmem:[#allocation2 + $0x74] sm:$0xff]  ;;  %v3652_v36 = vld [vmem:[#allocation2 + $0x82] sm:$0xff] }
 0x49a   : > { %12721 = vmatmul.mubr.msk.bf16.gmra.mrb[28].mxu1 %vm435_vm1, %v15368_v41  ;;  %v15412_v24 = vpack.c.bf16 %v3393_v23, %v3392_v52  ;;  %v14270_v39 = vld [vmem:[%s16957_s6 + $0x300] sm:$0xff]   ;;  %v14279_v3 = vld [vmem:[%s16957_s6 + $0x348] sm:$0xff]  }
 0x49b   : > { %12729 = vmatpush3.bf16.msra.mxu1 %v14252_v35  ;;  %12732 = vmatprep.mubr.msk.bf16.mxu1 %vm435_vm1, %v3150_v40  ;;  %v3653_v35 = vld [vmem:[#allocation2 + $0x92] sm:$0xff]  ;;  %v14271_v40 = vld [vmem:[%s16957_s6 + $0x308] sm:$0xff]   ;;  %v14278_v63 = vld [vmem:[%s16957_s6 + $0x340] sm:$0xff]  }
 0x49c   : > { %12730 = vmatprep.subr.bf16.mxu1 %v14253_v42  ;;  %v3657_v37 = vpack.c.bf16 %v3653_v35, %v3652_v36  ;;  %v3782_v44 = vld [vmem:[#allocation2 + $0x84] sm:$0xff] }
 0x49d   : > { %v14286_v23 = vld [vmem:[%s16957_s6 + $0x360] sm:$0xff]  }
 0x49e   : > { %v14290_v9 = vld [vmem:[%s16957_s6 + $0x3a0] sm:$0xff]  }
 0x49f   : > { %12731 = vmatpush3.bf16.msra.mxu1 %v14253_v42  ;;  %v14272_v42 = vld [vmem:[%s16957_s6 + $0x310] sm:$0xff]  }
 0x4a0   : > { %12740 = vmatprep.subr.bf16.mxu1 %v14254_v43 }
 0x4a2   : > { %12733 = vmatmul.mubr.msk.bf16.vlgmr.msra.gmra.mrb[24].mxu1 %vm435_vm1, %v3151_v49 }
 0x4a3   : > { %12741 = vmatpush3.bf16.msra.mxu1 %v14254_v43  ;;  %12736 = vmatprep.mubr.msk.bf16.mxu1 %vm435_vm1, %v15382_v55  ;;  %v3783_v43 = vld [vmem:[#allocation2 + $0x94] sm:$0xff] }
 0x4a4   : > { %12742 = vmatprep.subr.bf16.mxu1 %v14255_v53  ;;  %v3787_v45 = vpack.c.bf16 %v3783_v43, %v3782_v44 }
 0x4a7   : > { %12743 = vmatpush3.bf16.msra.mxu1 %v14255_v53  ;;  %v3913_v53 = vld [vmem:[#allocation2 + $0xa0] sm:$0xff] }
 0x4a8   : > { %12744 = vmatprep.subr.bf16.mxu1 %v14256_v56 }
 0x4aa   : > { %12737 = vmatmul.mubr.msk.bf16.gmra.mrb[28].mxu1 %vm435_vm1, %v15390_v61 }
 0x4ab   : > { %12745 = vmatpush3.bf16.msra.mxu1 %v14256_v56  ;;  %12748 = vmatprep.mubr.msk.bf16.mxu1 %vm435_vm1, %v3394_v4  ;;  %v3914_v56 = vld [vmem:[#allocation2 + $0xb0] sm:$0xff]  ;;  %v4043_v4 = vld [vmem:[#allocation2 + $0xa2] sm:$0xff] }
 0x4ac   : > { %12746 = vmatprep.subr.bf16.mxu1 %v14257_v0  ;;  %v3918_v58 = vpack.c.bf16 %v3914_v56, %v3913_v53 }
 0x4af   : > { %12747 = vmatpush3.bf16.msra.mxu1 %v14257_v0 }
 0x4b0   : > { %12756 = vmatprep.subr.bf16.mxu1 %v14258_v8 }
 0x4b2   : > { %12749 = vmatmul.mubr.msk.bf16.vlgmr.msra.gmra.mrb[24].mxu1 %vm435_vm1, %v3395_v11 }
 0x4b3   : > { %12757 = vmatpush3.bf16.msra.mxu1 %v14258_v8  ;;  %12752 = vmatprep.mubr.msk.bf16.mxu1 %vm435_vm1, %v15404_v18  ;;  %v14281_v8 = vld [vmem:[%s16957_s6 + $0x358] sm:$0xff]  }
 0x4b4   : > { %12758 = vmatprep.subr.bf16.mxu1 %v14259_v48 }
 0x4b7   : > { %12759 = vmatpush3.bf16.msra.mxu1 %v14259_v48  ;;  %v14285_v48 = vld [vmem:[%s16957_s6 + $0x398] sm:$0xff]  }
 0x4b8   : > { %12760 = vmatprep.subr.bf16.mxu1 %v14260_v20 }
 0x4ba   : > { %12753 = vmatmul.mubr.msk.bf16.gmra.mrb[28].mxu1 %vm435_vm1, %v15412_v24 }
 0x4bb   : > { %12761 = vmatpush3.bf16.msra.mxu1 %v14260_v20  ;;  %12764 = vmatprep.mubr.msk.bf16.mxu1 %vm435_vm1, %v3151_v49  ;;  %v14274_v49 = vld [vmem:[%s16957_s6 + $0x320] sm:$0xff]   ;;  %v4348_v20 = vld [vmem:[#allocation3 + $0x12] sm:$0xff] }
 0x4bc   : > { %12762 = vmatprep.subr.bf16.mxu1 %v14261_v22 }
 0x4bf   : > { %12763 = vmatpush3.bf16.msra.mxu1 %v14261_v22 }
 0x4c0   : > { %12772 = vmatprep.subr.bf16.mxu1 %v14262_v25 }
 0x4c2   : > { %12765 = vmatmul.mubr.msk.bf16.vlgmr.msra.gmra.mrb[24].mxu1 %vm435_vm1, %v15382_v55 }
 0x4c3   : > { %12773 = vmatpush3.bf16.msra.mxu1 %v14262_v25  ;;  %12768 = vmatprep.mubr.msk.bf16.mxu1 %vm435_vm1, %v15390_v61 }
 0x4c4   : > { %12774 = vmatprep.subr.bf16.mxu1 %v14263_v2 }
 0x4c7   : > { %12775 = vmatpush3.bf16.msra.mxu1 %v14263_v2 }
 0x4c8   : > { %12776 = vmatprep.subr.bf16.mxu1 %v14264_v21 }
 0x4ca   : > { %12769 = vmatmul.mubr.msk.bf16.gmra.mrb[28].mxu1 %vm435_vm1, %v3527_v59 }
 0x4cb   : > { %12777 = vmatpush3.bf16.msra.mxu1 %v14264_v21  ;;  %12780 = vmatprep.mubr.msk.bf16.mxu1 %vm435_vm1, %v15353_v32  ;;  %v14268_v32 = vld [vmem:[%s16957_s6 + $0x2f0] sm:$0xff]  }
 0x4cc   : > { %12778 = vmatprep.subr.bf16.mxu1 %v14265_v62 }
 0x4cf   : > { %12779 = vmatpush3.bf16.msra.mxu1 %v14265_v62 }
 0x4d0   : > { %12788 = vmatprep.subr.bf16.mxu1 %v14266_v34 }
 0x4d2   : > { %12781 = vmatmul.mubr.msk.bf16.vlgmr.msra.gmra.mrb[24].mxu1 %vm435_vm1, %v15358_v33 }
 0x4d3   : > { %12789 = vmatpush3.bf16.msra.mxu1 %v14266_v34  ;;  %12784 = vmatprep.mubr.msk.bf16.mxu1 %vm435_vm1, %v15368_v41 }
 0x4d4   : > { %12790 = vmatprep.subr.bf16.mxu1 %v14267_v27 }
 0x4d7   : > { %12791 = vmatpush3.bf16.msra.mxu1 %v14267_v27 }
 0x4d8   : > { %12792 = vmatprep.subr.bf16.mxu1 %v14268_v32 }
 0x4da   : > { %12785 = vmatmul.mubr.msk.bf16.gmra.mrb[28].mxu1 %vm435_vm1, %v3657_v37 }
 0x4db   : > { %12793 = vmatpush3.bf16.msra.mxu1 %v14268_v32  ;;  %12796 = vmatprep.mubr.msk.bf16.mxu1 %vm435_vm1, %v3395_v11  ;;  %v14283_v11 = vld [vmem:[%s16957_s6 + $0x388] sm:$0xff]  }
 0x4dc   : > { %12794 = vmatprep.subr.bf16.mxu1 %v14269_v38  ;;  %12854 = vmatprep.subr.bf16.mxu0 %v14283_v11 }
 0x4dd   : > { %12855 = vmatpush3.bf16.msra.mxu0 %v14283_v11 }
 0x4de   : > { %12856 = vmatprep.subr.bf16.mxu0 %v14284_v17 }
 0x4df   : > { %12795 = vmatpush3.bf16.msra.mxu1 %v14269_v38 }
 0x4e0   : > { %12804 = vmatprep.subr.bf16.mxu1 %v14270_v39 }
 0x4e1   : > { %12857 = vmatpush3.bf16.msra.mxu0 %v14284_v17 }
 0x4e2   : > { %12797 = vmatmul.mubr.msk.bf16.vlgmr.msra.gmra.mrb[24].mxu1 %vm435_vm1, %v15404_v18  ;;  %12858 = vmatprep.subr.bf16.mxu0 %v14285_v48 }
 0x4e3   : > { %12805 = vmatpush3.bf16.msra.mxu1 %v14270_v39  ;;  %12800 = vmatprep.mubr.msk.bf16.mxu1 %vm435_vm1, %v15412_v24 }
 0x4e4   : > { %12806 = vmatprep.subr.bf16.mxu1 %v14271_v40 }
 0x4e5   : > { %12859 = vmatpush3.bf16.msra.mxu0 %v14285_v48 }
 0x4e6   : > { %12868 = vmatprep.subr.bf16.mxu0 %v14286_v23 }
 0x4e7   : > { %12807 = vmatpush3.bf16.msra.mxu1 %v14271_v40 }
 0x4e8   : > { %12808 = vmatprep.subr.bf16.mxu1 %v14272_v42 }
 0x4ea   : > { %12801 = vmatmul.mubr.msk.bf16.gmra.mrb[28].mxu1 %vm435_vm1, %v3787_v45 }
 0x4eb   : > { %12809 = vmatpush3.bf16.msra.mxu1 %v14272_v42  ;;  %12812 = vmatprep.mubr.msk.bf16.mxu1 %vm435_vm1, %v15382_v55  ;;  %v14276_v55 = vld [vmem:[%s16957_s6 + $0x330] sm:$0xff]  }
 0x4ec   : > { %12810 = vmatprep.subr.bf16.mxu1 %v14273_v47 }
 0x4ef   : > { %12811 = vmatpush3.bf16.msra.mxu1 %v14273_v47 }
 0x4f0   : > { %12820 = vmatprep.subr.bf16.mxu1 %v14274_v49 }
 0x4f2   : > { %12813 = vmatmul.mubr.msk.bf16.vlgmr.msra.gmra.mrb[24].mxu1 %vm435_vm1, %v15390_v61  ;;  %v4044_v61 = vld [vmem:[#allocation2 + $0xb2] sm:$0xff] }
 0x4f3   : > { %12821 = vmatpush3.bf16.msra.mxu1 %v14274_v49  ;;  %12816 = vmatprep.mubr.msk.bf16.mxu1 %vm435_vm1, %v3527_v59  ;;  %v4048_v0 = vpack.c.bf16 %v4044_v61, %v4043_v4  ;;  %v14288_v4 = vld [vmem:[%s16957_s6 + $0x370] sm:$0xff]   ;;  %v4326_v61 = vld [vmem:[#allocation3] sm:$0xff] }
 0x4f4   : > { %12822 = vmatprep.subr.bf16.mxu1 %v14275_v51 }
 0x4f7   : > { %12823 = vmatpush3.bf16.msra.mxu1 %v14275_v51 }
 0x4f8   : > { %12824 = vmatprep.subr.bf16.mxu1 %v14276_v55 }
 0x4fa   : > { %12817 = vmatmul.mubr.msk.bf16.gmra.mrb[28].mxu1 %vm435_vm1, %v3918_v58 }
 0x4fb   : > { %12825 = vmatpush3.bf16.msra.mxu1 %v14276_v55  ;;  %12828 = vmatprep.mubr.msk.bf16.mxu1 %vm435_vm1, %v15358_v33  ;;  %v14280_v33 = vld [vmem:[%s16957_s6 + $0x350] sm:$0xff]  }
 0x4fc   : > { %12826 = vmatprep.subr.bf16.mxu1 %v14277_v60 }
 0x4ff   : > { %12827 = vmatpush3.bf16.msra.mxu1 %v14277_v60 }
 0x500   : > { %12836 = vmatprep.subr.bf16.mxu1 %v14278_v63 }
 0x502   : > { %12829 = vmatmul.mubr.msk.bf16.vlgmr.msra.gmra.mrb[24].mxu1 %vm435_vm1, %v15368_v41  ;;  %v4173_v41 = vld [vmem:[#allocation2 + $0xa4] sm:$0xff] }
 0x503   : > { %12837 = vmatpush3.bf16.msra.mxu1 %v14278_v63  ;;  %12832 = vmatprep.mubr.msk.bf16.mxu1 %vm435_vm1, %v3657_v37  ;;  %v4178_v5 = vpack.c.bf16 %v4174_v1, %v4173_v41  ;;  %v14287_v63 = vld [vmem:[%s16957_s6 + $0x368] sm:$0xff]  }
 0x504   : > { %12838 = vmatprep.subr.bf16.mxu1 %v14279_v3 }
 0x507   : > { %12839 = vmatpush3.bf16.msra.mxu1 %v14279_v3 }
 0x508   : > { %12840 = vmatprep.subr.bf16.mxu1 %v14280_v33 }
 0x50a   : > { %12833 = vmatmul.mubr.msk.bf16.gmra.mrb[28].mxu1 %vm435_vm1, %v4048_v0 }
 0x50b   : > { %12841 = vmatpush3.bf16.msra.mxu1 %v14280_v33  ;;  %12844 = vmatprep.mubr.msk.bf16.mxu1 %vm435_vm1, %v15404_v18  ;;  %v4347_v18 = vld [vmem:[#allocation3 + $0x2] sm:$0xff]  ;;  %v4327_v33 = vld [vmem:[#allocation3 + $0x10] sm:$0xff] }
 0x50c   : > { %12842 = vmatprep.subr.bf16.mxu1 %v14281_v8  ;;  %v4355_v52 = vpack.c.bf16 %v4348_v20, %v4347_v18  ;;  %v4334_v41 = vpack.c.bf16 %v4327_v33, %v4326_v61 }
 0x50e   : > { %12860 = vmatprep.mubr.msk.bf16.mxu0 %vm435_vm1, %v4355_v52 }
 0x50f   : > { %12843 = vmatpush3.bf16.msra.mxu1 %v14281_v8 }
 0x512   : > { %12845 = vmatmul.mubr.msk.bf16.vlgmr.msra.gmra.mrb[24].mxu1 %vm435_vm1, %v15412_v24  ;;  %v10990_v24 = vld [vmem:[%s16958_s7 + $0x2] ss:$0 sm:$0xff] }
 0x513   : > { %12848 = vmatprep.mubr.msk.bf16.mxu1 %vm435_vm1, %v3787_v45 }
 0x51a   : > { %12849 = vmatmul.mubr.msk.bf16.gmra.mrb[28].mxu1 %vm435_vm1, %v4178_v5  ;;  %v14289_v5 = vld [vmem:[%s16957_s6 + $0x378] sm:$0xff]  }
 0x5e5   : > { %v12846_v22 = vpop.f32.mrb[24].mxu1 }
 0x5e6   : > { %v4304_v25 = vadd.f32 %v12846_v22, %v10990_v24  ;;  %v4258_v2 = vpop.f32.mrb[25].mxu1  ;;  %v4570_v22 = vld [vmem:[#allocation3 + $0x4] sm:$0xff] }
 0x5e7   : > { %v4302_v21 = vadd.f32 %v10990_v24, %v4258_v2  ;;  %v12847_v12 = vpop.f32.mrb[26].mxu1 }
 0x5e8   : > { %v4312_v31 = vmax.f32 %v4304_v25, 0.0  ;;  %v4305_v59 = vadd.f32 %v12847_v12, %v10990_v24  ;;  %v4261_v62 = vpop.f32.mrb[27].mxu1  ;;  %v4571_v25 = vld [vmem:[#allocation3 + $0x14] sm:$0xff] }
 0x5e9   : > { %v4310_v34 = vmax.f32 %v4302_v21, 0.0  ;;  %v4303_v27 = vadd.f32 %v10990_v24, %v4261_v62  ;;  %v4578_v12 = vpack.c.bf16 %v4571_v25, %v4570_v22  ;;  %v14294_v62 = vld [vmem:[%s16957_s6 + $0x3c0] sm:$0xff]   ;;  %v14313_v25 = vld [vmem:[%s16957_s6 + $0x458] sm:$0xff]  }
 0x5ea   : > { %4320 = vst.msk [vmem:[#allocation3 + $0x42] sm:$0xff] %vm435_vm1, %v4312_v31  ;;  %v4313_v32 = vmax.f32 %v4305_v59, 0.0  ;;  %v14293_v59 = vld [vmem:[%s16957_s6 + $0x3b8] sm:$0xff]  }
 0x5eb   : > { %4318 = vst.msk [vmem:[#allocation3 + $0x22] sm:$0xff] %vm435_vm1, %v4310_v34  ;;  %v4311_v35 = vmax.f32 %v4303_v27, 0.0 }
 0x5ec   : > { %4321 = vst.msk [vmem:[#allocation3 + $0x52] sm:$0xff] %vm435_vm1, %v4313_v32 }
 0x5ed   : > { %4319 = vst.msk [vmem:[#allocation3 + $0x32] sm:$0xff] %vm435_vm1, %v4311_v35  ;;  %v12850_v36 = vpop.f32.mrb[28].mxu1 }
 0x5ee   : > { %v4308_v37 = vadd.f32 %v12850_v36, %v10990_v24  ;;  %v4274_v38 = vpop.f32.mrb[29].mxu1 }
 0x5ef   : > { %v4306_v39 = vadd.f32 %v10990_v24, %v4274_v38  ;;  %v12851_v40 = vpop.f32.mrb[30].mxu1 }
 0x5f0   : > { %v4316_v42 = vmax.f32 %v4308_v37, 0.0  ;;  %v4309_v43 = vadd.f32 %v12851_v40, %v10990_v24  ;;  %v4277_v44 = vpop.f32.mrb[31].mxu1  ;;  %v14295_v37 = vld [vmem:[%s16957_s6 + $0x3c8] sm:$0xff]  }
 0x5f1   : > { %v4314_v45 = vmax.f32 %v4306_v39, 0.0  ;;  %v4307_v47 = vadd.f32 %v10990_v24, %v4277_v44  ;;  %v4351_v60 = vld [vmem:[#allocation3 + $0x42] sm:$0xff]  ;;  %v14292_v24 = vld [vmem:[%s16957_s6 + $0x3b0] sm:$0xff]   ;;  %v14297_v44 = vld [vmem:[%s16957_s6 + $0x3d8] sm:$0xff]  }
 0x5f2   : > { %4324 = vst.msk [vmem:[#allocation3 + $0x82] sm:$0xff] %vm435_vm1, %v4316_v42  ;;  %v4317_v49 = vmax.f32 %v4309_v43, 0.0  ;;  %v4349_v56 = vld [vmem:[#allocation3 + $0x22] sm:$0xff]  ;;  %v14296_v39 = vld [vmem:[%s16957_s6 + $0x3d0] sm:$0xff]  }
 0x5f3   : > { %4322 = vst.msk [vmem:[#allocation3 + $0x62] sm:$0xff] %vm435_vm1, %v4314_v45  ;;  %v4315_v51 = vmax.f32 %v4307_v47, 0.0  ;;  %v4352_v53 = vld [vmem:[#allocation3 + $0x52] sm:$0xff]  ;;  %v4328_v48 = vld [vmem:[#allocation3 + $0x20] sm:$0xff]  ;;  %v14299_v47 = vld [vmem:[%s16957_s6 + $0x3e8] sm:$0xff]  }
 0x5f4   : > { %4325 = vst.msk [vmem:[#allocation3 + $0x92] sm:$0xff] %vm435_vm1, %v4317_v49  ;;  %v4350_v55 = vld [vmem:[#allocation3 + $0x32] sm:$0xff]  ;;  %v15548_v3 = vpack.c.bf16 %v4352_v53, %v4351_v60  ;;  %v4330_v20 = vld [vmem:[#allocation3 + $0x40] sm:$0xff] }
 0x5f5   : > { %4323 = vst.msk [vmem:[#allocation3 + $0x72] sm:$0xff] %vm435_vm1, %v4315_v51  ;;  %v15543_v58 = vpack.c.bf16 %v4350_v55, %v4349_v56  ;;  %v4329_v11 = vld [vmem:[#allocation3 + $0x30] sm:$0xff]  ;;  %v4572_v32 = vld [vmem:[#allocation3 + $0x24] sm:$0xff]  ;;  %v14301_v55 = vld [vmem:[%s16957_s6 + $0x3f8] sm:$0xff]  }
 0x5f6   : > { %v4331_v17 = vld [vmem:[#allocation3 + $0x50] sm:$0xff]  ;;  %v4335_v18 = vpack.c.bf16 %v4329_v11, %v4328_v48  ;;  %v4574_v36 = vld [vmem:[#allocation3 + $0x44] sm:$0xff]  ;;  %v14309_v48 = vld [vmem:[%s16957_s6 + $0x438] sm:$0xff]  }
 0x5f7   : > { %12861 = vmatmul.mubr.msk.bf16.vlgmr.msra.gmra.mrb[16].mxu0 %vm435_vm1, %v15543_v58  ;;  %v15571_v52 = vpack.c.bf16 %v4331_v17, %v4330_v20  ;;  %v4573_v34 = vld [vmem:[#allocation3 + $0x34] sm:$0xff]  ;;  %v14298_v45 = vld [vmem:[%s16957_s6 + $0x3e0] sm:$0xff]   ;;  %v14311_v20 = vld [vmem:[%s16957_s6 + $0x448] sm:$0xff]  }
 0x5f8   : > { %12869 = vmatpush3.bf16.msra.mxu0 %v14286_v23  ;;  %12864 = vmatprep.mubr.msk.bf16.mxu0 %vm435_vm1, %v15548_v3  ;;  %v14291_v23 = vld [vmem:[%s16957_s6 + $0x3a8] sm:$0xff]   ;;  %v4575_v27 = vld [vmem:[#allocation3 + $0x54] sm:$0xff]  ;;  %v4579_v35 = vpack.c.bf16 %v4573_v34, %v4572_v32  ;;  %v14302_v60 = vld [vmem:[%s16957_s6 + $0x400] sm:$0xff]  }
 0x5f9   : > { %12870 = vmatprep.subr.bf16.mxu0 %v14287_v63  ;;  %v15593_v38 = vpack.c.bf16 %v4575_v27, %v4574_v36  ;;  %v14300_v49 = vld [vmem:[%s16957_s6 + $0x3f0] sm:$0xff]   ;;  %v4706_v53 = vld [vmem:[#allocation3 + $0x80] sm:$0xff] }
 0x5fa   : > { %v4353_v0 = vld [vmem:[#allocation3 + $0x62] sm:$0xff]  ;;  %v5358_v34 = vld [vmem:[#allocation3 + $0xb4] sm:$0xff] }
 0x5fb   : > { %v4332_v21 = vld [vmem:[#allocation3 + $0x60] sm:$0xff]  ;;  %v4707_v51 = vld [vmem:[#allocation3 + $0x90] sm:$0xff] }
 0x5fc   : > { %12871 = vmatpush3.bf16.msra.mxu0 %v14287_v63  ;;  %v4354_v8 = vld [vmem:[#allocation3 + $0x72] sm:$0xff]  ;;  %v4576_v42 = vld [vmem:[#allocation3 + $0x64] sm:$0xff]  ;;  %v4711_v56 = vpack.c.bf16 %v4707_v51, %v4706_v53 }
 0x5fd   : > { %12872 = vmatprep.subr.bf16.mxu0 %v14288_v4  ;;  %v15557_v1 = vpack.c.bf16 %v4354_v8, %v4353_v0  ;;  %v4333_v2 = vld [vmem:[#allocation3 + $0x70] sm:$0xff]  ;;  %v14303_v63 = vld [vmem:[%s16957_s6 + $0x408] sm:$0xff]   ;;  %v14305_v0 = vld [vmem:[%s16957_s6 + $0x418] sm:$0xff]  }
 0x5fe   : > { %v15579_v31 = vpack.c.bf16 %v4333_v2, %v4332_v21  ;;  %v4577_v40 = vld [vmem:[#allocation3 + $0x74] sm:$0xff]  ;;  %v4836_v61 = vld [vmem:[#allocation3 + $0x82] sm:$0xff] }
 0x5ff   : > { %12865 = vmatmul.mubr.msk.bf16.gmra.mrb[20].mxu0 %vm435_vm1, %v15557_v1  ;;  %v15601_v43 = vpack.c.bf16 %v4577_v40, %v4576_v42  ;;  %v14306_v8 = vld [vmem:[%s16957_s6 + $0x420] sm:$0xff]   ;;  %v14315_v21 = vld [vmem:[%s16957_s6 + $0x468] sm:$0xff]   ;;  %v14320_v36 = vld [vmem:[%s16957_s6 + $0x4b0] sm:$0xff]  }
 0x600   : > { %12873 = vmatpush3.bf16.msra.mxu0 %v14288_v4  ;;  %12876 = vmatprep.mubr.msk.bf16.mxu0 %vm435_vm1, %v4334_v41  ;;  %v4837_v4 = vld [vmem:[#allocation3 + $0x92] sm:$0xff]  ;;  %v14307_v41 = vld [vmem:[%s16957_s6 + $0x428] sm:$0xff]   ;;  %v14314_v2 = vld [vmem:[%s16957_s6 + $0x460] sm:$0xff]  }
 0x601   : > { %12874 = vmatprep.subr.bf16.mxu0 %v14289_v5  ;;  %v4841_v33 = vpack.c.bf16 %v4837_v4, %v4836_v61  ;;  %v4966_v11 = vld [vmem:[#allocation3 + $0x84] sm:$0xff] }
 0x602   : > { %v14318_v32 = vld [vmem:[%s16957_s6 + $0x4a0] sm:$0xff]  }
 0x603   : > { %12996 = vmatprep.subr.bf16.mxu1 %v14318_v32 }
 0x604   : > { %12875 = vmatpush3.bf16.msra.mxu0 %v14289_v5  ;;  %v14308_v5 = vld [vmem:[%s16957_s6 + $0x430] sm:$0xff]   ;;  %12997 = vmatpush3.bf16.msra.mxu1 %v14318_v32 }
 0x605   : > { %12884 = vmatprep.subr.bf16.mxu0 %v14290_v9  ;;  %v14328_v32 = vld [vmem:[%s16957_s6 + $0x4d0] sm:$0xff]  }
 0x607   : > { %12877 = vmatmul.mubr.msk.bf16.vlgmr.msra.gmra.mrb[16].mxu0 %vm435_vm1, %v4335_v18 }
 0x608   : > { %12885 = vmatpush3.bf16.msra.mxu0 %v14290_v9  ;;  %12880 = vmatprep.mubr.msk.bf16.mxu0 %vm435_vm1, %v15571_v52  ;;  %v4967_v9 = vld [vmem:[#allocation3 + $0x94] sm:$0xff] }
 0x609   : > { %12886 = vmatprep.subr.bf16.mxu0 %v14291_v23  ;;  %v4971_v17 = vpack.c.bf16 %v4967_v9, %v4966_v11  ;;  %v14323_v11 = vld [vmem:[%s16957_s6 + $0x488] sm:$0xff]  }
 0x60c   : > { %12887 = vmatpush3.bf16.msra.mxu0 %v14291_v23  ;;  %v5097_v23 = vld [vmem:[#allocation3 + $0xa0] sm:$0xff] }
 0x60d   : > { %12888 = vmatprep.subr.bf16.mxu0 %v14292_v24 }
 0x60f   : > { %12881 = vmatmul.mubr.msk.bf16.gmra.mrb[20].mxu0 %vm435_vm1, %v15579_v31 }
 0x610   : > { %12889 = vmatpush3.bf16.msra.mxu0 %v14292_v24  ;;  %12892 = vmatprep.mubr.msk.bf16.mxu0 %vm435_vm1, %v4578_v12  ;;  %v5098_v24 = vld [vmem:[#allocation3 + $0xb0] sm:$0xff]  ;;  %v5227_v12 = vld [vmem:[#allocation3 + $0xa2] sm:$0xff] }
 0x611   : > { %12890 = vmatprep.subr.bf16.mxu0 %v14293_v59  ;;  %v5102_v22 = vpack.c.bf16 %v5098_v24, %v5097_v23  ;;  %v5518_v23 = vld [vmem:[#allocation2 + $0x11] sm:$0xff] }
 0x614   : > { %12891 = vmatpush3.bf16.msra.mxu0 %v14293_v59 }
 0x615   : > { %12900 = vmatprep.subr.bf16.mxu0 %v14294_v62 }
 0x617   : > { %12893 = vmatmul.mubr.msk.bf16.vlgmr.msra.gmra.mrb[16].mxu0 %vm435_vm1, %v4579_v35 }
 0x618   : > { %12901 = vmatpush3.bf16.msra.mxu0 %v14294_v62  ;;  %12896 = vmatprep.mubr.msk.bf16.mxu0 %vm435_vm1, %v15593_v38  ;;  %v14317_v62 = vld [vmem:[%s16957_s6 + $0x478] sm:$0xff]  }
 0x619   : > { %12902 = vmatprep.subr.bf16.mxu0 %v14295_v37 }
 0x61c   : > { %12903 = vmatpush3.bf16.msra.mxu0 %v14295_v37  ;;  %v14321_v37 = vld [vmem:[%s16957_s6 + $0x4b8] sm:$0xff]  }
 0x61d   : > { %12904 = vmatprep.subr.bf16.mxu0 %v14296_v39 }
 0x61f   : > { %12897 = vmatmul.mubr.msk.bf16.gmra.mrb[20].mxu0 %vm435_vm1, %v15601_v43 }
 0x620   : > { %12905 = vmatpush3.bf16.msra.mxu0 %v14296_v39  ;;  %12908 = vmatprep.mubr.msk.bf16.mxu0 %vm435_vm1, %v4335_v18  ;;  %v14310_v18 = vld [vmem:[%s16957_s6 + $0x440] sm:$0xff]  }
 0x621   : > { %12906 = vmatprep.subr.bf16.mxu0 %v14297_v44  ;;  %v11135_v39 = vld [vmem:[%s16958_s7 + $0x3] ss:$0 sm:$0xff] }
 0x624   : > { %12907 = vmatpush3.bf16.msra.mxu0 %v14297_v44 }
 0x625   : > { %12916 = vmatprep.subr.bf16.mxu0 %v14298_v45 }
 0x627   : > { %12909 = vmatmul.mubr.msk.bf16.vlgmr.msra.gmra.mrb[16].mxu0 %vm435_vm1, %v15571_v52 }
 0x628   : > { %12917 = vmatpush3.bf16.msra.mxu0 %v14298_v45  ;;  %12912 = vmatprep.mubr.msk.bf16.mxu0 %vm435_vm1, %v15579_v31 }
 0x629   : > { %12918 = vmatprep.subr.bf16.mxu0 %v14299_v47 }
 0x62c   : > { %12919 = vmatpush3.bf16.msra.mxu0 %v14299_v47 }
 0x62d   : > { %12920 = vmatprep.subr.bf16.mxu0 %v14300_v49 }
 0x62f   : > { %12913 = vmatmul.mubr.msk.bf16.gmra.mrb[20].mxu0 %vm435_vm1, %v4711_v56 }
 0x630   : > { %12921 = vmatpush3.bf16.msra.mxu0 %v14300_v49  ;;  %12924 = vmatprep.mubr.msk.bf16.mxu0 %vm435_vm1, %v15543_v58  ;;  %v14304_v58 = vld [vmem:[%s16957_s6 + $0x410] sm:$0xff]  }
 0x631   : > { %12922 = vmatprep.subr.bf16.mxu0 %v14301_v55 }
 0x634   : > { %12923 = vmatpush3.bf16.msra.mxu0 %v14301_v55 }
 0x635   : > { %12932 = vmatprep.subr.bf16.mxu0 %v14302_v60 }
 0x637   : > { %12925 = vmatmul.mubr.msk.bf16.vlgmr.msra.gmra.mrb[16].mxu0 %vm435_vm1, %v15548_v3 }
 0x638   : > { %12933 = vmatpush3.bf16.msra.mxu0 %v14302_v60  ;;  %12928 = vmatprep.mubr.msk.bf16.mxu0 %vm435_vm1, %v15557_v1 }
 0x639   : > { %12934 = vmatprep.subr.bf16.mxu0 %v14303_v63 }
 0x63c   : > { %12935 = vmatpush3.bf16.msra.mxu0 %v14303_v63 }
 0x63d   : > { %12936 = vmatprep.subr.bf16.mxu0 %v14304_v58 }
 0x63f   : > { %12929 = vmatmul.mubr.msk.bf16.gmra.mrb[20].mxu0 %vm435_vm1, %v4841_v33 }
 0x640   : > { %12937 = vmatpush3.bf16.msra.mxu0 %v14304_v58  ;;  %12940 = vmatprep.mubr.msk.bf16.mxu0 %vm435_vm1, %v4579_v35  ;;  %v14319_v35 = vld [vmem:[%s16957_s6 + $0x4a8] sm:$0xff]  }
 0x641   : > { %12938 = vmatprep.subr.bf16.mxu0 %v14305_v0  ;;  %12998 = vmatprep.subr.bf16.mxu1 %v14319_v35 }
 0x642   : > { %12999 = vmatpush3.bf16.msra.mxu1 %v14319_v35 }
 0x643   : > { %13000 = vmatprep.subr.bf16.mxu1 %v14320_v36 }
 0x644   : > { %12939 = vmatpush3.bf16.msra.mxu0 %v14305_v0 }
 0x645   : > { %12948 = vmatprep.subr.bf16.mxu0 %v14306_v8 }
 0x646   : > { %13001 = vmatpush3.bf16.msra.mxu1 %v14320_v36  ;;  %v5762_v36 = vld [vmem:[#allocation2 + $0x13] sm:$0xff] }
 0x647   : > { %12941 = vmatmul.mubr.msk.bf16.vlgmr.msra.gmra.mrb[16].mxu0 %vm435_vm1, %v15593_v38  ;;  %13002 = vmatprep.subr.bf16.mxu1 %v14321_v37 }
 0x648   : > { %12949 = vmatpush3.bf16.msra.mxu0 %v14306_v8  ;;  %12944 = vmatprep.mubr.msk.bf16.mxu0 %vm435_vm1, %v15601_v43 }
 0x649   : > { %12950 = vmatprep.subr.bf16.mxu0 %v14307_v41 }
 0x64a   : > { %13003 = vmatpush3.bf16.msra.mxu1 %v14321_v37 }
 0x64c   : > { %12951 = vmatpush3.bf16.msra.mxu0 %v14307_v41 }
 0x64d   : > { %12952 = vmatprep.subr.bf16.mxu0 %v14308_v5 }
 0x64f   : > { %12945 = vmatmul.mubr.msk.bf16.gmra.mrb[20].mxu0 %vm435_vm1, %v4971_v17 }
 0x650   : > { %12953 = vmatpush3.bf16.msra.mxu0 %v14308_v5  ;;  %12956 = vmatprep.mubr.msk.bf16.mxu0 %vm435_vm1, %v15571_v52  ;;  %v14312_v52 = vld [vmem:[%s16957_s6 + $0x450] sm:$0xff]  }
 0x651   : > { %12954 = vmatprep.subr.bf16.mxu0 %v14309_v48  ;;  %v5539_v5 = vld [vmem:[#allocation2 + $0x12] sm:$0xff] }
 0x654   : > { %12955 = vmatpush3.bf16.msra.mxu0 %v14309_v48 }
 0x655   : > { %12964 = vmatprep.subr.bf16.mxu0 %v14310_v18 }
 0x657   : > { %12957 = vmatmul.mubr.msk.bf16.vlgmr.msra.gmra.mrb[16].mxu0 %vm435_vm1, %v15579_v31  ;;  %v5228_v31 = vld [vmem:[#allocation3 + $0xb2] sm:$0xff] }
 0x658   : > { %12965 = vmatpush3.bf16.msra.mxu0 %v14310_v18  ;;  %12960 = vmatprep.mubr.msk.bf16.mxu0 %vm435_vm1, %v4711_v56  ;;  %v5232_v59 = vpack.c.bf16 %v5228_v31, %v5227_v12  ;;  %v14326_v12 = vld [vmem:[%s16957_s6 + $0x4c0] sm:$0xff]  }
 0x659   : > { %12966 = vmatprep.subr.bf16.mxu0 %v14311_v20 }
 0x65c   : > { %12967 = vmatpush3.bf16.msra.mxu0 %v14311_v20 }
 0x65d   : > { %12968 = vmatprep.subr.bf16.mxu0 %v14312_v52 }
 0x65f   : > { %12961 = vmatmul.mubr.msk.bf16.gmra.mrb[20].mxu0 %vm435_vm1, %v5102_v22 }
 0x660   : > { %12969 = vmatpush3.bf16.msra.mxu0 %v14312_v52  ;;  %12972 = vmatprep.mubr.msk.bf16.mxu0 %vm435_vm1, %v15548_v3  ;;  %v14316_v3 = vld [vmem:[%s16957_s6 + $0x470] sm:$0xff]  }
 0x661   : > { %12970 = vmatprep.subr.bf16.mxu0 %v14313_v25 }
 0x664   : > { %12971 = vmatpush3.bf16.msra.mxu0 %v14313_v25 }
 0x665   : > { %12980 = vmatprep.subr.bf16.mxu0 %v14314_v2 }
 0x667   : > { %12973 = vmatmul.mubr.msk.bf16.vlgmr.msra.gmra.mrb[16].mxu0 %vm435_vm1, %v15557_v1  ;;  %v5357_v1 = vld [vmem:[#allocation3 + $0xa4] sm:$0xff] }
 0x668   : > { %12981 = vmatpush3.bf16.msra.mxu0 %v14314_v2  ;;  %12976 = vmatprep.mubr.msk.bf16.mxu0 %vm435_vm1, %v4841_v33  ;;  %v5362_v27 = vpack.c.bf16 %v5358_v34, %v5357_v1  ;;  %v14325_v2 = vld [vmem:[%s16957_s6 + $0x498] sm:$0xff]   ;;  %v14327_v34 = vld [vmem:[%s16957_s6 + $0x4c8] sm:$0xff]  }
 0x669   : > { %12982 = vmatprep.subr.bf16.mxu0 %v14315_v21 }
 0x66c   : > { %12983 = vmatpush3.bf16.msra.mxu0 %v14315_v21 }
 0x66d   : > { %12984 = vmatprep.subr.bf16.mxu0 %v14316_v3 }
 0x66f   : > { %12977 = vmatmul.mubr.msk.bf16.gmra.mrb[20].mxu0 %vm435_vm1, %v5232_v59 }
 0x670   : > { %12985 = vmatpush3.bf16.msra.mxu0 %v14316_v3  ;;  %12988 = vmatprep.mubr.msk.bf16.mxu0 %vm435_vm1, %v15593_v38  ;;  %v14322_v38 = vld [vmem:[%s16957_s6 + $0x480] sm:$0xff]  }
 0x671   : > { %12986 = vmatprep.subr.bf16.mxu0 %v14317_v62  ;;  %13012 = vmatprep.subr.bf16.mxu1 %v14322_v38 }
 0x674   : > { %12987 = vmatpush3.bf16.msra.mxu0 %v14317_v62 }
 0x677   : > { %12989 = vmatmul.mubr.msk.bf16.vlgmr.msra.gmra.mrb[16].mxu0 %vm435_vm1, %v15601_v43 }
 0x678   : > { %12992 = vmatprep.mubr.msk.bf16.mxu0 %vm435_vm1, %v4971_v17  ;;  %v14324_v17 = vld [vmem:[%s16957_s6 + $0x490] sm:$0xff]  }
 0x67f   : > { %12993 = vmatmul.mubr.msk.bf16.gmra.mrb[20].mxu0 %vm435_vm1, %v5362_v27 }
 0x74a   : > { %v12990_v40 = vpop.f32.mrb[16].mxu0 }
 0x74b   : > { %v5488_v42 = vadd.f32 %v12990_v40, %v11135_v39  ;;  %v5442_v43 = vpop.f32.mrb[17].mxu0  ;;  %v14329_v40 = vld [vmem:[%s16957_s6 + $0x4d8] sm:$0xff]  }
 0x74c   : > { %v5486_v44 = vadd.f32 %v11135_v39, %v5442_v43  ;;  %v12991_v45 = vpop.f32.mrb[18].mxu0  ;;  %v14330_v43 = vld [vmem:[%s16957_s6 + $0x4e0] sm:$0xff]  }
 0x74d   : > { %v15725_v47 = vadd.f32 %v5488_v42, %v3128_v13  ;;  %v5489_v49 = vadd.f32 %v12991_v45, %v11135_v39  ;;  %v5445_v51 = vpop.f32.mrb[19].mxu0 }
 0x74e   : > { %v15729_v53 = vadd.f32 %v5486_v44, %v3126_v15  ;;  %v5487_v56 = vadd.f32 %v11135_v39, %v5445_v51 }
 0x74f   : > { %v5504_v55 = vmax.f32 %v15725_v47, 0.0  ;;  %v15734_v60 = vadd.f32 %v5489_v49, %v3129_v46 }
 0x750   : > { %v5502_v63 = vmax.f32 %v15729_v53, 0.0  ;;  %v15739_v6 = vadd.f32 %v5487_v56, %v3127_v50 }
 0x751   : > { %5512 = vst.msk [vmem:[#allocation2 + $0x42] sm:$0xff] %vm435_vm1, %v5504_v55  ;;  %v5505_v10 = vmax.f32 %v15734_v60, 0.0 }
 0x752   : > { %5510 = vst.msk [vmem:[#allocation2 + $0x22] sm:$0xff] %vm435_vm1, %v5502_v63  ;;  %v5503_v13 = vmax.f32 %v15739_v6, 0.0  ;;  %v12994_v14 = vpop.f32.mrb[20].mxu0 }
 0x753   : > { %5513 = vst.msk [vmem:[#allocation2 + $0x52] sm:$0xff] %vm435_vm1, %v5505_v10  ;;  %v5492_v15 = vadd.f32 %v12994_v14, %v11135_v39  ;;  %v5458_v16 = vpop.f32.mrb[21].mxu0  ;;  %v14331_v14 = vld [vmem:[%s16957_s6 + $0x4e8] sm:$0xff]  }
 0x754   : > { %5511 = vst.msk [vmem:[#allocation2 + $0x32] sm:$0xff] %vm435_vm1, %v5503_v13  ;;  %v5490_v46 = vadd.f32 %v11135_v39, %v5458_v16  ;;  %v12995_v50 = vpop.f32.mrb[22].mxu0  ;;  %v14332_v16 = vld [vmem:[%s16957_s6 + $0x4f0] sm:$0xff]  }
 0x755   : > { %v15757_v58 = vadd.f32 %v5492_v15, %v3132_v29  ;;  %v5493_v4 = vadd.f32 %v12995_v50, %v11135_v39  ;;  %v5461_v61 = vpop.f32.mrb[23].mxu0 }
 0x756   : > { %v15761_v33 = vadd.f32 %v5490_v46, %v3130_v30  ;;  %v5491_v0 = vadd.f32 %v11135_v39, %v5461_v61  ;;  %v14333_v61 = vld [vmem:[%s16957_s6 + $0x4f8] sm:$0xff]  }
 0x757   : > { %v5508_v8 = vmax.f32 %v15757_v58, 0.0  ;;  %v15766_v41 = vadd.f32 %v5493_v4, %v3133_v54 }
 0x758   : > { %v5506_v9 = vmax.f32 %v15761_v33, 0.0  ;;  %v15771_v26 = vadd.f32 %v5491_v0, %v3131_v57  ;;  %v15789_v54 = vld [vmem:[#allocation2 + $0x42] sm:$0xff] }
 0x759   : > { %5516 = vst.msk [vmem:[#allocation2 + $0x82] sm:$0xff] %vm435_vm1, %v5508_v8  ;;  %v5509_v7 = vmax.f32 %v15766_v41, 0.0  ;;  %v15777_v29 = vld [vmem:[#allocation2 + $0x22] sm:$0xff] }
 0x75a   : > { %5514 = vst.msk [vmem:[#allocation2 + $0x62] sm:$0xff] %vm435_vm1, %v5506_v9  ;;  %v5507_v28 = vmax.f32 %v15771_v26, 0.0  ;;  %v5547_v30 = vpack.c.bf16 %v15777_v29, %v5539_v5  ;;  %v15807_v48 = vld [vmem:[#allocation2 + $0x52] sm:$0xff]  ;;  %v15815_v24 = vld [vmem:[#allocation2 + $0x21] sm:$0xff] }
 0x75b   : > { %5517 = vst.msk [vmem:[#allocation2 + $0x92] sm:$0xff] %vm435_vm1, %v5509_v7  ;;  %v15787_v19 = vld [vmem:[#allocation2 + $0x32] sm:$0xff]  ;;  %v5526_v21 = vpack.c.bf16 %v15815_v24, %v5518_v23  ;;  %v5521_v59 = vld [vmem:[#allocation2 + $0x41] sm:$0xff] }
 0x75c   : > { %5515 = vst.msk [vmem:[#allocation2 + $0x72] sm:$0xff] %vm435_vm1, %v5507_v28  ;;  %13004 = vmatprep.mubr.msk.bf16.mxu1 %vm435_vm1, %v5547_v30  ;;  %v15797_v57 = vpack.c.bf16 %v15789_v54, %v15787_v19  ;;  %v5520_v31 = vld [vmem:[#allocation2 + $0x31] sm:$0xff]  ;;  %v15851_v37 = vld [vmem:[#allocation2 + $0x23] sm:$0xff] }
 0x75d   : > { %v15837_v62 = vpack.c.bf16 %v5521_v59, %v5520_v31  ;;  %v5522_v1 = vld [vmem:[#allocation2 + $0x51] sm:$0xff]  ;;  %v5770_v42 = vpack.c.bf16 %v15851_v37, %v5762_v36  ;;  %v15869_v49 = vld [vmem:[#allocation2 + $0x43] sm:$0xff]  ;;  %v5900_v0 = vpack.c.bf16 %v5520_v31, %v15815_v24 }
 0x75e   : > { %13005 = vmatmul.mubr.msk.bf16.vlgmr.msra.gmra.mrb[32].mxu1 %vm435_vm1, %v15797_v57  ;;  %v15865_v44 = vld [vmem:[#allocation2 + $0x33] sm:$0xff]  ;;  %v14334_v5 = vld [vmem:[%s16957_s6 + $0x500] sm:$0xff]   ;;  %v5901_v30 = vpack.c.bf16 %v5522_v1, %v5521_v59  ;;  %v14339_v59 = vld [vmem:[%s16957_s6 + $0x528] sm:$0xff]  }
 0x75f   : > { %13013 = vmatpush3.bf16.msra.mxu1 %v14322_v38  ;;  %v15873_v51 = vpack.c.bf16 %v15869_v49, %v15865_v44  ;;  %v15875_v56 = vld [vmem:[#allocation2 + $0x53] sm:$0xff]  ;;  %v14338_v31 = vld [vmem:[%s16957_s6 + $0x520] sm:$0xff]  }
 0x760   : > { %13014 = vmatprep.subr.bf16.mxu1 %v14323_v11  ;;  %v15819_v22 = vld [vmem:[#allocation2 + $0x82] sm:$0xff]  ;;  %v14336_v23 = vld [vmem:[%s16957_s6 + $0x510] sm:$0xff]  }
 0x761   : > { %v15809_v18 = vld [vmem:[#allocation2 + $0x62] sm:$0xff] }
 0x762   : > { %v15813_v20 = vpack.c.bf16 %v15809_v18, %v15807_v48  ;;  %v5523_v3 = vld [vmem:[#allocation2 + $0x61] sm:$0xff]  ;;  %v15914_v24 = vld [vmem:[#allocation2 + $0x91] sm:$0xff] }
 0x763   : > { %13015 = vmatpush3.bf16.msra.mxu1 %v14323_v11  ;;  %v15817_v52 = vld [vmem:[#allocation2 + $0x72] sm:$0xff]  ;;  %v15842_v27 = vpack.c.bf16 %v5523_v3, %v5522_v1  ;;  %v5525_v38 = vld [vmem:[#allocation2 + $0x81] sm:$0xff] }
 0x764   : > { %13008 = vmatprep.mubr.msk.bf16.mxu1 %vm435_vm1, %v15813_v20  ;;  %13016 = vmatprep.subr.bf16.mxu1 %v14324_v17  ;;  %v15825_v25 = vpack.c.bf16 %v15819_v22, %v15817_v52  ;;  %v5524_v35 = vld [vmem:[#allocation2 + $0x71] sm:$0xff]  ;;  %v15867_v45 = vld [vmem:[#allocation2 + $0x63] sm:$0xff] }
 0x765   : > { %v15853_v39 = vpack.c.bf16 %v5525_v38, %v5524_v35  ;;  %v15882_v15 = vpack.c.bf16 %v15867_v45, %v15875_v56  ;;  %v5768_v46 = vld [vmem:[#allocation2 + $0x73] sm:$0xff]  ;;  %v15891_v50 = vld [vmem:[#allocation2 + $0x83] sm:$0xff] }
 0x766   : > { %13009 = vmatmul.mubr.msk.bf16.gmra.mrb[36].mxu1 %vm435_vm1, %v15825_v25  ;;  %v15894_v4 = vpack.c.bf16 %v15891_v50, %v5768_v46  ;;  %v14335_v11 = vld [vmem:[%s16957_s6 + $0x508] sm:$0xff]   ;;  %v15939_v1 = vld [vmem:[#allocation2 + $0x92] sm:$0xff] }
 0x767   : > { %13017 = vmatpush3.bf16.msra.mxu1 %v14324_v17  ;;  %13020 = vmatprep.mubr.msk.bf16.mxu1 %vm435_vm1, %v5526_v21  ;;  %v5902_v17 = vpack.c.bf16 %v5524_v35, %v5523_v3  ;;  %v14337_v21 = vld [vmem:[%s16957_s6 + $0x518] sm:$0xff]   ;;  %v6031_v3 = vpack.c.bf16 %v15807_v48, %v15789_v54  ;;  %v6033_v54 = vpack.c.bf16 %v15939_v1, %v15819_v22  ;;  %v14344_v35 = vld [vmem:[%s16957_s6 + $0x550] sm:$0xff]  }
 0x768   : > { %13018 = vmatprep.subr.bf16.mxu1 %v14325_v2  ;;  %v14341_v48 = vld [vmem:[%s16957_s6 + $0x538] sm:$0xff]   ;;  %v6161_v22 = vpack.c.bf16 %v15875_v56, %v15869_v49  ;;  %v6419_v49 = vld [vmem:[#allocation2 + $0xa2] sm:$0xff] }
 0x769   : > { %v6159_v36 = vld [vmem:[#allocation2 + $0x93] sm:$0xff]  ;;  %v6423_v56 = vpack.c.bf16 %v6419_v49, %v15939_v1 }
 0x76b   : > { %13019 = vmatpush3.bf16.msra.mxu1 %v14325_v2  ;;  %v5903_v2 = vpack.c.bf16 %v15914_v24, %v5525_v38  ;;  %v14345_v38 = vld [vmem:[%s16957_s6 + $0x558] sm:$0xff]  }
 0x76c   : > { %13028 = vmatprep.subr.bf16.mxu1 %v14326_v12 }
 0x76e   : > { %13021 = vmatmul.mubr.msk.bf16.vlgmr.msra.gmra.mrb[32].mxu1 %vm435_vm1, %v15837_v62 }
 0x76f   : > { %13029 = vmatpush3.bf16.msra.mxu1 %v14326_v12  ;;  %13024 = vmatprep.mubr.msk.bf16.mxu1 %vm435_vm1, %v15842_v27  ;;  %v6030_v12 = vpack.c.bf16 %v15787_v19, %v15777_v29  ;;  %v6032_v29 = vpack.c.bf16 %v15817_v52, %v15809_v18  ;;  %v14340_v19 = vld [vmem:[%s16957_s6 + $0x530] sm:$0xff]   ;;  %v6160_v18 = vpack.c.bf16 %v15865_v44, %v15851_v37  ;;  %v14342_v52 = vld [vmem:[%s16957_s6 + $0x540] sm:$0xff]  }
 0x770   : > { %13030 = vmatprep.subr.bf16.mxu1 %v14327_v34  ;;  %v6163_v37 = vpack.c.bf16 %v6159_v36, %v15891_v50  ;;  %v14358_v50 = vld [vmem:[%s16957_s6 + $0x5a0] sm:$0xff]  }
 0x773   : > { %13031 = vmatpush3.bf16.msra.mxu1 %v14327_v34  ;;  %v14343_v34 = vld [vmem:[%s16957_s6 + $0x548] sm:$0xff]  }
 0x774   : > { %13032 = vmatprep.subr.bf16.mxu1 %v14328_v32 }
 0x776   : > { %13025 = vmatmul.mubr.msk.bf16.gmra.mrb[36].mxu1 %vm435_vm1, %v15853_v39 }
 0x777   : > { %13033 = vmatpush3.bf16.msra.mxu1 %v14328_v32  ;;  %13036 = vmatprep.mubr.msk.bf16.mxu1 %vm435_vm1, %v5770_v42  ;;  %v6162_v32 = vpack.c.bf16 %v5768_v46, %v15867_v45  ;;  %v14347_v42 = vld [vmem:[%s16957_s6 + $0x568] sm:$0xff]   ;;  %v14349_v45 = vld [vmem:[%s16957_s6 + $0x578] sm:$0xff]  }
 0x778   : > { %13034 = vmatprep.subr.bf16.mxu1 %v14329_v40  ;;  %v14357_v46 = vld [vmem:[%s16957_s6 + $0x5d8] sm:$0xff]  }
 0x77b   : > { %13035 = vmatpush3.bf16.msra.mxu1 %v14329_v40  ;;  %v14346_v40 = vld [vmem:[%s16957_s6 + $0x560] sm:$0xff]  }
 0x77c   : > { %13044 = vmatprep.subr.bf16.mxu1 %v14330_v43 }
 0x77e   : > { %13037 = vmatmul.mubr.msk.bf16.vlgmr.msra.gmra.mrb[32].mxu1 %vm435_vm1, %v15873_v51 }
 0x77f   : > { %13045 = vmatpush3.bf16.msra.mxu1 %v14330_v43  ;;  %13040 = vmatprep.mubr.msk.bf16.mxu1 %vm435_vm1, %v15882_v15  ;;  %v6289_v43 = vld [vmem:[#allocation2 + $0xa1] sm:$0xff] }
 0x780   : > { %13046 = vmatprep.subr.bf16.mxu1 %v14331_v14  ;;  %v6293_v44 = vpack.c.bf16 %v6289_v43, %v15914_v24  ;;  %v14360_v43 = vld [vmem:[%s16957_s6 + $0x5b0] sm:$0xff]  }
 0x783   : > { %13047 = vmatpush3.bf16.msra.mxu1 %v14331_v14  ;;  %v14353_v14 = vld [vmem:[%s16957_s6 + $0x598] sm:$0xff]  }
 0x784   : > { %13048 = vmatprep.subr.bf16.mxu1 %v14332_v16 }
 0x786   : > { %13041 = vmatmul.mubr.msk.bf16.gmra.mrb[36].mxu1 %vm435_vm1, %v15894_v4 }
 0x787   : > { %13049 = vmatpush3.bf16.msra.mxu1 %v14332_v16  ;;  %13052 = vmatprep.mubr.msk.bf16.mxu1 %vm435_vm1, %v5900_v0  ;;  %v14354_v16 = vld [vmem:[%s16957_s6 + $0x5c0] sm:$0xff]  }
 0x788   : > { %13050 = vmatprep.subr.bf16.mxu1 %v14333_v61  ;;  %13140 = vmatprep.subr.bf16.mxu0 %v14354_v16 }
 0x789   : > { %13141 = vmatpush3.bf16.msra.mxu0 %v14354_v16  ;;  %v14362_v16 = vld [vmem:[%s16957_s6 + $0x5e0] sm:$0xff]  }
 0x78b   : > { %13051 = vmatpush3.bf16.msra.mxu1 %v14333_v61 }
 0x78c   : > { %13060 = vmatprep.subr.bf16.mxu1 %v14334_v5 }
 0x78e   : > { %13053 = vmatmul.mubr.msk.bf16.vlgmr.msra.gmra.mrb[32].mxu1 %vm435_vm1, %v5901_v30 }
 0x78f   : > { %13061 = vmatpush3.bf16.msra.mxu1 %v14334_v5  ;;  %13056 = vmatprep.mubr.msk.bf16.mxu1 %vm435_vm1, %v5902_v17 }
 0x790   : > { %13062 = vmatprep.subr.bf16.mxu1 %v14335_v11 }
 0x793   : > { %13063 = vmatpush3.bf16.msra.mxu1 %v14335_v11 }
 0x794   : > { %13064 = vmatprep.subr.bf16.mxu1 %v14336_v23 }
 0x796   : > { %13057 = vmatmul.mubr.msk.bf16.gmra.mrb[36].mxu1 %vm435_vm1, %v5903_v2 }
 0x797   : > { %13065 = vmatpush3.bf16.msra.mxu1 %v14336_v23  ;;  %13068 = vmatprep.mubr.msk.bf16.mxu1 %vm435_vm1, %v6030_v12 }
 0x798   : > { %13066 = vmatprep.subr.bf16.mxu1 %v14337_v21 }
 0x79b   : > { %13067 = vmatpush3.bf16.msra.mxu1 %v14337_v21 }
 0x79c   : > { %13076 = vmatprep.subr.bf16.mxu1 %v14338_v31 }
 0x79e   : > { %13069 = vmatmul.mubr.msk.bf16.vlgmr.msra.gmra.mrb[32].mxu1 %vm435_vm1, %v6031_v3 }
 0x79f   : > { %13077 = vmatpush3.bf16.msra.mxu1 %v14338_v31  ;;  %13072 = vmatprep.mubr.msk.bf16.mxu1 %vm435_vm1, %v6032_v29 }
 0x7a0   : > { %13078 = vmatprep.subr.bf16.mxu1 %v14339_v59 }
 0x7a3   : > { %13079 = vmatpush3.bf16.msra.mxu1 %v14339_v59 }
 0x7a4   : > { %13080 = vmatprep.subr.bf16.mxu1 %v14340_v19 }
 0x7a6   : > { %13073 = vmatmul.mubr.msk.bf16.gmra.mrb[36].mxu1 %vm435_vm1, %v6033_v54 }
 0x7a7   : > { %13081 = vmatpush3.bf16.msra.mxu1 %v14340_v19  ;;  %13084 = vmatprep.mubr.msk.bf16.mxu1 %vm435_vm1, %v6160_v18 }
 0x7a8   : > { %13082 = vmatprep.subr.bf16.mxu1 %v14341_v48 }
 0x7ab   : > { %13083 = vmatpush3.bf16.msra.mxu1 %v14341_v48 }
 0x7ac   : > { %13092 = vmatprep.subr.bf16.mxu1 %v14342_v52 }
 0x7ae   : > { %13085 = vmatmul.mubr.msk.bf16.vlgmr.msra.gmra.mrb[32].mxu1 %vm435_vm1, %v6161_v22 }
 0x7af   : > { %13093 = vmatpush3.bf16.msra.mxu1 %v14342_v52  ;;  %13088 = vmatprep.mubr.msk.bf16.mxu1 %vm435_vm1, %v6162_v32  ;;  %v6722_v52 = vld [vmem:[#allocation3 + $0x12] sm:$0xff] }
 0x7b0   : > { %13094 = vmatprep.subr.bf16.mxu1 %v14343_v34 }
 0x7b3   : > { %13095 = vmatpush3.bf16.msra.mxu1 %v14343_v34 }
 0x7b4   : > { %13096 = vmatprep.subr.bf16.mxu1 %v14344_v35 }
 0x7b6   : > { %13089 = vmatmul.mubr.msk.bf16.gmra.mrb[36].mxu1 %vm435_vm1, %v6163_v37 }
 0x7b7   : > { %13097 = vmatpush3.bf16.msra.mxu1 %v14344_v35  ;;  %13100 = vmatprep.mubr.msk.bf16.mxu1 %vm435_vm1, %v15837_v62  ;;  %v14348_v62 = vld [vmem:[%s16957_s6 + $0x570] sm:$0xff]  }
 0x7b8   : > { %13098 = vmatprep.subr.bf16.mxu1 %v14345_v38 }
 0x7bb   : > { %13099 = vmatpush3.bf16.msra.mxu1 %v14345_v38 }
 0x7bc   : > { %13108 = vmatprep.subr.bf16.mxu1 %v14346_v40 }
 0x7be   : > { %13101 = vmatmul.mubr.msk.bf16.vlgmr.msra.gmra.mrb[32].mxu1 %vm435_vm1, %v15842_v27  ;;  %v14350_v27 = vld [vmem:[%s16957_s6 + $0x580] sm:$0xff]  }
 0x7bf   : > { %13109 = vmatpush3.bf16.msra.mxu1 %v14346_v40  ;;  %13104 = vmatprep.mubr.msk.bf16.mxu1 %vm435_vm1, %v15853_v39  ;;  %v14351_v39 = vld [vmem:[%s16957_s6 + $0x588] sm:$0xff]  }
 0x7c0   : > { %13110 = vmatprep.subr.bf16.mxu1 %v14347_v42 }
 0x7c3   : > { %13111 = vmatpush3.bf16.msra.mxu1 %v14347_v42 }
 0x7c4   : > { %13112 = vmatprep.subr.bf16.mxu1 %v14348_v62 }
 0x7c6   : > { %13105 = vmatmul.mubr.msk.bf16.gmra.mrb[36].mxu1 %vm435_vm1, %v6293_v44 }
 0x7c7   : > { %13113 = vmatpush3.bf16.msra.mxu1 %v14348_v62  ;;  %13116 = vmatprep.mubr.msk.bf16.mxu1 %vm435_vm1, %v15797_v57  ;;  %v14352_v57 = vld [vmem:[%s16957_s6 + $0x590] sm:$0xff]   ;;  %v14359_v62 = vld [vmem:[%s16957_s6 + $0x5a8] sm:$0xff]  }
 0x7c8   : > { %13114 = vmatprep.subr.bf16.mxu1 %v14349_v45 }
 0x7cb   : > { %13115 = vmatpush3.bf16.msra.mxu1 %v14349_v45 }
 0x7cc   : > { %13124 = vmatprep.subr.bf16.mxu1 %v14350_v27 }
 0x7ce   : > { %13117 = vmatmul.mubr.msk.bf16.vlgmr.msra.gmra.mrb[32].mxu1 %vm435_vm1, %v15813_v20  ;;  %v6549_v20 = vld [vmem:[#allocation2 + $0xa3] sm:$0xff] }
 0x7cf   : > { %13125 = vmatpush3.bf16.msra.mxu1 %v14350_v27  ;;  %13120 = vmatprep.mubr.msk.bf16.mxu1 %vm435_vm1, %v15825_v25  ;;  %v6553_v25 = vpack.c.bf16 %v6549_v20, %v6159_v36  ;;  %v14361_v20 = vld [vmem:[%s16957_s6 + $0x5b8] sm:$0xff]  }
 0x7d0   : > { %13126 = vmatprep.subr.bf16.mxu1 %v14351_v39 }
 0x7d3   : > { %13127 = vmatpush3.bf16.msra.mxu1 %v14351_v39  ;;  %v6701_v39 = vld [vmem:[#allocation3 + $0x11] sm:$0xff] }
 0x7d4   : > { %13128 = vmatprep.subr.bf16.mxu1 %v14352_v57 }
 0x7d6   : > { %13121 = vmatmul.mubr.msk.bf16.gmra.mrb[36].mxu1 %vm435_vm1, %v6423_v56 }
 0x7d7   : > { %13129 = vmatpush3.bf16.msra.mxu1 %v14352_v57  ;;  %13132 = vmatprep.mubr.msk.bf16.mxu1 %vm435_vm1, %v15873_v51  ;;  %v14355_v51 = vld [vmem:[%s16957_s6 + $0x5c8] sm:$0xff]  }
 0x7d8   : > { %13130 = vmatprep.subr.bf16.mxu1 %v14353_v14  ;;  %13142 = vmatprep.subr.bf16.mxu0 %v14355_v51 }
 0x7d9   : > { %13143 = vmatpush3.bf16.msra.mxu0 %v14355_v51 }
 0x7db   : > { %13131 = vmatpush3.bf16.msra.mxu1 %v14353_v14 }
 0x7de   : > { %13133 = vmatmul.mubr.msk.bf16.vlgmr.msra.gmra.mrb[32].mxu1 %vm435_vm1, %v15882_v15  ;;  %v14356_v15 = vld [vmem:[%s16957_s6 + $0x5d0] sm:$0xff]  }
 0x7df   : > { %13136 = vmatprep.mubr.msk.bf16.mxu1 %vm435_vm1, %v15894_v4  ;;  %13144 = vmatprep.subr.bf16.mxu0 %v14356_v15  ;;  %v11280_v4 = vld [vmem:[%s16958_s7 + $0x4] ss:$0 sm:$0xff] }
 0x7e0   : > { %13145 = vmatpush3.bf16.msra.mxu0 %v14356_v15 }
 0x7e1   : > { %13146 = vmatprep.subr.bf16.mxu0 %v14357_v46 }
 0x7e4   : > { %13147 = vmatpush3.bf16.msra.mxu0 %v14357_v46 }
 0x7e5   : > { %13156 = vmatprep.subr.bf16.mxu0 %v14358_v50 }
 0x7e6   : > { %13137 = vmatmul.mubr.msk.bf16.gmra.mrb[36].mxu1 %vm435_vm1, %v6553_v25 }
 0x8b1   : > { %v13134_v61 = vpop.f32.mrb[32].mxu1 }
 0x8b2   : > { %v6679_v0 = vadd.f32 %v13134_v61, %v11280_v4  ;;  %v6633_v5 = vpop.f32.mrb[33].mxu1  ;;  %v14363_v61 = vld [vmem:[%s16957_s6 + $0x5e8] sm:$0xff]  }
 0x8b3   : > { %v6677_v30 = vadd.f32 %v11280_v4, %v6633_v5  ;;  %v13135_v11 = vpop.f32.mrb[34].mxu1  ;;  %v14364_v5 = vld [vmem:[%s16957_s6 + $0x5f0] sm:$0xff]  }
 0x8b4   : > { %v6687_v17 = vmax.f32 %v6679_v0, 0.0  ;;  %v6680_v23 = vadd.f32 %v13135_v11, %v11280_v4  ;;  %v6636_v24 = vpop.f32.mrb[35].mxu1  ;;  %v6945_v11 = vld [vmem:[#allocation3 + $0x13] sm:$0xff] }
 0x8b5   : > { %v6685_v2 = vmax.f32 %v6677_v30, 0.0  ;;  %v6678_v21 = vadd.f32 %v11280_v4, %v6636_v24 }
 0x8b6   : > { %6695 = vst.msk [vmem:[#allocation3 + $0x42] sm:$0xff] %vm435_vm1, %v6687_v17  ;;  %v6688_v12 = vmax.f32 %v6680_v23, 0.0 }
 0x8b7   : > { %6693 = vst.msk [vmem:[#allocation3 + $0x22] sm:$0xff] %vm435_vm1, %v6685_v2  ;;  %v6686_v31 = vmax.f32 %v6678_v21, 0.0  ;;  %v14365_v2 = vld [vmem:[%s16957_s6 + $0x5f8] sm:$0xff]  }
 0x8b8   : > { %6696 = vst.msk [vmem:[#allocation3 + $0x52] sm:$0xff] %vm435_vm1, %v6688_v12  ;;  %v14366_v12 = vld [vmem:[%s16957_s6 + $0x600] sm:$0xff]  }
 0x8b9   : > { %6694 = vst.msk [vmem:[#allocation3 + $0x32] sm:$0xff] %vm435_vm1, %v6686_v31  ;;  %v13138_v3 = vpop.f32.mrb[36].mxu1 }
 0x8ba   : > { %v6683_v59 = vadd.f32 %v13138_v3, %v11280_v4  ;;  %v6649_v29 = vpop.f32.mrb[37].mxu1 }
 0x8bb   : > { %v6681_v19 = vadd.f32 %v11280_v4, %v6649_v29  ;;  %v13139_v1 = vpop.f32.mrb[38].mxu1 }
 0x8bc   : > { %v6691_v54 = vmax.f32 %v6683_v59, 0.0  ;;  %v6684_v48 = vadd.f32 %v13139_v1, %v11280_v4  ;;  %v6652_v18 = vpop.f32.mrb[39].mxu1  ;;  %v14367_v1 = vld [vmem:[%s16957_s6 + $0x608] sm:$0xff]  }
 0x8bd   : > { %v6689_v22 = vmax.f32 %v6681_v19, 0.0  ;;  %v6682_v34 = vadd.f32 %v11280_v4, %v6652_v18  ;;  %v16046_v40 = vld [vmem:[#allocation3 + $0x42] sm:$0xff] }
 0x8be   : > { %6699 = vst.msk [vmem:[#allocation3 + $0x82] sm:$0xff] %vm435_vm1, %v6691_v54  ;;  %v6692_v32 = vmax.f32 %v6684_v48, 0.0  ;;  %v16039_v35 = vld [vmem:[#allocation3 + $0x22] sm:$0xff]  ;;  %v14368_v48 = vld [vmem:[%s16957_s6 + $0x610] sm:$0xff]  }
 0x8bf   : > { %6697 = vst.msk [vmem:[#allocation3 + $0x62] sm:$0xff] %vm435_vm1, %v6689_v22  ;;  %v6690_v36 = vmax.f32 %v6682_v34, 0.0  ;;  %v6730_v37 = vpack.c.bf16 %v16039_v35, %v6722_v52  ;;  %v16062_v44 = vld [vmem:[#allocation3 + $0x52] sm:$0xff]  ;;  %v16070_v57 = vld [vmem:[#allocation3 + $0x21] sm:$0xff] }
 0x8c0   : > { %6700 = vst.msk [vmem:[#allocation3 + $0x92] sm:$0xff] %vm435_vm1, %v6692_v32  ;;  %v16044_v38 = vld [vmem:[#allocation3 + $0x32] sm:$0xff]  ;;  %v6709_v25 = vpack.c.bf16 %v16070_v57, %v6701_v39  ;;  %v6704_v46 = vld [vmem:[#allocation3 + $0x41] sm:$0xff] }
 0x8c1   : > { %6698 = vst.msk [vmem:[#allocation3 + $0x72] sm:$0xff] %vm435_vm1, %v6690_v36  ;;  %13148 = vmatprep.mubr.msk.bf16.mxu0 %vm435_vm1, %v6730_v37  ;;  %v16052_v42 = vpack.c.bf16 %v16046_v40, %v16044_v38  ;;  %v6703_v51 = vld [vmem:[#allocation3 + $0x31] sm:$0xff]  ;;  %v16106_v17 = vld [vmem:[#allocation3 + $0x23] sm:$0xff] }
 0x8c2   : > { %v6705_v4 = vld [vmem:[#allocation3 + $0x51] sm:$0xff]  ;;  %v6953_v21 = vpack.c.bf16 %v16106_v17, %v6945_v11  ;;  %v16124_v59 = vld [vmem:[#allocation3 + $0x43] sm:$0xff]  ;;  %v7083_v32 = vpack.c.bf16 %v6703_v51, %v16070_v57 }
 0x8c3   : > { %13149 = vmatmul.mubr.msk.bf16.vlgmr.msra.gmra.mrb[24].mxu0 %vm435_vm1, %v16052_v42  ;;  %v16120_v31 = vld [vmem:[#allocation3 + $0x33] sm:$0xff]  ;;  %v14370_v36 = vld [vmem:[%s16957_s6 + $0x620] sm:$0xff]   ;;  %v7084_v37 = vpack.c.bf16 %v6705_v4, %v6704_v46 }
 0x8c4   : > { %13157 = vmatpush3.bf16.msra.mxu0 %v14358_v50  ;;  %v16092_v50 = vpack.c.bf16 %v6704_v46, %v6703_v51  ;;  %v16128_v29 = vpack.c.bf16 %v16124_v59, %v16120_v31  ;;  %v16130_v19 = vld [vmem:[#allocation3 + $0x53] sm:$0xff]  ;;  %v14374_v51 = vld [vmem:[%s16957_s6 + $0x640] sm:$0xff]   ;;  %v14375_v46 = vld [vmem:[%s16957_s6 + $0x648] sm:$0xff]  }
 0x8c5   : > { %13158 = vmatprep.subr.bf16.mxu0 %v14359_v62  ;;  %v16074_v56 = vld [vmem:[#allocation3 + $0x82] sm:$0xff]  ;;  %v14369_v34 = vld [vmem:[%s16957_s6 + $0x618] sm:$0xff]   ;;  %v14372_v39 = vld [vmem:[%s16957_s6 + $0x630] sm:$0xff]  }
 0x8c6   : > { %v16064_v45 = vld [vmem:[#allocation3 + $0x62] sm:$0xff] }
 0x8c7   : > { %v16068_v27 = vpack.c.bf16 %v16064_v45, %v16062_v44  ;;  %v6706_v15 = vld [vmem:[#allocation3 + $0x61] sm:$0xff]  ;;  %v16169_v57 = vld [vmem:[#allocation3 + $0x91] sm:$0xff] }
 0x8c8   : > { %13159 = vmatpush3.bf16.msra.mxu0 %v14359_v62  ;;  %v16072_v49 = vld [vmem:[#allocation3 + $0x72] sm:$0xff]  ;;  %v16097_v0 = vpack.c.bf16 %v6706_v15, %v6705_v4  ;;  %v6708_v23 = vld [vmem:[#allocation3 + $0x81] sm:$0xff] }
 0x8c9   : > { %13152 = vmatprep.mubr.msk.bf16.mxu0 %vm435_vm1, %v16068_v27  ;;  %13160 = vmatprep.subr.bf16.mxu0 %v14360_v43  ;;  %v16080_v14 = vpack.c.bf16 %v16074_v56, %v16072_v49  ;;  %v6707_v30 = vld [vmem:[#allocation3 + $0x71] sm:$0xff]  ;;  %v16122_v3 = vld [vmem:[#allocation3 + $0x63] sm:$0xff] }
 0x8ca   : > { %v16108_v24 = vpack.c.bf16 %v6708_v23, %v6707_v30  ;;  %v16137_v54 = vpack.c.bf16 %v16122_v3, %v16130_v19  ;;  %v6951_v18 = vld [vmem:[#allocation3 + $0x73] sm:$0xff]  ;;  %v16146_v52 = vld [vmem:[#allocation3 + $0x83] sm:$0xff] }
 0x8cb   : > { %13153 = vmatmul.mubr.msk.bf16.gmra.mrb[28].mxu0 %vm435_vm1, %v16080_v14  ;;  %v16149_v22 = vpack.c.bf16 %v16146_v52, %v6951_v18  ;;  %v14371_v62 = vld [vmem:[%s16957_s6 + $0x628] sm:$0xff]   ;;  %v16194_v4 = vld [vmem:[#allocation3 + $0x92] sm:$0xff] }
 0x8cc   : > { %13161 = vmatpush3.bf16.msra.mxu0 %v14360_v43  ;;  %13164 = vmatprep.mubr.msk.bf16.mxu0 %vm435_vm1, %v6709_v25  ;;  %v7085_v43 = vpack.c.bf16 %v6707_v30, %v6706_v15  ;;  %v14373_v25 = vld [vmem:[%s16957_s6 + $0x638] sm:$0xff]   ;;  %v7214_v15 = vpack.c.bf16 %v16062_v44, %v16046_v40  ;;  %v7216_v40 = vpack.c.bf16 %v16194_v4, %v16074_v56  ;;  %v14380_v30 = vld [vmem:[%s16957_s6 + $0x670] sm:$0xff]  }
 0x8cd   : > { %13162 = vmatprep.subr.bf16.mxu0 %v14361_v20  ;;  %v14377_v44 = vld [vmem:[%s16957_s6 + $0x658] sm:$0xff]   ;;  %v7344_v56 = vpack.c.bf16 %v16130_v19, %v16124_v59  ;;  %v7602_v59 = vld [vmem:[#allocation3 + $0xa2] sm:$0xff] }
 0x8ce   : > { %v7342_v11 = vld [vmem:[#allocation3 + $0x93] sm:$0xff]  ;;  %v7606_v19 = vpack.c.bf16 %v7602_v59, %v16194_v4 }
 0x8d0   : > { %13163 = vmatpush3.bf16.msra.mxu0 %v14361_v20  ;;  %v7086_v20 = vpack.c.bf16 %v16169_v57, %v6708_v23  ;;  %v14381_v23 = vld [vmem:[%s16957_s6 + $0x678] sm:$0xff]  }
 0x8d1   : > { %13172 = vmatprep.subr.bf16.mxu0 %v14362_v16 }
 0x8d3   : > { %13165 = vmatmul.mubr.msk.bf16.vlgmr.msra.gmra.mrb[24].mxu0 %vm435_vm1, %v16092_v50 }
 0x8d4   : > { %13173 = vmatpush3.bf16.msra.mxu0 %v14362_v16  ;;  %13168 = vmatprep.mubr.msk.bf16.mxu0 %vm435_vm1, %v16097_v0  ;;  %v7213_v16 = vpack.c.bf16 %v16044_v38, %v16039_v35  ;;  %v7215_v35 = vpack.c.bf16 %v16072_v49, %v16064_v45  ;;  %v14376_v38 = vld [vmem:[%s16957_s6 + $0x650] sm:$0xff]   ;;  %v7343_v45 = vpack.c.bf16 %v16120_v31, %v16106_v17  ;;  %v14378_v49 = vld [vmem:[%s16957_s6 + $0x660] sm:$0xff]  }
 0x8d5   : > { %13174 = vmatprep.subr.bf16.mxu0 %v14363_v61  ;;  %v7346_v17 = vpack.c.bf16 %v7342_v11, %v16146_v52  ;;  %v14394_v52 = vld [vmem:[%s16959_s8] sm:$0xff]  }
 0x8d8   : > { %13175 = vmatpush3.bf16.msra.mxu0 %v14363_v61  ;;  %v14379_v61 = vld [vmem:[%s16957_s6 + $0x668] sm:$0xff]  }
 0x8d9   : > { %13176 = vmatprep.subr.bf16.mxu0 %v14364_v5 }
 0x8db   : > { %13169 = vmatmul.mubr.msk.bf16.gmra.mrb[28].mxu0 %vm435_vm1, %v16108_v24 }
 0x8dc   : > { %13177 = vmatpush3.bf16.msra.mxu0 %v14364_v5  ;;  %13180 = vmatprep.mubr.msk.bf16.mxu0 %vm435_vm1, %v6953_v21  ;;  %v7345_v5 = vpack.c.bf16 %v6951_v18, %v16122_v3  ;;  %v14383_v21 = vld [vmem:[%s16957_s6 + $0x688] sm:$0xff]   ;;  %v14385_v3 = vld [vmem:[%s16957_s6 + $0x698] sm:$0xff]  }
 0x8dd   : > { %13178 = vmatprep.subr.bf16.mxu0 %v14365_v2  ;;  %v14393_v18 = vld [vmem:[%s16959_s8 + $0x38] sm:$0xff]  }
 0x8e0   : > { %13179 = vmatpush3.bf16.msra.mxu0 %v14365_v2  ;;  %v14382_v2 = vld [vmem:[%s16957_s6 + $0x680] sm:$0xff]  }
 0x8e1   : > { %13188 = vmatprep.subr.bf16.mxu0 %v14366_v12 }
 0x8e3   : > { %13181 = vmatmul.mubr.msk.bf16.vlgmr.msra.gmra.mrb[24].mxu0 %vm435_vm1, %v16128_v29 }
 0x8e4   : > { %13189 = vmatpush3.bf16.msra.mxu0 %v14366_v12  ;;  %13184 = vmatprep.mubr.msk.bf16.mxu0 %vm435_vm1, %v16137_v54  ;;  %v7472_v12 = vld [vmem:[#allocation3 + $0xa1] sm:$0xff] }
 0x8e5   : > { %13190 = vmatprep.subr.bf16.mxu0 %v14367_v1  ;;  %v7476_v31 = vpack.c.bf16 %v7472_v12, %v16169_v57 }
 0x8e8   : > { %13191 = vmatpush3.bf16.msra.mxu0 %v14367_v1  ;;  %v14389_v1 = vld [vmem:[%s16957_s6 + $0x6b8] sm:$0xff]  }
 0x8e9   : > { %13192 = vmatprep.subr.bf16.mxu0 %v14368_v48 }
 0x8eb   : > { %13185 = vmatmul.mubr.msk.bf16.gmra.mrb[28].mxu0 %vm435_vm1, %v16149_v22 }
 0x8ec   : > { %13193 = vmatpush3.bf16.msra.mxu0 %v14368_v48  ;;  %13196 = vmatprep.mubr.msk.bf16.mxu0 %vm435_vm1, %v7083_v32  ;;  %v14390_v48 = vld [vmem:[%s16959_s8 + $0x20] sm:$0xff]  }
 0x8ed   : > { %13194 = vmatprep.subr.bf16.mxu0 %v14369_v34  ;;  %13284 = vmatprep.subr.bf16.mxu1 %v14390_v48 }
 0x8ee   : > { %13285 = vmatpush3.bf16.msra.mxu1 %v14390_v48 }
 0x8f0   : > { %13195 = vmatpush3.bf16.msra.mxu0 %v14369_v34 }
 0x8f1   : > { %13204 = vmatprep.subr.bf16.mxu0 %v14370_v36 }
 0x8f3   : > { %13197 = vmatmul.mubr.msk.bf16.vlgmr.msra.gmra.mrb[24].mxu0 %vm435_vm1, %v7084_v37 }
 0x8f4   : > { %13205 = vmatpush3.bf16.msra.mxu0 %v14370_v36  ;;  %13200 = vmatprep.mubr.msk.bf16.mxu0 %vm435_vm1, %v7085_v43 }
 0x8f5   : > { %13206 = vmatprep.subr.bf16.mxu0 %v14371_v62 }
 0x8f8   : > { %13207 = vmatpush3.bf16.msra.mxu0 %v14371_v62 }
 0x8f9   : > { %13208 = vmatprep.subr.bf16.mxu0 %v14372_v39 }
 0x8fb   : > { %13201 = vmatmul.mubr.msk.bf16.gmra.mrb[28].mxu0 %vm435_vm1, %v7086_v20 }
 0x8fc   : > { %13209 = vmatpush3.bf16.msra.mxu0 %v14372_v39  ;;  %13212 = vmatprep.mubr.msk.bf16.mxu0 %vm435_vm1, %v7213_v16 }
 0x8fd   : > { %13210 = vmatprep.subr.bf16.mxu0 %v14373_v25 }
 0x900   : > { %13211 = vmatpush3.bf16.msra.mxu0 %v14373_v25 }
 0x901   : > { %13220 = vmatprep.subr.bf16.mxu0 %v14374_v51 }
 0x903   : > { %13213 = vmatmul.mubr.msk.bf16.vlgmr.msra.gmra.mrb[24].mxu0 %vm435_vm1, %v7214_v15 }
 0x904   : > { %13221 = vmatpush3.bf16.msra.mxu0 %v14374_v51  ;;  %13216 = vmatprep.mubr.msk.bf16.mxu0 %vm435_vm1, %v7215_v35 }
 0x905   : > { %13222 = vmatprep.subr.bf16.mxu0 %v14375_v46 }
 0x908   : > { %13223 = vmatpush3.bf16.msra.mxu0 %v14375_v46 }
 0x909   : > { %13224 = vmatprep.subr.bf16.mxu0 %v14376_v38 }
 0x90b   : > { %13217 = vmatmul.mubr.msk.bf16.gmra.mrb[28].mxu0 %vm435_vm1, %v7216_v40 }
 0x90c   : > { %13225 = vmatpush3.bf16.msra.mxu0 %v14376_v38  ;;  %13228 = vmatprep.mubr.msk.bf16.mxu0 %vm435_vm1, %v7343_v45 }
 0x90d   : > { %13226 = vmatprep.subr.bf16.mxu0 %v14377_v44 }
 0x910   : > { %13227 = vmatpush3.bf16.msra.mxu0 %v14377_v44 }
 0x911   : > { %13236 = vmatprep.subr.bf16.mxu0 %v14378_v49 }
 0x913   : > { %13229 = vmatmul.mubr.msk.bf16.vlgmr.msra.gmra.mrb[24].mxu0 %vm435_vm1, %v7344_v56 }
 0x914   : > { %13237 = vmatpush3.bf16.msra.mxu0 %v14378_v49  ;;  %13232 = vmatprep.mubr.msk.bf16.mxu0 %vm435_vm1, %v7345_v5  ;;  %v7912_v49 = vld [vmem:[#allocation2 + $0x12] sm:$0xff] }
 0x915   : > { %13238 = vmatprep.subr.bf16.mxu0 %v14379_v61 }
 0x918   : > { %13239 = vmatpush3.bf16.msra.mxu0 %v14379_v61 }
 0x919   : > { %13240 = vmatprep.subr.bf16.mxu0 %v14380_v30 }
 0x91b   : > { %13233 = vmatmul.mubr.msk.bf16.gmra.mrb[28].mxu0 %vm435_vm1, %v7346_v17 }
 0x91c   : > { %13241 = vmatpush3.bf16.msra.mxu0 %v14380_v30  ;;  %13244 = vmatprep.mubr.msk.bf16.mxu0 %vm435_vm1, %v16092_v50  ;;  %v14384_v50 = vld [vmem:[%s16957_s6 + $0x690] sm:$0xff]  }
 0x91d   : > { %13242 = vmatprep.subr.bf16.mxu0 %v14381_v23 }
 0x920   : > { %13243 = vmatpush3.bf16.msra.mxu0 %v14381_v23  ;;  %v7892_v23 = vld [vmem:[#allocation2 + $0x11] sm:$0xff] }
 0x921   : > { %13252 = vmatprep.subr.bf16.mxu0 %v14382_v2 }
 0x923   : > { %13245 = vmatmul.mubr.msk.bf16.vlgmr.msra.gmra.mrb[24].mxu0 %vm435_vm1, %v16097_v0  ;;  %v14386_v0 = vld [vmem:[%s16957_s6 + $0x6a0] sm:$0xff]  }
 0x924   : > { %13253 = vmatpush3.bf16.msra.mxu0 %v14382_v2  ;;  %13248 = vmatprep.mubr.msk.bf16.mxu0 %vm435_vm1, %v16108_v24  ;;  %v14387_v24 = vld [vmem:[%s16957_s6 + $0x6a8] sm:$0xff]  }
 0x925   : > { %13254 = vmatprep.subr.bf16.mxu0 %v14383_v21 }
 0x928   : > { %13255 = vmatpush3.bf16.msra.mxu0 %v14383_v21 }
 0x929   : > { %13256 = vmatprep.subr.bf16.mxu0 %v14384_v50 }
 0x92b   : > { %13249 = vmatmul.mubr.msk.bf16.gmra.mrb[28].mxu0 %vm435_vm1, %v7476_v31  ;;  %v14397_v31 = vld [vmem:[%s16959_s8 + $0x18] sm:$0xff]  }
 0x92c   : > { %13257 = vmatpush3.bf16.msra.mxu0 %v14384_v50  ;;  %13260 = vmatprep.mubr.msk.bf16.mxu0 %vm435_vm1, %v16052_v42  ;;  %v14388_v42 = vld [vmem:[%s16957_s6 + $0x6b0] sm:$0xff]  }
 0x92d   : > { %13258 = vmatprep.subr.bf16.mxu0 %v14385_v3 }
 0x930   : > { %13259 = vmatpush3.bf16.msra.mxu0 %v14385_v3 }
 0x931   : > { %13268 = vmatprep.subr.bf16.mxu0 %v14386_v0 }
 0x933   : > { %13261 = vmatmul.mubr.msk.bf16.vlgmr.msra.gmra.mrb[24].mxu0 %vm435_vm1, %v16068_v27  ;;  %v7732_v27 = vld [vmem:[#allocation3 + $0xa3] sm:$0xff] }
 0x934   : > { %13269 = vmatpush3.bf16.msra.mxu0 %v14386_v0  ;;  %13264 = vmatprep.mubr.msk.bf16.mxu0 %vm435_vm1, %v16080_v14  ;;  %v7736_v14 = vpack.c.bf16 %v7732_v27, %v7342_v11  ;;  %v14427_v0 = vld [vmem:[%s16961_s10 + $0x80] sm:$0xff]  }
 0x935   : > { %13270 = vmatprep.subr.bf16.mxu0 %v14387_v24 }
 0x938   : > { %13271 = vmatpush3.bf16.msra.mxu0 %v14387_v24  ;;  %v14429_v24 = vld [vmem:[%s16961_s10 + $0x88] sm:$0xff]  }
 0x939   : > { %13272 = vmatprep.subr.bf16.mxu0 %v14388_v42 }
 0x93b   : > { %13265 = vmatmul.mubr.msk.bf16.gmra.mrb[28].mxu0 %vm435_vm1, %v7606_v19 }
 0x93c   : > { %13273 = vmatpush3.bf16.msra.mxu0 %v14388_v42  ;;  %13276 = vmatprep.mubr.msk.bf16.mxu0 %vm435_vm1, %v16128_v29  ;;  %v14391_v29 = vld [vmem:[%s16959_s8 + $0x28] sm:$0xff]   ;;  %v14398_v42 = vld [vmem:[%s16959_s8 + $0x40] sm:$0xff]  }
 0x93d   : > { %13274 = vmatprep.subr.bf16.mxu0 %v14389_v1  ;;  %13286 = vmatprep.subr.bf16.mxu1 %v14391_v29 }
 0x93e   : > { %13287 = vmatpush3.bf16.msra.mxu1 %v14391_v29  ;;  %v14399_v29 = vld [vmem:[%s16959_s8 + $0x48] sm:$0xff]  }
 0x940   : > { %13275 = vmatpush3.bf16.msra.mxu0 %v14389_v1  ;;  %v14431_v1 = vld [vmem:[%s16961_s10 + $0x90] sm:$0xff]  }
 0x941   : > { %13476 = vmatprep.subr.bf16.mxu0 %v14427_v0 }
 0x943   : > { %13277 = vmatmul.mubr.msk.bf16.vlgmr.msra.gmra.mrb[24].mxu0 %vm435_vm1, %v16137_v54  ;;  %v14392_v54 = vld [vmem:[%s16959_s8 + $0x30] sm:$0xff]  }
 0x944   : > { %13280 = vmatprep.mubr.msk.bf16.mxu0 %vm435_vm1, %v16149_v22  ;;  %13288 = vmatprep.subr.bf16.mxu1 %v14392_v54  ;;  %v11425_v22 = vld [vmem:[%s16958_s7 + $0x5] ss:$0 sm:$0xff] }
 0x945   : > { %13289 = vmatpush3.bf16.msra.mxu1 %v14392_v54  ;;  %13477 = vmatpush3.bf16.msra.mxu0 %v14427_v0  ;;  %v14419_v0 = vld [vmem:[%s16959_s8 + $0xe8] sm:$0xff]  }
 0x946   : > { %13290 = vmatprep.subr.bf16.mxu1 %v14393_v18  ;;  %13478 = vmatprep.subr.bf16.mxu0 %v14429_v24 }
 0x949   : > { %13291 = vmatpush3.bf16.msra.mxu1 %v14393_v18  ;;  %13479 = vmatpush3.bf16.msra.mxu0 %v14429_v24  ;;  %v14433_v18 = vld [vmem:[%s16961_s10 + $0x98] sm:$0xff]   ;;  %v14420_v24 = vld [vmem:[%s16959_s8 + $0xf0] sm:$0xff]  }
 0x94a   : > { %13300 = vmatprep.subr.bf16.mxu1 %v14394_v52  ;;  %13480 = vmatprep.subr.bf16.mxu0 %v14431_v1 }
 0x94b   : > { %13281 = vmatmul.mubr.msk.bf16.gmra.mrb[28].mxu0 %vm435_vm1, %v7736_v14 }
 0x94d   : > { %13481 = vmatpush3.bf16.msra.mxu0 %v14431_v1  ;;  %v14422_v1 = vld [vmem:[%s16959_s8 + $0x100] sm:$0xff]  }
 0x94e   : > { %13482 = vmatprep.subr.bf16.mxu0 %v14433_v18 }
 0x951   : > { %13483 = vmatpush3.bf16.msra.mxu0 %v14433_v18  ;;  %v8922_v18 = vld [vmem:[#allocation2 + $0xa3] sm:$0xff] }
 0xa16   : > { %v13278_v34 = vpop.f32.mrb[24].mxu0 }
 0xa17   : > { %v7862_v32 = vadd.f32 %v13278_v34, %v11425_v22  ;;  %v7816_v36 = vpop.f32.mrb[25].mxu0  ;;  %v8135_v34 = vld [vmem:[#allocation2 + $0x13] sm:$0xff] }
 0xa18   : > { %v7860_v37 = vadd.f32 %v11425_v22, %v7816_v36  ;;  %v13279_v62 = vpop.f32.mrb[26].mxu0 }
 0xa19   : > { %v7870_v43 = vadd.f32 %v7862_v32, %v5504_v55  ;;  %v7863_v39 = vadd.f32 %v13279_v62, %v11425_v22  ;;  %v7819_v57 = vpop.f32.mrb[27].mxu0  ;;  %v14401_v62 = vld [vmem:[%s16959_s8 + $0x58] sm:$0xff]  }
 0xa1a   : > { %v7868_v20 = vadd.f32 %v7860_v37, %v5502_v63  ;;  %v7861_v25 = vadd.f32 %v11425_v22, %v7819_v57 }
 0xa1b   : > { %v7878_v16 = vmax.f32 %v7870_v43, 0.0  ;;  %v7871_v51 = vadd.f32 %v7863_v39, %v5505_v10  ;;  %v14402_v39 = vld [vmem:[%s16959_s8 + $0x60] sm:$0xff]  }
 0xa1c   : > { %v7876_v15 = vmax.f32 %v7868_v20, 0.0  ;;  %v7869_v46 = vadd.f32 %v7861_v25, %v5503_v13 }
 0xa1d   : > { %7886 = vst.msk [vmem:[#allocation2 + $0x42] sm:$0xff] %vm435_vm1, %v7878_v16  ;;  %v7879_v35 = vmax.f32 %v7871_v51, 0.0 }
 0xa1e   : > { %7884 = vst.msk [vmem:[#allocation2 + $0x22] sm:$0xff] %vm435_vm1, %v7876_v15  ;;  %v7877_v47 = vmax.f32 %v7869_v46, 0.0  ;;  %v13282_v55 = vpop.f32.mrb[28].mxu0  ;;  %v14403_v15 = vld [vmem:[%s16959_s8 + $0x68] sm:$0xff]  }
 0xa1f   : > { %7887 = vst.msk [vmem:[#allocation2 + $0x52] sm:$0xff] %vm435_vm1, %v7879_v35  ;;  %v7866_v53 = vadd.f32 %v13282_v55, %v11425_v22  ;;  %v7832_v63 = vpop.f32.mrb[29].mxu0  ;;  %v14404_v35 = vld [vmem:[%s16959_s8 + $0x70] sm:$0xff]  }
 0xa20   : > { %7885 = vst.msk [vmem:[#allocation2 + $0x32] sm:$0xff] %vm435_vm1, %v7877_v47  ;;  %v7864_v38 = vadd.f32 %v11425_v22, %v7832_v63  ;;  %v13283_v60 = vpop.f32.mrb[30].mxu0  ;;  %v14405_v63 = vld [vmem:[%s16959_s8 + $0x78] sm:$0xff]  }
 0xa21   : > { %v7874_v10 = vadd.f32 %v7866_v53, %v5508_v8  ;;  %v7867_v6 = vadd.f32 %v13283_v60, %v11425_v22  ;;  %v7835_v13 = vpop.f32.mrb[31].mxu0  ;;  %v14406_v60 = vld [vmem:[%s16959_s8 + $0x80] sm:$0xff]  }
 0xa22   : > { %v7872_v4 = vadd.f32 %v7864_v38, %v5506_v9  ;;  %v7865_v40 = vadd.f32 %v11425_v22, %v7835_v13 }
 0xa23   : > { %v7882_v44 = vmax.f32 %v7874_v10, 0.0  ;;  %v7875_v45 = vadd.f32 %v7867_v6, %v5509_v7  ;;  %v14395_v7 = vld [vmem:[%s16959_s8 + $0x8] sm:$0xff]  }
 0xa24   : > { %v7880_v56 = vmax.f32 %v7872_v4, 0.0  ;;  %v7873_v61 = vadd.f32 %v7865_v40, %v5507_v28  ;;  %v16317_v41 = vld [vmem:[#allocation2 + $0x42] sm:$0xff]  ;;  %v14396_v28 = vld [vmem:[%s16959_s8 + $0x10] sm:$0xff]  }
 0xa25   : > { %7890 = vst.msk [vmem:[#allocation2 + $0x82] sm:$0xff] %vm435_vm1, %v7882_v44  ;;  %v7883_v5 = vmax.f32 %v7875_v45, 0.0  ;;  %v16310_v58 = vld [vmem:[#allocation2 + $0x22] sm:$0xff]  ;;  %v14408_v4 = vld [vmem:[%s16959_s8 + $0x90] sm:$0xff]   ;;  %v14409_v45 = vld [vmem:[%s16959_s8 + $0x98] sm:$0xff]  }
 0xa26   : > { %7888 = vst.msk [vmem:[#allocation2 + $0x62] sm:$0xff] %vm435_vm1, %v7880_v56  ;;  %v7881_v8 = vmax.f32 %v7873_v61, 0.0  ;;  %v7920_v33 = vpack.c.bf16 %v16310_v58, %v7912_v49  ;;  %v16333_v30 = vld [vmem:[#allocation2 + $0x52] sm:$0xff]  ;;  %v16341_v2 = vld [vmem:[#allocation2 + $0x21] sm:$0xff] }
 0xa27   : > { %7891 = vst.msk [vmem:[#allocation2 + $0x92] sm:$0xff] %vm435_vm1, %v7883_v5  ;;  %v16315_v9 = vld [vmem:[#allocation2 + $0x32] sm:$0xff]  ;;  %v7900_v3 = vpack.c.bf16 %v16341_v2, %v7892_v23  ;;  %v16374_v27 = vld [vmem:[#allocation2 + $0x41] sm:$0xff]  ;;  %v8404_v61 = vpack.c.bf16 %v16333_v30, %v16317_v41 }
 0xa28   : > { %7889 = vst.msk [vmem:[#allocation2 + $0x72] sm:$0xff] %vm435_vm1, %v7881_v8  ;;  %13292 = vmatprep.mubr.msk.bf16.mxu1 %vm435_vm1, %v7920_v33  ;;  %v16323_v26 = vpack.c.bf16 %v16317_v41, %v16315_v9  ;;  %v7894_v59 = vld [vmem:[#allocation2 + $0x31] sm:$0xff]  ;;  %v16395_v32 = vld [vmem:[#allocation2 + $0x23] sm:$0xff]  ;;  %v8403_v49 = vpack.c.bf16 %v16315_v9, %v16310_v58 }
 0xa29   : > { %v16377_v14 = vpack.c.bf16 %v16374_v27, %v7894_v59  ;;  %v7896_v48 = vld [vmem:[#allocation2 + $0x51] sm:$0xff]  ;;  %v8143_v43 = vpack.c.bf16 %v16395_v32, %v8135_v34  ;;  %v16413_v25 = vld [vmem:[#allocation2 + $0x43] sm:$0xff]  ;;  %v8273_v38 = vpack.c.bf16 %v7894_v59, %v16341_v2 }
 0xa2a   : > { %13293 = vmatmul.mubr.msk.bf16.vlgmr.msra.gmra.mrb[40].mxu1 %vm435_vm1, %v16323_v26  ;;  %v16409_v57 = vld [vmem:[#allocation2 + $0x33] sm:$0xff]  ;;  %v8274_v10 = vpack.c.bf16 %v7896_v48, %v16374_v27  ;;  %v14407_v6 = vld [vmem:[%s16959_s8 + $0x88] sm:$0xff]   ;;  %v14410_v56 = vld [vmem:[%s16959_s8 + $0xa0] sm:$0xff]  }
 0xa2b   : > { %13301 = vmatpush3.bf16.msra.mxu1 %v14394_v52  ;;  %v14400_v52 = vld [vmem:[%s16959_s8 + $0x50] sm:$0xff]   ;;  %v16417_v16 = vpack.c.bf16 %v16413_v25, %v16409_v57  ;;  %v14411_v5 = vld [vmem:[%s16959_s8 + $0xa8] sm:$0xff]   ;;  %v14413_v41 = vld [vmem:[%s16959_s8 + $0xb8] sm:$0xff]  }
 0xa2c   : > { %13302 = vmatprep.subr.bf16.mxu1 %v14395_v7  ;;  %v16345_v50 = vld [vmem:[#allocation2 + $0x82] sm:$0xff]  ;;  %v16419_v51 = vld [vmem:[#allocation2 + $0x53] sm:$0xff] }
 0xa2d   : > { %v16335_v11 = vld [vmem:[#allocation2 + $0x62] sm:$0xff]  ;;  %v14412_v8 = vld [vmem:[%s16959_s8 + $0xb0] sm:$0xff]  }
 0xa2e   : > { %v16339_v17 = vpack.c.bf16 %v16335_v11, %v16333_v30  ;;  %v16369_v19 = vld [vmem:[#allocation2 + $0x61] sm:$0xff]  ;;  %v16460_v40 = vld [vmem:[#allocation2 + $0x91] sm:$0xff]  ;;  %v8534_v30 = vpack.c.bf16 %v16419_v51, %v16413_v25 }
 0xa2f   : > { %13303 = vmatpush3.bf16.msra.mxu1 %v14395_v7  ;;  %v16343_v21 = vld [vmem:[#allocation2 + $0x72] sm:$0xff]  ;;  %v16383_v54 = vpack.c.bf16 %v16369_v19, %v7896_v48  ;;  %v7899_v36 = vld [vmem:[#allocation2 + $0x81] sm:$0xff]  ;;  %v8533_v7 = vpack.c.bf16 %v16409_v57, %v16395_v32 }
 0xa30   : > { %13296 = vmatprep.mubr.msk.bf16.mxu1 %vm435_vm1, %v16339_v17  ;;  %13304 = vmatprep.subr.bf16.mxu1 %v14396_v28  ;;  %v16351_v12 = vpack.c.bf16 %v16345_v50, %v16343_v21  ;;  %v7898_v22 = vld [vmem:[#allocation2 + $0x71] sm:$0xff]  ;;  %v16411_v20 = vld [vmem:[#allocation2 + $0x63] sm:$0xff]  ;;  %v8276_v44 = vpack.c.bf16 %v16460_v40, %v7899_v36  ;;  %v8405_v58 = vpack.c.bf16 %v16343_v21, %v16335_v11 }
 0xa31   : > { %v16397_v37 = vpack.c.bf16 %v7899_v36, %v7898_v22  ;;  %v16426_v46 = vpack.c.bf16 %v16411_v20, %v16419_v51  ;;  %v8141_v47 = vld [vmem:[#allocation2 + $0x73] sm:$0xff]  ;;  %v16435_v55 = vld [vmem:[#allocation2 + $0x83] sm:$0xff]  ;;  %v8275_v13 = vpack.c.bf16 %v7898_v22, %v16369_v19 }
 0xa32   : > { %13297 = vmatmul.mubr.msk.bf16.gmra.mrb[44].mxu1 %vm435_vm1, %v16351_v12  ;;  %v16438_v53 = vpack.c.bf16 %v16435_v55, %v8141_v47  ;;  %v16485_v33 = vld [vmem:[#allocation2 + $0x92] sm:$0xff]  ;;  %v14415_v11 = vld [vmem:[%s16959_s8 + $0xc8] sm:$0xff]   ;;  %v8535_v23 = vpack.c.bf16 %v8141_v47, %v16411_v20  ;;  %v14434_v34 = vld [vmem:[%s16961_s10 + $0x60] sm:$0xff]  }
 0xa33   : > { %13305 = vmatpush3.bf16.msra.mxu1 %v14396_v28  ;;  %13308 = vmatprep.mubr.msk.bf16.mxu1 %vm435_vm1, %v7900_v3  ;;  %v8406_v9 = vpack.c.bf16 %v16485_v33, %v16345_v50  ;;  %v14414_v28 = vld [vmem:[%s16959_s8 + $0xc0] sm:$0xff]   ;;  %v14416_v2 = vld [vmem:[%s16959_s8 + $0xd0] sm:$0xff]   ;;  %v14421_v19 = vld [vmem:[%s16959_s8 + $0xf8] sm:$0xff]  }
 0xa34   : > { %13306 = vmatprep.subr.bf16.mxu1 %v14397_v31  ;;  %v8532_v21 = vld [vmem:[#allocation2 + $0x93] sm:$0xff]  ;;  %v14418_v3 = vld [vmem:[%s16959_s8 + $0xe0] sm:$0xff]   ;;  %v14423_v27 = vld [vmem:[%s16959_s8 + $0x108] sm:$0xff]  }
 0xa35   : > { %v8536_v50 = vpack.c.bf16 %v8532_v21, %v16435_v55  ;;  %v14432_v22 = vld [vmem:[%s16961_s10 + $0x58] sm:$0xff]   ;;  %v14436_v32 = vld [vmem:[%s16961_s10 + $0x68] sm:$0xff]   ;;  %v14435_v36 = vld [vmem:[%s16961_s10 + $0xa0] sm:$0xff]  }
 0xa36   : > { %13484 = vmatprep.subr.bf16.mxu0 %v14435_v36  ;;  %v14442_v57 = vld [vmem:[%s16961_s10] sm:$0xff]   ;;  %v14441_v20 = vld [vmem:[%s16961_s10 + $0xb8] sm:$0xff]  }
 0xa37   : > { %13307 = vmatpush3.bf16.msra.mxu1 %v14397_v31  ;;  %v14417_v31 = vld [vmem:[%s16959_s8 + $0xd8] sm:$0xff]   ;;  %13485 = vmatpush3.bf16.msra.mxu0 %v14435_v36  ;;  %v16604_v25 = vld [vmem:[%s16961_s10 + $0xc0] sm:$0xff]  }
 0xa38   : > { %13316 = vmatprep.subr.bf16.mxu1 %v14398_v42 }
 0xa3a   : > { %13309 = vmatmul.mubr.msk.bf16.vlgmr.msra.gmra.mrb[40].mxu1 %vm435_vm1, %v16377_v14 }
 0xa3b   : > { %13317 = vmatpush3.bf16.msra.mxu1 %v14398_v42  ;;  %13312 = vmatprep.mubr.msk.bf16.mxu1 %vm435_vm1, %v16383_v54  ;;  %v8662_v42 = vld [vmem:[#allocation2 + $0xa1] sm:$0xff] }
 0xa3c   : > { %13318 = vmatprep.subr.bf16.mxu1 %v14399_v29  ;;  %v8666_v59 = vpack.c.bf16 %v8662_v42, %v16460_v40 }
 0xa3f   : > { %13319 = vmatpush3.bf16.msra.mxu1 %v14399_v29  ;;  %v14425_v29 = vld [vmem:[%s16959_s8 + $0x118] sm:$0xff]  }
 0xa40   : > { %13320 = vmatprep.subr.bf16.mxu1 %v14400_v52 }
 0xa42   : > { %13313 = vmatmul.mubr.msk.bf16.gmra.mrb[44].mxu1 %vm435_vm1, %v16397_v37 }
 0xa43   : > { %13321 = vmatpush3.bf16.msra.mxu1 %v14400_v52  ;;  %13324 = vmatprep.mubr.msk.bf16.mxu1 %vm435_vm1, %v8143_v43  ;;  %v8926_v52 = vpack.c.bf16 %v8922_v18, %v8532_v21  ;;  %v14440_v43 = vld [vmem:[%s16961_s10 + $0x78] sm:$0xff]  }
 0xa44   : > { %13322 = vmatprep.subr.bf16.mxu1 %v14401_v62 }
 0xa47   : > { %13323 = vmatpush3.bf16.msra.mxu1 %v14401_v62  ;;  %v14437_v62 = vld [vmem:[%s16961_s10 + $0xa8] sm:$0xff]  }
 0xa48   : > { %13332 = vmatprep.subr.bf16.mxu1 %v14402_v39  ;;  %13486 = vmatprep.subr.bf16.mxu0 %v14437_v62 }
 0xa49   : > { %13487 = vmatpush3.bf16.msra.mxu0 %v14437_v62  ;;  %v14449_v62 = vld [vmem:[%s16961_s10 + $0xd8] sm:$0xff]  }
 0xa4a   : > { %13325 = vmatmul.mubr.msk.bf16.vlgmr.msra.gmra.mrb[40].mxu1 %vm435_vm1, %v16417_v16 }
 0xa4b   : > { %13333 = vmatpush3.bf16.msra.mxu1 %v14402_v39  ;;  %13328 = vmatprep.mubr.msk.bf16.mxu1 %vm435_vm1, %v16426_v46  ;;  %v14439_v39 = vld [vmem:[%s16961_s10 + $0xb0] sm:$0xff]  }
 0xa4c   : > { %13334 = vmatprep.subr.bf16.mxu1 %v14403_v15  ;;  %13488 = vmatprep.subr.bf16.mxu0 %v14439_v39 }
 0xa4d   : > { %13489 = vmatpush3.bf16.msra.mxu0 %v14439_v39  ;;  %v14452_v39 = vld [vmem:[%s16961_s10 + $0x28] sm:$0xff]  }
 0xa4e   : > { %13490 = vmatprep.subr.bf16.mxu0 %v14441_v20 }
 0xa4f   : > { %13335 = vmatpush3.bf16.msra.mxu1 %v14403_v15 }
 0xa50   : > { %13336 = vmatprep.subr.bf16.mxu1 %v14404_v35 }
 0xa51   : > { %13491 = vmatpush3.bf16.msra.mxu0 %v14441_v20  ;;  %v14451_v20 = vld [vmem:[%s16961_s10 + $0xe0] sm:$0xff]  }
 0xa52   : > { %13329 = vmatmul.mubr.msk.bf16.gmra.mrb[44].mxu1 %vm435_vm1, %v16438_v53  ;;  %13500 = vmatprep.subr.bf16.mxu0 %v16604_v25 }
 0xa53   : > { %13337 = vmatpush3.bf16.msra.mxu1 %v14404_v35  ;;  %13340 = vmatprep.mubr.msk.bf16.mxu1 %vm435_vm1, %v8273_v38  ;;  %v9105_v38 = vld [vmem:[#allocation4 + $0x1] sm:$0xff] }
 0xa54   : > { %13338 = vmatprep.subr.bf16.mxu1 %v14405_v63 }
 0xa57   : > { %13339 = vmatpush3.bf16.msra.mxu1 %v14405_v63 }
 0xa58   : > { %13348 = vmatprep.subr.bf16.mxu1 %v14406_v60 }
 0xa5a   : > { %13341 = vmatmul.mubr.msk.bf16.vlgmr.msra.gmra.mrb[40].mxu1 %vm435_vm1, %v8274_v10 }
 0xa5b   : > { %13349 = vmatpush3.bf16.msra.mxu1 %v14406_v60  ;;  %13344 = vmatprep.mubr.msk.bf16.mxu1 %vm435_vm1, %v8275_v13 }
 0xa5c   : > { %13350 = vmatprep.subr.bf16.mxu1 %v14407_v6 }
 0xa5f   : > { %13351 = vmatpush3.bf16.msra.mxu1 %v14407_v6 }
 0xa60   : > { %13352 = vmatprep.subr.bf16.mxu1 %v14408_v4 }
 0xa62   : > { %13345 = vmatmul.mubr.msk.bf16.gmra.mrb[44].mxu1 %vm435_vm1, %v8276_v44 }
 0xa63   : > { %13353 = vmatpush3.bf16.msra.mxu1 %v14408_v4  ;;  %13356 = vmatprep.mubr.msk.bf16.mxu1 %vm435_vm1, %v8403_v49  ;;  %v14444_v49 = vld [vmem:[%s16961_s10 + $0x8] sm:$0xff]  }
 0xa64   : > { %13354 = vmatprep.subr.bf16.mxu1 %v14409_v45 }
 0xa67   : > { %13355 = vmatpush3.bf16.msra.mxu1 %v14409_v45 }
 0xa68   : > { %13364 = vmatprep.subr.bf16.mxu1 %v14410_v56 }
 0xa6a   : > { %13357 = vmatmul.mubr.msk.bf16.vlgmr.msra.gmra.mrb[40].mxu1 %vm435_vm1, %v8404_v61 }
 0xa6b   : > { %13365 = vmatpush3.bf16.msra.mxu1 %v14410_v56  ;;  %13360 = vmatprep.mubr.msk.bf16.mxu1 %vm435_vm1, %v8405_v58 }
 0xa6c   : > { %13366 = vmatprep.subr.bf16.mxu1 %v14411_v5 }
 0xa6f   : > { %13367 = vmatpush3.bf16.msra.mxu1 %v14411_v5 }
 0xa70   : > { %13368 = vmatprep.subr.bf16.mxu1 %v14412_v8 }
 0xa72   : > { %13361 = vmatmul.mubr.msk.bf16.gmra.mrb[44].mxu1 %vm435_vm1, %v8406_v9 }
 0xa73   : > { %13369 = vmatpush3.bf16.msra.mxu1 %v14412_v8  ;;  %13372 = vmatprep.mubr.msk.bf16.mxu1 %vm435_vm1, %v8533_v7  ;;  %v9360_v7 = vld [vmem:[#allocation4 + $0x2] sm:$0xff] }
 0xa74   : > { %13370 = vmatprep.subr.bf16.mxu1 %v14413_v41 }
 0xa77   : > { %13371 = vmatpush3.bf16.msra.mxu1 %v14413_v41 }
 0xa78   : > { %13380 = vmatprep.subr.bf16.mxu1 %v14414_v28 }
 0xa7a   : > { %13373 = vmatmul.mubr.msk.bf16.vlgmr.msra.gmra.mrb[40].mxu1 %vm435_vm1, %v8534_v30 }
 0xa7b   : > { %13381 = vmatpush3.bf16.msra.mxu1 %v14414_v28  ;;  %13376 = vmatprep.mubr.msk.bf16.mxu1 %vm435_vm1, %v8535_v23 }
 0xa7c   : > { %13382 = vmatprep.subr.bf16.mxu1 %v14415_v11 }
 0xa7f   : > { %13383 = vmatpush3.bf16.msra.mxu1 %v14415_v11 }
 0xa80   : > { %13384 = vmatprep.subr.bf16.mxu1 %v14416_v2 }
 0xa82   : > { %13377 = vmatmul.mubr.msk.bf16.gmra.mrb[44].mxu1 %vm435_vm1, %v8536_v50 }
 0xa83   : > { %13385 = vmatpush3.bf16.msra.mxu1 %v14416_v2  ;;  %13388 = vmatprep.mubr.msk.bf16.mxu1 %vm435_vm1, %v16377_v14  ;;  %v8792_v14 = vld [vmem:[#allocation2 + $0xa2] sm:$0xff]  ;;  %v14446_v2 = vld [vmem:[%s16961_s10 + $0x10] sm:$0xff]  }
 0xa84   : > { %13386 = vmatprep.subr.bf16.mxu1 %v14417_v31  ;;  %v8796_v48 = vpack.c.bf16 %v8792_v14, %v16485_v33  ;;  %v14448_v14 = vld [vmem:[%s16961_s10 + $0x18] sm:$0xff]  }
 0xa87   : > { %13387 = vmatpush3.bf16.msra.mxu1 %v14417_v31 }
 0xa88   : > { %13396 = vmatprep.subr.bf16.mxu1 %v14418_v3 }
 0xa8a   : > { %13389 = vmatmul.mubr.msk.bf16.vlgmr.msra.gmra.mrb[40].mxu1 %vm435_vm1, %v16383_v54  ;;  %v14430_v54 = vld [vmem:[%s16961_s10 + $0x50] sm:$0xff]  }
 0xa8b   : > { %13397 = vmatpush3.bf16.msra.mxu1 %v14418_v3  ;;  %13392 = vmatprep.mubr.msk.bf16.mxu1 %vm435_vm1, %v16397_v37  ;;  %v14438_v37 = vld [vmem:[%s16961_s10 + $0x70] sm:$0xff]  }
 0xa8c   : > { %13398 = vmatprep.subr.bf16.mxu1 %v14419_v0 }
 0xa8f   : > { %13399 = vmatpush3.bf16.msra.mxu1 %v14419_v0 }
 0xa90   : > { %13400 = vmatprep.subr.bf16.mxu1 %v14420_v24 }
 0xa92   : > { %13393 = vmatmul.mubr.msk.bf16.gmra.mrb[44].mxu1 %vm435_vm1, %v8666_v59 }
 0xa93   : > { %13401 = vmatpush3.bf16.msra.mxu1 %v14420_v24  ;;  %13404 = vmatprep.mubr.msk.bf16.mxu1 %vm435_vm1, %v16323_v26  ;;  %v14424_v26 = vld [vmem:[%s16959_s8 + $0x110] sm:$0xff]  }
 0xa94   : > { %13402 = vmatprep.subr.bf16.mxu1 %v14421_v19 }
 0xa97   : > { %13403 = vmatpush3.bf16.msra.mxu1 %v14421_v19 }
 0xa98   : > { %13412 = vmatprep.subr.bf16.mxu1 %v14422_v1 }
 0xa9a   : > { %13405 = vmatmul.mubr.msk.bf16.vlgmr.msra.gmra.mrb[40].mxu1 %vm435_vm1, %v16339_v17  ;;  %v14426_v17 = vld [vmem:[%s16961_s10 + $0x40] sm:$0xff]  }
 0xa9b   : > { %13413 = vmatpush3.bf16.msra.mxu1 %v14422_v1  ;;  %13408 = vmatprep.mubr.msk.bf16.mxu1 %vm435_vm1, %v16351_v12  ;;  %v14428_v12 = vld [vmem:[%s16961_s10 + $0x48] sm:$0xff]  }
 0xa9c   : > { %13414 = vmatprep.subr.bf16.mxu1 %v14423_v27 }
 0xa9f   : > { %13415 = vmatpush3.bf16.msra.mxu1 %v14423_v27  ;;  %v14445_v27 = vld [vmem:[%s16961_s10 + $0xc8] sm:$0xff]  }
 0xaa0   : > { %13416 = vmatprep.subr.bf16.mxu1 %v14424_v26 }
 0xaa2   : > { %13409 = vmatmul.mubr.msk.bf16.gmra.mrb[44].mxu1 %vm435_vm1, %v8796_v48 }
 0xaa3   : > { %13417 = vmatpush3.bf16.msra.mxu1 %v14424_v26  ;;  %13420 = vmatprep.mubr.msk.bf16.mxu1 %vm435_vm1, %v16417_v16  ;;  %v11562_v16 = vld [vmem:[%s16960_s9] ss:$0 sm:$0xff] }
 0xaa4   : > { %13418 = vmatprep.subr.bf16.mxu1 %v14425_v29 }
 0xaa7   : > { %13419 = vmatpush3.bf16.msra.mxu1 %v14425_v29 }
 0xaa8   : > { %13428 = vmatprep.subr.bf16.mxu1 %v14426_v17 }
 0xaaa   : > { %13421 = vmatmul.mubr.msk.bf16.vlgmr.msra.gmra.mrb[40].mxu1 %vm435_vm1, %v16426_v46 }
 0xaab   : > { %13424 = vmatprep.mubr.msk.bf16.mxu1 %vm435_vm1, %v16438_v53  ;;  %13429 = vmatpush3.bf16.msra.mxu1 %v14426_v17  ;;  %v16688_v17 = vld [vmem:[#allocation4] sm:$0xff] }
 0xaac   : > { %13430 = vmatprep.subr.bf16.mxu1 %v14428_v12 }
 0xaaf   : > { %13431 = vmatpush3.bf16.msra.mxu1 %v14428_v12 }
 0xab0   : > { %13432 = vmatprep.subr.bf16.mxu1 %v14430_v54 }
 0xab2   : > { %13425 = vmatmul.mubr.msk.bf16.gmra.mrb[44].mxu1 %vm435_vm1, %v8926_v52  ;;  %v14450_v52 = vld [vmem:[%s16961_s10 + $0x20] sm:$0xff]  }
 0xab3   : > { %13433 = vmatpush3.bf16.msra.mxu1 %v14430_v54  ;;  %v14447_v54 = vld [vmem:[%s16961_s10 + $0xd0] sm:$0xff]  }
 0xab4   : > { %13434 = vmatprep.subr.bf16.mxu1 %v14432_v22 }
 0xab7   : > { %13435 = vmatpush3.bf16.msra.mxu1 %v14432_v22 }
 0xab8   : > { %13436 = vmatprep.subr.bf16.mxu1 %v14434_v34 }
 0xabb   : > { %13437 = vmatpush3.bf16.msra.mxu1 %v14434_v34 }
 0xabc   : > { %13438 = vmatprep.subr.bf16.mxu1 %v14436_v32 }
 0xabf   : > { %13439 = vmatpush3.bf16.msra.mxu1 %v14436_v32 }
 0xac0   : > { %13440 = vmatprep.subr.bf16.mxu1 %v14438_v37 }
 0xac3   : > { %13441 = vmatpush3.bf16.msra.mxu1 %v14438_v37 }
 0xac4   : > { %13442 = vmatprep.subr.bf16.mxu1 %v14440_v43 }
 0xac7   : > { %13443 = vmatpush3.bf16.msra.mxu1 %v14440_v43 }
 0xac8   : > { %13452 = vmatprep.subr.bf16.mxu1 %v14442_v57 }
 0xb7d   : > { %v13422_v51 = vpop.f32.mrb[40].mxu1 }
 0xb7e   : > { %v9054_v15 = vadd.f32 %v13422_v51, %v11562_v16  ;;  %v9006_v46 = vpop.f32.mrb[41].mxu1  ;;  %v14456_v51 = vld [vmem:[%s16961_s10 + $0x38] sm:$0xff]  }
 0xb7f   : > { %v9052_v35 = vadd.f32 %v11562_v16, %v9006_v46  ;;  %v13423_v47 = vpop.f32.mrb[42].mxu1 }
 0xb80   : > { %v16610_v55 = vmax.f32 %v9054_v15, 0.0  ;;  %v9055_v53 = vadd.f32 %v13423_v47, %v11562_v16  ;;  %v9009_v63 = vpop.f32.mrb[43].mxu1  ;;  %v14455_v15 = vld [vmem:[%s16961_s10 + $0xf0] sm:$0xff]  }
 0xb81   : > { %v16612_v60 = vmax.f32 %v9052_v35, 0.0  ;;  %v9053_v10 = vadd.f32 %v11562_v16, %v9009_v63  ;;  %v14457_v35 = vld [vmem:[%s16961_s10 + $0xf8] sm:$0xff]  }
 0xb82   : > { %9071 = vst [vmem:[#allocation4 + $0x31] sm:$0xff] %v16610_v55  ;;  %v16615_v6 = vmax.f32 %v9055_v53, 0.0 }
 0xb83   : > { %9069 = vst [vmem:[#allocation4 + $0x11] sm:$0xff] %v16612_v60  ;;  %v16618_v13 = vmax.f32 %v9053_v10, 0.0  ;;  %v9113_v4 = vpack.c.bf16 %v16612_v60, %v9105_v38  ;;  %v14458_v10 = vld [vmem:[%s16961_s10 + $0x100] sm:$0xff]  }
 0xb84   : > { %9072 = vst [vmem:[#allocation4 + $0x41] sm:$0xff] %v16615_v6  ;;  %v9669_v40 = vpack.c.bf16 %v16615_v6, %v16610_v55 }
 0xb85   : > { %9070 = vst [vmem:[#allocation4 + $0x21] sm:$0xff] %v16618_v13  ;;  %v13426_v44 = vpop.f32.mrb[44].mxu1  ;;  %13444 = vmatprep.mubr.bf16.mxu1 %v9113_v4  ;;  %v16627_v45 = vpack.c.bf16 %v16610_v55, %v16618_v13  ;;  %v9668_v56 = vpack.c.bf16 %v16618_v13, %v16612_v60  ;;  %v14465_v60 = vld [vmem:[%s16961_s10 + $0x138] sm:$0xff]   ;;  %v14466_v13 = vld [vmem:[%s16961_s10 + $0x140] sm:$0xff]  }
 0xb86   : > { %v9058_v61 = vadd.f32 %v13426_v44, %v11562_v16  ;;  %v9022_v5 = vpop.f32.mrb[45].mxu1  ;;  %v14470_v55 = vld [vmem:[%s16961_s10 + $0x160] sm:$0xff]  }
 0xb87   : > { %v9056_v58 = vadd.f32 %v11562_v16, %v9022_v5  ;;  %v13427_v8 = vpop.f32.mrb[46].mxu1  ;;  %13445 = vmatmul.mubr.bf16.vlgmr.msra.gmra.mrb[48].mxu1 %v16627_v45 }
 0xb88   : > { %v16635_v33 = vmax.f32 %v9058_v61, 0.0  ;;  %v9059_v9 = vadd.f32 %v13427_v8, %v11562_v16  ;;  %v9025_v41 = vpop.f32.mrb[47].mxu1  ;;  %13453 = vmatpush3.bf16.msra.mxu1 %v14442_v57  ;;  %v14460_v8 = vld [vmem:[%s16961_s10 + $0x110] sm:$0xff]  }
 0xb89   : > { %v16637_v28 = vmax.f32 %v9056_v58, 0.0  ;;  %v9057_v30 = vadd.f32 %v11562_v16, %v9025_v41  ;;  %13454 = vmatprep.subr.bf16.mxu1 %v14444_v49  ;;  %v16651_v31 = vld [vmem:[#allocation4 + $0x32] sm:$0xff]  ;;  %v14453_v16 = vld [vmem:[%s16961_s10 + $0xe8] sm:$0xff]  }
 0xb8a   : > { %9075 = vst [vmem:[#allocation4 + $0x71] sm:$0xff] %v16635_v33  ;;  %v16640_v11 = vmax.f32 %v9059_v9, 0.0  ;;  %v16642_v23 = vld [vmem:[#allocation4 + $0x12] sm:$0xff] }
 0xb8b   : > { %9073 = vst [vmem:[#allocation4 + $0x51] sm:$0xff] %v16637_v28  ;;  %v16648_v21 = vmax.f32 %v9057_v30, 0.0  ;;  %v9368_v50 = vpack.c.bf16 %v16642_v23, %v9360_v7  ;;  %v16655_v3 = vpack.c.bf16 %v16637_v28, %v16615_v6  ;;  %v16657_v0 = vld [vmem:[#allocation4 + $0x42] sm:$0xff]  ;;  %v9078_v42 = vld [vmem:[#allocation4 + $0x10] sm:$0xff]  ;;  %v14461_v7 = vld [vmem:[%s16961_s10 + $0x118] sm:$0xff]  }
 0xb8c   : > { %9076 = vst [vmem:[#allocation4 + $0x81] sm:$0xff] %v16640_v11  ;;  %v16660_v24 = vld [vmem:[#allocation4 + $0x22] sm:$0xff]  ;;  %13455 = vmatpush3.bf16.msra.mxu1 %v14444_v49  ;;  %v9671_v59 = vpack.c.bf16 %v16640_v11, %v16635_v33  ;;  %v9819_v19 = vpack.c.bf16 %v16657_v0, %v16651_v31  ;;  %v9085_v12 = vpack.c.bf16 %v9078_v42, %v16688_v17  ;;  %v9080_v47 = vld [vmem:[#allocation4 + $0x30] sm:$0xff] }
 0xb8d   : > { %9074 = vst [vmem:[#allocation4 + $0x61] sm:$0xff] %v16648_v21  ;;  %13492 = vmatprep.mubr.bf16.mxu0 %v9368_v50  ;;  %v16669_v1 = vpack.c.bf16 %v16651_v31, %v16660_v24  ;;  %13448 = vmatprep.mubr.bf16.mxu1 %v16655_v3  ;;  %v16677_v26 = vpack.c.bf16 %v16635_v33, %v16648_v21  ;;  %v9511_v34 = vld [vmem:[#allocation4 + $0x20] sm:$0xff]  ;;  %v14459_v49 = vld [vmem:[%s16961_s10 + $0x108] sm:$0xff]   ;;  %v14464_v50 = vld [vmem:[%s16961_s10 + $0x130] sm:$0xff]  }
 0xb8e   : > { %13456 = vmatprep.subr.bf16.mxu1 %v14446_v2  ;;  %v9670_v48 = vpack.c.bf16 %v16648_v21, %v16637_v28  ;;  %v9818_v29 = vpack.c.bf16 %v16660_v24, %v16642_v23  ;;  %v9518_v43 = vpack.c.bf16 %v9511_v34, %v9078_v42  ;;  %v16740_v53 = vpack.c.bf16 %v9080_v47, %v9511_v34  ;;  %v9513_v63 = vld [vmem:[#allocation4 + $0x40] sm:$0xff]  ;;  %v14468_v42 = vld [vmem:[%s16961_s10 + $0x150] sm:$0xff]   ;;  %v14471_v6 = vld [vmem:[%s16961_s10 + $0x168] sm:$0xff]  }
 0xb8f   : > { %13493 = vmatmul.mubr.bf16.vlgmr.msra.gmra.mrb[32].mxu0 %v16669_v1  ;;  %13449 = vmatmul.mubr.bf16.gmra.mrb[52].mxu1 %v16677_v26  ;;  %v9519_v44 = vpack.c.bf16 %v9513_v63, %v9080_v47  ;;  %v14462_v30 = vld [vmem:[%s16961_s10 + $0x120] sm:$0xff]   ;;  %v14473_v33 = vld [vmem:[%s16961_s10 + $0x178] sm:$0xff]   ;;  %v14475_v23 = vld [vmem:[%s16961_s10 + $0x188] sm:$0xff]  }
 0xb90   : > { %13501 = vmatpush3.bf16.msra.mxu0 %v16604_v25  ;;  %13457 = vmatpush3.bf16.msra.mxu1 %v14446_v2  ;;  %v14454_v25 = vld [vmem:[%s16961_s10 + $0x30] sm:$0xff]   ;;  %v14463_v2 = vld [vmem:[%s16961_s10 + $0x128] sm:$0xff]   ;;  %v14474_v28 = vld [vmem:[%s16961_s10 + $0x180] sm:$0xff]  }
 0xb91   : > { %13502 = vmatprep.subr.bf16.mxu0 %v14445_v27  ;;  %13468 = vmatprep.mubr.bf16.mxu1 %v9085_v12  ;;  %v16706_v36 = vld [vmem:[#allocation4 + $0x72] sm:$0xff]  ;;  %v14483_v12 = vld [vmem:[%s16961_s10 + $0x1c8] sm:$0xff]   ;;  %v14486_v34 = vld [vmem:[%s16961_s10 + $0x1e0] sm:$0xff]  }
 0xb92   : > { %v16695_v18 = vld [vmem:[#allocation4 + $0x52] sm:$0xff]  ;;  %13458 = vmatprep.subr.bf16.mxu1 %v14448_v14 }
 0xb93   : > { %v16702_v22 = vpack.c.bf16 %v16695_v18, %v16657_v0  ;;  %v9082_v46 = vld [vmem:[#allocation4 + $0x50] sm:$0xff]  ;;  %v16758_v9 = vld [vmem:[#allocation4 + $0x80] sm:$0xff]  ;;  %v14477_v31 = vld [vmem:[%s16961_s10 + $0x198] sm:$0xff]  }
 0xb94   : > { %13503 = vmatpush3.bf16.msra.mxu0 %v14445_v27  ;;  %v16704_v32 = vld [vmem:[#allocation4 + $0x62] sm:$0xff]  ;;  %13459 = vmatpush3.bf16.msra.mxu1 %v14448_v14  ;;  %v16742_v38 = vpack.c.bf16 %v9082_v46, %v9513_v63  ;;  %v9084_v5 = vld [vmem:[#allocation4 + $0x70] sm:$0xff]  ;;  %v14469_v27 = vld [vmem:[%s16961_s10 + $0x158] sm:$0xff]  }
 0xb95   : > { %13496 = vmatprep.mubr.bf16.mxu0 %v16702_v22  ;;  %13504 = vmatprep.subr.bf16.mxu0 %v14447_v54  ;;  %v16711_v37 = vpack.c.bf16 %v16706_v36, %v16704_v32  ;;  %v9820_v57 = vpack.c.bf16 %v16704_v32, %v16695_v18  ;;  %v9515_v4 = vld [vmem:[#allocation4 + $0x60] sm:$0xff]  ;;  %v9521_v41 = vpack.c.bf16 %v16758_v9, %v9084_v5  ;;  %v14476_v21 = vld [vmem:[%s16961_s10 + $0x190] sm:$0xff]  }
 0xb96   : > { %13460 = vmatprep.subr.bf16.mxu1 %v14450_v52  ;;  %v9520_v61 = vpack.c.bf16 %v9515_v4, %v9082_v46  ;;  %v16752_v58 = vpack.c.bf16 %v9084_v5, %v9515_v4  ;;  %v16830_v24 = vld [vmem:[#allocation4 + $0x82] sm:$0xff]  ;;  %v14480_v14 = vld [vmem:[%s16961_s10 + $0x1b0] sm:$0xff]   ;;  %v9972_v18 = vpack.c.bf16 %v16688_v17, %v16758_v9 }
 0xb97   : > { %13497 = vmatmul.mubr.bf16.gmra.mrb[36].mxu0 %v16711_v37  ;;  %v14478_v0 = vld [vmem:[%s16961_s10 + $0x1a0] sm:$0xff]   ;;  %v14487_v17 = vld [vmem:[%s16961_s10 + $0x1e8] sm:$0xff]   ;;  %v14488_v32 = vld [vmem:[%s16961_s10 + $0x1f0] sm:$0xff]  }
 0xb98   : > { %13505 = vmatpush3.bf16.msra.mxu0 %v14447_v54  ;;  %13516 = vmatprep.mubr.bf16.mxu0 %v9518_v43  ;;  %v14484_v54 = vld [vmem:[%s16961_s10 + $0x1d0] sm:$0xff]  }
 0xb99   : > { %13506 = vmatprep.subr.bf16.mxu0 %v14449_v62  ;;  %13461 = vmatpush3.bf16.msra.mxu1 %v14450_v52  ;;  %v14485_v52 = vld [vmem:[%s16961_s10 + $0x1d8] sm:$0xff]   ;;  %v14492_v43 = vld [vmem:[%s16961_s10 + $0x210] sm:$0xff]  }
 0xb9a   : > { %13462 = vmatprep.subr.bf16.mxu1 %v14452_v39 }
 0xb9c   : > { %13507 = vmatpush3.bf16.msra.mxu0 %v14449_v62  ;;  %v14491_v62 = vld [vmem:[%s16961_s10 + $0x208] sm:$0xff]  }
 0xb9d   : > { %13508 = vmatprep.subr.bf16.mxu0 %v14451_v20  ;;  %13463 = vmatpush3.bf16.msra.mxu1 %v14452_v39  ;;  %v10118_v39 = vld [vmem:[#allocation4 + $0x91] sm:$0xff] }
 0xb9e   : > { %13464 = vmatprep.subr.bf16.mxu1 %v14454_v25 }
 0xba0   : > { %13509 = vmatpush3.bf16.msra.mxu0 %v14451_v20  ;;  %v14493_v20 = vld [vmem:[%s16961_s10 + $0x218] sm:$0xff]  }
 0xba1   : > { %13510 = vmatprep.subr.bf16.mxu0 %v14453_v16  ;;  %13465 = vmatpush3.bf16.msra.mxu1 %v14454_v25  ;;  %v10268_v25 = vld [vmem:[#allocation4 + $0x92] sm:$0xff] }
 0xba2   : > { %13466 = vmatprep.subr.bf16.mxu1 %v14456_v51 }
 0xba4   : > { %13511 = vmatpush3.bf16.msra.mxu0 %v14453_v16  ;;  %v10272_v16 = vpack.c.bf16 %v10268_v25, %v16830_v24 }
 0xba5   : > { %13512 = vmatprep.subr.bf16.mxu0 %v14455_v15  ;;  %13467 = vmatpush3.bf16.msra.mxu1 %v14456_v51 }
 0xba8   : > { %13513 = vmatpush3.bf16.msra.mxu0 %v14455_v15  ;;  %13469 = vmatmul.mubr.bf16.vlgmr.msra.gmra.mrb[48].mxu1 %v16740_v53 }
 0xba9   : > { %13514 = vmatprep.subr.bf16.mxu0 %v14457_v35  ;;  %13472 = vmatprep.mubr.bf16.mxu1 %v16742_v38 }
 0xbac   : > { %13515 = vmatpush3.bf16.msra.mxu0 %v14457_v35 }
 0xbad   : > { %13524 = vmatprep.subr.bf16.mxu0 %v14458_v10 }
 0xbaf   : > { %13517 = vmatmul.mubr.bf16.vlgmr.msra.gmra.mrb[32].mxu0 %v9519_v44  ;;  %v10428_v44 = vld [vmem:[%s16914_s16 + $0x10] sm:$0xff] }
 0xbb0   : > { %13520 = vmatprep.mubr.bf16.mxu0 %v9520_v61  ;;  %13525 = vmatpush3.bf16.msra.mxu0 %v14458_v10 }
 0xbb1   : > { %13526 = vmatprep.subr.bf16.mxu0 %v14459_v49  ;;  %13473 = vmatmul.mubr.bf16.gmra.mrb[52].mxu1 %v16752_v58 }
 0xbb4   : > { %13527 = vmatpush3.bf16.msra.mxu0 %v14459_v49 }
 0xbb5   : > { %13528 = vmatprep.subr.bf16.mxu0 %v14460_v8 }
 0xbb7   : > { %13521 = vmatmul.mubr.bf16.gmra.mrb[36].mxu0 %v9521_v41 }
 0xbb8   : > { %13529 = vmatpush3.bf16.msra.mxu0 %v14460_v8  ;;  %13540 = vmatprep.mubr.bf16.mxu0 %v9668_v56  ;;  %v14467_v56 = vld [vmem:[%s16961_s10 + $0x148] sm:$0xff]  }
 0xbb9   : > { %13530 = vmatprep.subr.bf16.mxu0 %v14461_v7 }
 0xbbc   : > { %13531 = vmatpush3.bf16.msra.mxu0 %v14461_v7  ;;  %v10429_v7 = vld [vmem:[%s16914_s16 + $0x18] sm:$0xff] }
 0xbbd   : > { %13532 = vmatprep.subr.bf16.mxu0 %v14462_v30 }
 0xbc0   : > { %13533 = vmatpush3.bf16.msra.mxu0 %v14462_v30 }
 0xbc1   : > { %13534 = vmatprep.subr.bf16.mxu0 %v14463_v2 }
 0xbc4   : > { %13535 = vmatpush3.bf16.msra.mxu0 %v14463_v2 }
 0xbc5   : > { %13536 = vmatprep.subr.bf16.mxu0 %v14464_v50 }
 0xbc8   : > { %13537 = vmatpush3.bf16.msra.mxu0 %v14464_v50 }
 0xbc9   : > { %13538 = vmatprep.subr.bf16.mxu0 %v14465_v60 }
 0xbcc   : > { %13539 = vmatpush3.bf16.msra.mxu0 %v14465_v60  ;;  %v10427_v60 = vld [vmem:[%s16914_s16 + $0x8] sm:$0xff] }
 0xbcd   : > { %13548 = vmatprep.subr.bf16.mxu0 %v14466_v13 }
 0xbcf   : > { %13541 = vmatmul.mubr.bf16.vlgmr.msra.gmra.mrb[32].mxu0 %v9669_v40  ;;  %v14472_v40 = vld [vmem:[%s16961_s10 + $0x170] sm:$0xff]  }
 0xbd0   : > { %13544 = vmatprep.mubr.bf16.mxu0 %v9670_v48  ;;  %13549 = vmatpush3.bf16.msra.mxu0 %v14466_v13  ;;  %v14481_v48 = vld [vmem:[%s16961_s10 + $0x1b8] sm:$0xff]  }
 0xbd1   : > { %13550 = vmatprep.subr.bf16.mxu0 %v14467_v56 }
 0xbd4   : > { %13551 = vmatpush3.bf16.msra.mxu0 %v14467_v56 }
 0xbd5   : > { %13552 = vmatprep.subr.bf16.mxu0 %v14468_v42 }
 0xbd7   : > { %13545 = vmatmul.mubr.bf16.gmra.mrb[36].mxu0 %v9671_v59  ;;  %v9821_v59 = vpack.c.bf16 %v16830_v24, %v16706_v36  ;;  %v14490_v36 = vld [vmem:[%s16961_s10 + $0x200] sm:$0xff]  }
 0xbd8   : > { %13553 = vmatpush3.bf16.msra.mxu0 %v14468_v42  ;;  %13564 = vmatprep.mubr.bf16.mxu0 %v9818_v29  ;;  %v14482_v29 = vld [vmem:[%s16961_s10 + $0x1c0] sm:$0xff]  }
 0xbd9   : > { %13554 = vmatprep.subr.bf16.mxu0 %v14469_v27 }
 0xbdc   : > { %13555 = vmatpush3.bf16.msra.mxu0 %v14469_v27 }
 0xbdd   : > { %13556 = vmatprep.subr.bf16.mxu0 %v14470_v55 }
 0xbe0   : > { %13557 = vmatpush3.bf16.msra.mxu0 %v14470_v55 }
 0xbe1   : > { %13558 = vmatprep.subr.bf16.mxu0 %v14471_v6 }
 0xbe4   : > { %13559 = vmatpush3.bf16.msra.mxu0 %v14471_v6 }
 0xbe5   : > { %13560 = vmatprep.subr.bf16.mxu0 %v14472_v40 }
 0xbe8   : > { %13561 = vmatpush3.bf16.msra.mxu0 %v14472_v40 }
 0xbe9   : > { %13562 = vmatprep.subr.bf16.mxu0 %v14473_v33 }
 0xbec   : > { %13563 = vmatpush3.bf16.msra.mxu0 %v14473_v33 }
 0xbed   : > { %13572 = vmatprep.subr.bf16.mxu0 %v14474_v28 }
 0xbef   : > { %13565 = vmatmul.mubr.bf16.vlgmr.msra.gmra.mrb[32].mxu0 %v9819_v19  ;;  %v14479_v19 = vld [vmem:[%s16961_s10 + $0x1a8] sm:$0xff]  }
 0xbf0   : > { %13568 = vmatprep.mubr.bf16.mxu0 %v9820_v57  ;;  %13573 = vmatpush3.bf16.msra.mxu0 %v14474_v28  ;;  %v10122_v57 = vpack.c.bf16 %v10118_v39, %v16640_v11  ;;  %v14495_v11 = vld [vmem:[%s16961_s10 + $0x228] sm:$0xff]  }
 0xbf1   : > { %13574 = vmatprep.subr.bf16.mxu0 %v14475_v23 }
 0xbf4   : > { %13575 = vmatpush3.bf16.msra.mxu0 %v14475_v23 }
 0xbf5   : > { %13576 = vmatprep.subr.bf16.mxu0 %v14476_v21 }
 0xbf7   : > { %13569 = vmatmul.mubr.bf16.gmra.mrb[36].mxu0 %v9821_v59 }
 0xbf8   : > { %13577 = vmatpush3.bf16.msra.mxu0 %v14476_v21  ;;  %13588 = vmatprep.mubr.bf16.mxu0 %v16740_v53 }
 0xbf9   : > { %13578 = vmatprep.subr.bf16.mxu0 %v14477_v31 }
 0xbfc   : > { %13579 = vmatpush3.bf16.msra.mxu0 %v14477_v31  ;;  %v10432_v31 = vld [vmem:[%s16914_s16 + $0x30] sm:$0xff] }
 0xbfd   : > { %13580 = vmatprep.subr.bf16.mxu0 %v14478_v0 }
 0xc00   : > { %13581 = vmatpush3.bf16.msra.mxu0 %v14478_v0 }
 0xc01   : > { %13582 = vmatprep.subr.bf16.mxu0 %v14479_v19 }
 0xc04   : > { %13583 = vmatpush3.bf16.msra.mxu0 %v14479_v19 }
 0xc05   : > { %13584 = vmatprep.subr.bf16.mxu0 %v14480_v14 }
 0xc08   : > { %13585 = vmatpush3.bf16.msra.mxu0 %v14480_v14 }
 0xc09   : > { %13586 = vmatprep.subr.bf16.mxu0 %v14481_v48 }
 0xc0c   : > { %13587 = vmatpush3.bf16.msra.mxu0 %v14481_v48 }
 0xc0d   : > { %13596 = vmatprep.subr.bf16.mxu0 %v14482_v29 }
 0xc0f   : > { %13589 = vmatmul.mubr.bf16.vlgmr.msra.gmra.mrb[32].mxu0 %v16742_v38 }
 0xc10   : > { %13592 = vmatprep.mubr.bf16.mxu0 %v16752_v58  ;;  %13597 = vmatpush3.bf16.msra.mxu0 %v14482_v29  ;;  %v10426_v58 = vld [vmem:[%s16914_s16] sm:$0xff] }
 0xc11   : > { %13598 = vmatprep.subr.bf16.mxu0 %v14483_v12  ;;  %v10430_v29 = vld [vmem:[%s16914_s16 + $0x20] sm:$0xff] }
 0xc14   : > { %13599 = vmatpush3.bf16.msra.mxu0 %v14483_v12 }
 0xc15   : > { %13600 = vmatprep.subr.bf16.mxu0 %v14484_v54 }
 0xc17   : > { %13593 = vmatmul.mubr.bf16.gmra.mrb[36].mxu0 %v9972_v18 }
 0xc18   : > { %13601 = vmatpush3.bf16.msra.mxu0 %v14484_v54  ;;  %13612 = vmatprep.mubr.bf16.mxu0 %v16627_v45  ;;  %v14489_v45 = vld [vmem:[%s16961_s10 + $0x1f8] sm:$0xff]  }
 0xc19   : > { %13602 = vmatprep.subr.bf16.mxu0 %v14485_v52 }
 0xc1c   : > { %13603 = vmatpush3.bf16.msra.mxu0 %v14485_v52 }
 0xc1d   : > { %13604 = vmatprep.subr.bf16.mxu0 %v14486_v34 }
 0xc20   : > { %13605 = vmatpush3.bf16.msra.mxu0 %v14486_v34  ;;  %v10433_v34 = vld [vmem:[%s16914_s16 + $0x38] sm:$0xff] }
 0xc21   : > { %13606 = vmatprep.subr.bf16.mxu0 %v14487_v17 }
 0xc24   : > { %13607 = vmatpush3.bf16.msra.mxu0 %v14487_v17 }
 0xc25   : > { %13608 = vmatprep.subr.bf16.mxu0 %v14488_v32 }
 0xc28   : > { %13609 = vmatpush3.bf16.msra.mxu0 %v14488_v32 }
 0xc29   : > { %13610 = vmatprep.subr.bf16.mxu0 %v14489_v45 }
 0xc2c   : > { %13611 = vmatpush3.bf16.msra.mxu0 %v14489_v45 }
 0xc2d   : > { %13620 = vmatprep.subr.bf16.mxu0 %v14490_v36 }
 0xc2f   : > { %13613 = vmatmul.mubr.bf16.vlgmr.msra.gmra.mrb[32].mxu0 %v16655_v3  ;;  %v14494_v3 = vld [vmem:[%s16961_s10 + $0x220] sm:$0xff]  }
 0xc30   : > { %13616 = vmatprep.mubr.bf16.mxu0 %v16677_v26  ;;  %13621 = vmatpush3.bf16.msra.mxu0 %v14490_v36  ;;  %v14496_v26 = vld [vmem:[%s16961_s10 + $0x230] sm:$0xff]   ;;  %v10431_v36 = vld [vmem:[%s16914_s16 + $0x28] sm:$0xff] }
 0xc31   : > { %13622 = vmatprep.subr.bf16.mxu0 %v14491_v62 }
 0xc34   : > { %13623 = vmatpush3.bf16.msra.mxu0 %v14491_v62 }
 0xc35   : > { %13624 = vmatprep.subr.bf16.mxu0 %v14492_v43 }
 0xc37   : > { %13617 = vmatmul.mubr.bf16.gmra.mrb[36].mxu0 %v10122_v57 }
 0xc38   : > { %13625 = vmatpush3.bf16.msra.mxu0 %v14492_v43  ;;  %13636 = vmatprep.mubr.bf16.mxu0 %v16669_v1  ;;  %v14497_v1 = vld [vmem:[%s16961_s10 + $0x238] sm:$0xff]  }
 0xc39   : > { %13626 = vmatprep.subr.bf16.mxu0 %v14493_v20 }
 0xc3c   : > { %13627 = vmatpush3.bf16.msra.mxu0 %v14493_v20 }
 0xc3d   : > { %13628 = vmatprep.subr.bf16.mxu0 %v14494_v3 }
 0xc40   : > { %13629 = vmatpush3.bf16.msra.mxu0 %v14494_v3 }
 0xc41   : > { %13630 = vmatprep.subr.bf16.mxu0 %v14495_v11 }
 0xc44   : > { %13631 = vmatpush3.bf16.msra.mxu0 %v14495_v11 }
 0xc45   : > { %13632 = vmatprep.subr.bf16.mxu0 %v14496_v26 }
 0xc48   : > { %13633 = vmatpush3.bf16.msra.mxu0 %v14496_v26 }
 0xc49   : > { %13634 = vmatprep.subr.bf16.mxu0 %v14497_v1 }
 0xc4c   : > { %13635 = vmatpush3.bf16.msra.mxu0 %v14497_v1 }
 0xc4f   : > { %13637 = vmatmul.mubr.bf16.vlgmr.msra.gmra.mrb[32].mxu0 %v16702_v22 }
 0xc50   : > { %13640 = vmatprep.mubr.bf16.mxu0 %v16711_v37  ;;  %v11763_v37 = vld [vmem:[%s16962_s11] ss:$0 sm:$0xff] }
 0xc57   : > { %13641 = vmatmul.mubr.bf16.gmra.mrb[36].mxu0 %v10272_v16 }
 0xc7b   : > { %v13470_v51 = vpop.f32.mrb[48].mxu1 }
 0xc7c   : > { %v9329_v15 = vpop.f32.mrb[49].mxu1 }
 0xc7d   : > { %v13471_v46 = vpop.f32.mrb[50].mxu1 }
 0xc7e   : > { %v9332_v35 = vpop.f32.mrb[51].mxu1 }
 0xc84   : > { %v13474_v47 = vpop.f32.mrb[52].mxu1 }
 0xc85   : > { %v9345_v53 = vpop.f32.mrb[53].mxu1 }
 0xc86   : > { %v13475_v63 = vpop.f32.mrb[54].mxu1 }
 0xc87   : > { %v9348_v38 = vpop.f32.mrb[55].mxu1 }
 0xd22   : > { %v13638_v22 = vpop.f32.mrb[32].mxu0 }
 0xd23   : > { %v13652_v10 = vadd.f32 %v13638_v22, %v13470_v51  ;;  %v10372_v4 = vpop.f32.mrb[33].mxu0 }
 0xd24   : > { %v13653_v49 = vadd.f32 %v10372_v4, %v9329_v15  ;;  %v13639_v61 = vpop.f32.mrb[34].mxu0 }
 0xd25   : > { %v10420_v5 = vadd.f32 %v13652_v10, %v11763_v37  ;;  %v13654_v8 = vadd.f32 %v13639_v61, %v13471_v46  ;;  %v10375_v9 = vpop.f32.mrb[35].mxu0 }
 0xd26   : > { %v10418_v41 = vadd.f32 %v13653_v49, %v11763_v37  ;;  %v13655_v30 = vadd.f32 %v10375_v9, %v9332_v35 }
 0xd27   : > { %v10436_v2 = vadd.f32 %v10428_v44, %v10420_v5  ;;  %v10421_v50 = vadd.f32 %v13654_v8, %v11763_v37 }
 0xd28   : > { %v10434_v13 = vadd.f32 %v10426_v58, %v10418_v41  ;;  %v10419_v56 = vadd.f32 %v13655_v30, %v11763_v37 }
 0xd29   : > { %v10444_v42 = vmax.f32 %v10436_v2, 0.0  ;;  %v10437_v27 = vadd.f32 %v10429_v7, %v10421_v50 }
 0xd2a   : > { %v10442_v55 = vmax.f32 %v10434_v13, 0.0  ;;  %v10435_v6 = vadd.f32 %v10427_v60, %v10419_v56  ;;  %v13642_v40 = vpop.f32.mrb[36].mxu0 }
 0xd2b   : > { %v10452_v33 = vmin.f32 %v10444_v42, 1.0  ;;  %v10445_v28 = vmax.f32 %v10437_v27, 0.0  ;;  %v13656_v23 = vadd.f32 %v13642_v40, %v13474_v47  ;;  %v10388_v21 = vpop.f32.mrb[37].mxu0 }
 0xd2c   : > { %v10450_v24 = vmin.f32 %v10442_v55, 1.0  ;;  %v10443_v59 = vmax.f32 %v10435_v6, 0.0  ;;  %v13657_v0 = vadd.f32 %v10388_v21, %v9345_v53  ;;  %v13643_v19 = vpop.f32.mrb[38].mxu0 }
 0xd2d   : > { %10461 = vst.msk [vmem:[%s16926_s20 + $0x10] sm:$0xff] %vm10458_vm4, %v10452_v33  ;;  %v10453_v14 = vmin.f32 %v10445_v28, 1.0  ;;  %v10424_v48 = vadd.f32 %v13656_v23, %v11763_v37  ;;  %v13658_v12 = vadd.f32 %v13643_v19, %v13475_v63  ;;  %v10391_v54 = vpop.f32.mrb[39].mxu0 }
 0xd2e   : > { %10459 = vst.msk [vmem:[%s16926_s20] sm:$0xff] %vm10458_vm4, %v10450_v24  ;;  %v10451_v18 = vmin.f32 %v10443_v59, 1.0  ;;  %v10422_v52 = vadd.f32 %v13657_v0, %v11763_v37  ;;  %v13659_v17 = vadd.f32 %v10391_v54, %v9348_v38 }
 0xd2f   : > { %10462 = vst.msk [vmem:[%s16926_s20 + $0x18] sm:$0xff] %vm10458_vm4, %v10453_v14  ;;  %v10440_v32 = vadd.f32 %v10432_v31, %v10424_v48  ;;  %v10425_v45 = vadd.f32 %v13658_v12, %v11763_v37 }
 0xd30   : > { %10460 = vst.msk [vmem:[%s16926_s20 + $0x8] sm:$0xff] %vm10458_vm4, %v10451_v18  ;;  %v10438_v62 = vadd.f32 %v10430_v29, %v10422_v52  ;;  %v10423_v43 = vadd.f32 %v13659_v17, %v11763_v37 }
 0xd31   : > { %v10448_v39 = vmax.f32 %v10440_v32, 0.0  ;;  %v10441_v57 = vadd.f32 %v10433_v34, %v10425_v45 }
 0xd32   : > { %v10446_v20 = vmax.f32 %v10438_v62, 0.0  ;;  %v10439_v3 = vadd.f32 %v10431_v36, %v10423_v43 }
 0xd33   : > { %v10456_v11 = vmin.f32 %v10448_v39, 1.0  ;;  %v10449_v26 = vmax.f32 %v10441_v57, 0.0 }
 0xd34   : > { %v10454_v1 = vmin.f32 %v10446_v20, 1.0  ;;  %v10447_v25 = vmax.f32 %v10439_v3, 0.0 }
 0xd35   : > { %10465 = vst.msk [vmem:[%s16926_s20 + $0x30] sm:$0xff] %vm10458_vm4, %v10456_v11  ;;  %v10457_v16 = vmin.f32 %v10449_v26, 1.0 }
 0xd36   : > { %10463 = vst.msk [vmem:[%s16926_s20 + $0x20] sm:$0xff] %vm10458_vm4, %v10454_v1  ;;  %v10455_v51 = vmin.f32 %v10447_v25, 1.0 }
 0xd37   : > { %10466 = vst.msk [vmem:[%s16926_s20 + $0x38] sm:$0xff] %vm10458_vm4, %v10457_v16 }
 0xd38   : > { %10464 = vst.msk [vmem:[%s16926_s20 + $0x28] sm:$0xff] %vm10458_vm4, %v10455_v51 }
 0xd39 PF: > { %s22_s21 = sadd.s32 1, %s14505_s21  }
 0xd3a   : > { %p19_p4 = scmp.ge.s32.totalorder %s22_s21, 4  }
 0xd3c   :  { %21 = sbr.rel (!%p19_p4) target bundleno = 1 (0x1), region = 180 }

</bundles_post_ra>
